<compile_context>
chip_gen: v7x
topology: tpu7x:2x2x1
jax: 0.10.0
libtpu: 0.0.40
codegen_flags: <defaults>
</compile_context>

<pallas_src>
import functools

import jax
import jax.numpy as jnp
from jax import lax
from jax.experimental import pallas as pl
from jax.experimental.pallas import tpu as pltpu


# ---------------------------------------------------------------------------
# In-kernel helpers
# ---------------------------------------------------------------------------

def _softmax_all(x):
    """Softmax over ALL elements of a 2-D f32 tile (== softmax over the
    flattened per-batch tensor in the reference)."""
    m = jnp.max(jnp.max(x, axis=1, keepdims=True), axis=0, keepdims=True)
    e = jnp.exp(x - m)
    s = jnp.sum(jnp.sum(e, axis=1, keepdims=True), axis=0, keepdims=True)
    return e * pl.reciprocal(s, approx=True)


def _bf16(a):
    return a.astype(jnp.bfloat16)


def _cparams(step_bytes, n_grid_axes=1):
    """Compiler params: all grid axes parallel + a scoped-VMEM limit derived
    from the per-step block footprint (clamped to be safe on v5e/v6e/v7x)."""
    limit = int(min(max(3 * int(step_bytes), 32 * 1024 * 1024), 60 * 1024 * 1024))
    return pltpu.CompilerParams(
        dimension_semantics=("parallel",) * n_grid_axes,
        vmem_limit_bytes=limit)


# ---------------------------------------------------------------------------
# Pallas kernels
# ---------------------------------------------------------------------------

def _sgcn_kernel(x_ref, pw_ref, pb_ref, cw_ref, cb_ref, o_ref, *, sp):
    """Fused sGCN: one stacked theta/nu/ksi projection matmul, global
    softmaxes, both graph matmuls, output 1x1 conv and residual. bf16 out."""
    x = x_ref[0]                                          # (C, HW) f32
    xb = _bf16(x)
    proj = jnp.dot(pw_ref[...], xb, preferred_element_type=jnp.float32) + pb_ref[...]
    theta = _bf16(proj[0:sp])                             # (sp, HW)
    nu = _softmax_all(proj[sp:2 * sp])
    ksi = _softmax_all(proj[2 * sp:3 * sp])
    # F_s = nu @ ksi^T : (sp, sp), bf16 operands / f32 accumulate
    f_s = lax.dot_general(_bf16(nu), _bf16(ksi), (((1,), (1,)), ((), ())),
                          preferred_element_type=jnp.float32)
    # AF_s = F_s @ theta : (sp, HW)
    af = jnp.dot(_bf16(f_s), theta, preferred_element_type=jnp.float32)
    f_sgcn = jnp.dot(cw_ref[...], _bf16(af),
                     preferred_element_type=jnp.float32) + cb_ref[...]
    o_ref[0] = _bf16(x + f_sgcn)


def _dcm_kernel(col_ref, x_ref,
                w1_ref, w2_ref, w3_ref, w4_ref,
                b1_ref, b2_ref, b3_ref, b4_ref,
                wf_ref, bfu_ref, o_ref, pflat_ref, *, W, HW, PF):
    """Fused DCM (one batch element per grid step): 4 in-kernel 3x3 convs
    (each = 9 shifted matmuls over a zero-padded flat scratch with column
    masks) followed by the concat-free fusion 1x1 conv."""
    col = col_ref[...]                                    # (1, HW) int32: j = p % W
    x = x_ref[0]                                          # (C, HW) bf16

    # Zero the halo once; the interior is fully overwritten per conv and the
    # halo columns are never written again, so they stay zero.
    pflat_ref[...] = jnp.zeros_like(pflat_ref)

    def conv3x3(inp_bf, w_ref, b_ref, d):
        pflat_ref[:, PF:PF + HW] = inp_bf                 # lane-aligned store
        lmask = col >= d                                  # source col j-d valid
        rmask = col < (W - d)                             # source col j+d valid
        acc = None
        for ky in range(3):
            for kx in range(3):
                shift = (ky - 1) * d * W + (kx - 1) * d
                slab = pflat_ref[:, PF + shift:PF + shift + HW]   # (C, HW) bf16
                if kx == 0:
                    slab = jnp.where(lmask, slab, jnp.zeros_like(slab))
                elif kx == 2:
                    slab = jnp.where(rmask, slab, jnp.zeros_like(slab))
                part = jnp.dot(w_ref[3 * ky + kx], slab,
                               preferred_element_type=jnp.float32)
                acc = part if acc is None else acc + part
        return jnp.maximum(acc + b_ref[...], 0.0)         # ReLU, (C, HW) f32

    o1 = _bf16(conv3x3(x, w1_ref, b1_ref, 1))
    o2 = _bf16(conv3x3(o1, w2_ref, b2_ref, 1))
    o3 = _bf16(conv3x3(x, w3_ref, b3_ref, 3))
    o4 = _bf16(conv3x3(o3, w4_ref, b4_ref, 3))
    # Fusion: single (C, 5C) @ (5C, HW) matmul over an in-register concat.
    feats = jnp.concatenate([x, o1, o2, o3, o4], axis=0)  # (5C, HW) bf16
    y = jnp.dot(wf_ref[...], feats, preferred_element_type=jnp.float32) + bfu_ref[...]
    o_ref[0] = _bf16(jnp.maximum(y, 0.0))


def _cgcn_kernel(x0_ref, x_ref, pw_ref, pb_ref, w1_ref, b1_ref, w2_ref, b2_ref,
                 ew_ref, eb_ref, o_ref, *, c2, c4):
    """Fused cGCN: stacked zeta/kappa projection, channel-graph math,
    conv1/conv2, expand conv, inner (x) and outer BasicBlock (x0) residuals."""
    x0 = x0_ref[0]                                        # block input (C, HW) f32
    xd = x_ref[0]                                         # DCM output  (C, HW) bf16
    proj = jnp.dot(pw_ref[...], xd, preferred_element_type=jnp.float32) + pb_ref[...]
    zeta = _bf16(proj[0:c2])                              # (c2, HW)
    kappa = _bf16(proj[c2:c2 + c4])                       # (c4, HW)
    # F_c = kappa @ zeta^T : (c4, c2), softmax over all c4*c2 entries.
    fc = lax.dot_general(kappa, zeta, (((1,), (1,)), ((), ())),
                         preferred_element_type=jnp.float32)
    fc = _softmax_all(fc)
    # conv1 (Conv1d over c2 channels) in the transposed representation:
    # r[k, o] = sum_i fc[k, i] * w1[o, i] + b1[o]
    r = lax.dot_general(_bf16(fc), w1_ref[...], (((1,), (1,)), ((), ())),
                        preferred_element_type=jnp.float32) + b1_ref[...]
    fc = jnp.maximum(fc + r, 0.0)
    # conv2 (Conv1d over c4 channels): fc = w2 @ fc + b2
    fc = jnp.dot(w2_ref[...], _bf16(fc), preferred_element_type=jnp.float32) + b2_ref[...]
    # (zeta^T @ F_c)^T == fc @ zeta : (c4, HW)
    out_c4 = jnp.dot(_bf16(fc), zeta, preferred_element_type=jnp.float32)
    f_cgcn = jnp.dot(ew_ref[...], _bf16(out_c4),
                     preferred_element_type=jnp.float32) + eb_ref[...]
    o_ref[0] = x0 + xd.astype(jnp.float32) + f_cgcn       # cGCN + BasicBlock residuals


# ---------------------------------------------------------------------------
# Module wrappers (JAX glue: weight repacking / reshapes only)
# ---------------------------------------------------------------------------

def sgcn_forward(x, p):
    """x: (B, C, HW) f32 -> (B, C, HW) bf16 (x + F_sGCN)."""
    B, C, HW = x.shape
    sp = p['theta_w'].shape[0]
    pw = _bf16(jnp.concatenate([p['theta_w'], p['nu_w'], p['ksi_w']], axis=0))
    pb = jnp.concatenate([p['theta_b'], p['nu_b'], p['ksi_b']]
                         ).reshape(3 * sp, 1).astype(jnp.float32)
    cw = _bf16(p['conv_w'])
    cb = p['conv_b'].reshape(C, 1).astype(jnp.float32)
    step_bytes = C * HW * (4 + 2) + 2 * (pw.size + cw.size) + 4 * (pb.size + cb.size)
    return pl.pallas_call(
        functools.partial(_sgcn_kernel, sp=sp),
        out_shape=jax.ShapeDtypeStruct((B, C, HW), jnp.bfloat16),
        grid=(B,),
        in_specs=[
            pl.BlockSpec((1, C, HW), lambda bi: (bi, 0, 0)),
            pl.BlockSpec((3 * sp, C), lambda bi: (0, 0)),
            pl.BlockSpec((3 * sp, 1), lambda bi: (0, 0)),
            pl.BlockSpec((C, sp), lambda bi: (0, 0)),
            pl.BlockSpec((C, 1), lambda bi: (0, 0)),
        ],
        out_specs=pl.BlockSpec((1, C, HW), lambda bi: (bi, 0, 0)),
        compiler_params=_cparams(step_bytes),
    )(x, pw, pb, cw, cb)


def _conv_taps(w):
    """PyTorch Conv2d weight (Cout, Cin, 3, 3) -> tap-major (9, Cout, Cin)."""
    co, ci = w.shape[0], w.shape[1]
    return jnp.transpose(w, (2, 3, 0, 1)).reshape(9, co, ci)


def dcm_forward(x, p, H, W):
    """x: (B, C, HW) bf16 -> (B, C, HW) bf16. Whole DCM in one kernel/batch."""
    B, C, HW = x.shape
    PF = ((3 * W + 3 + 127) // 128) * 128      # lane-aligned flat zero-halo width
    wt = [_bf16(_conv_taps(p[k])) for k in ('c1_w', 'c2_w', 'c3_w', 'c4_w')]
    bt = [p[k].reshape(C, 1).astype(jnp.float32)
          for k in ('c1_b', 'c2_b', 'c3_b', 'c4_b')]
    wf = _bf16(p['fusion_w'])                              # (C, 5C)
    bfu = p['fusion_b'].reshape(C, 1).astype(jnp.float32)
    col = (jnp.arange(HW, dtype=jnp.int32) % W).reshape(1, HW)
    scratch_bytes = C * (HW + 2 * PF) * 2
    step_bytes = (C * HW * 2 * 2 + 4 * 9 * C * C * 2 + C * 5 * C * 2
                  + scratch_bytes + HW * 4)
    tap_spec = pl.BlockSpec((9, C, C), lambda bi: (0, 0, 0))
    bias_spec = pl.BlockSpec((C, 1), lambda bi: (0, 0))
    return pl.pallas_call(
        functools.partial(_dcm_kernel, W=W, HW=HW, PF=PF),
        out_shape=jax.ShapeDtypeStruct((B, C, HW), jnp.bfloat16),
        grid=(B,),
        in_specs=[
            pl.BlockSpec((1, HW), lambda bi: (0, 0)),           # column ids
            pl.BlockSpec((1, C, HW), lambda bi: (bi, 0, 0)),    # x
            tap_spec, tap_spec, tap_spec, tap_spec,
            bias_spec, bias_spec, bias_spec, bias_spec,
            pl.BlockSpec((C, 5 * C), lambda bi: (0, 0)),
            pl.BlockSpec((C, 1), lambda bi: (0, 0)),
        ],
        out_specs=pl.BlockSpec((1, C, HW), lambda bi: (bi, 0, 0)),
        scratch_shapes=[pltpu.VMEM((C, HW + 2 * PF), jnp.bfloat16)],
        compiler_params=_cparams(step_bytes),
    )(col, x, wt[0], wt[1], wt[2], wt[3], bt[0], bt[1], bt[2], bt[3], wf, bfu)


def cgcn_forward(x0, xd, p):
    """x0: BasicBlock input (B,C,HW) f32; xd: DCM output (B,C,HW) bf16 -> f32."""
    B, C, HW = x0.shape
    c2, c4 = C // 2, C // 4
    pw = _bf16(jnp.concatenate([p['zeta_w'], p['kappa_w']], axis=0))  # (c2+c4, C)
    pb = jnp.concatenate([p['zeta_b'], p['kappa_b']]
                         ).reshape(c2 + c4, 1).astype(jnp.float32)
    step_bytes = C * HW * (4 + 2 + 4) + 2 * pw.size + 1024
    return pl.pallas_call(
        functools.partial(_cgcn_kernel, c2=c2, c4=c4),
        out_shape=jax.ShapeDtypeStruct((B, C, HW), jnp.float32),
        grid=(B,),
        in_specs=[
            pl.BlockSpec((1, C, HW), lambda bi: (bi, 0, 0)),   # x0
            pl.BlockSpec((1, C, HW), lambda bi: (bi, 0, 0)),   # xd
            pl.BlockSpec((c2 + c4, C), lambda bi: (0, 0)),
            pl.BlockSpec((c2 + c4, 1), lambda bi: (0, 0)),
            pl.BlockSpec((c2, c2), lambda bi: (0, 0)),
            pl.BlockSpec((1, c2), lambda bi: (0, 0)),
            pl.BlockSpec((c4, c4), lambda bi: (0, 0)),
            pl.BlockSpec((c4, 1), lambda bi: (0, 0)),
            pl.BlockSpec((C, c4), lambda bi: (0, 0)),
            pl.BlockSpec((C, 1), lambda bi: (0, 0)),
        ],
        out_specs=pl.BlockSpec((1, C, HW), lambda bi: (bi, 0, 0)),
        compiler_params=_cparams(step_bytes),
    )(x0, xd, pw, pb,
      _bf16(p['conv1_w']), p['conv1_b'].reshape(1, c2).astype(jnp.float32),
      _bf16(p['conv2_w']), p['conv2_b'].reshape(c4, 1).astype(jnp.float32),
      _bf16(p['expand_w']), p['expand_b'].reshape(C, 1).astype(jnp.float32))


def basicblock_forward(x, params):
    """x: (B, C, H, W) f32  ->  (B, C, H, W) f32 (x + cGCN(DCM(sGCN(x))))."""
    B, C, H, W = x.shape
    HW = H * W
    x_flat = x.reshape(B, C, HW)                    # pure reshape, lane-dense
    xs = sgcn_forward(x_flat, params['sgcn'])       # bf16: sGCN (incl. residual)
    xd = dcm_forward(xs, params['dcm'], H, W)       # bf16: whole DCM, one kernel
    out = cgcn_forward(x_flat, xd, params['cgcn'])  # f32: cGCN + both residuals
    return out.reshape(B, C, H, W)


# ---------------------------------------------------------------------------
# Deterministic parameter construction (PyTorch-native layouts)
# ---------------------------------------------------------------------------

class ParamGen:
    def __init__(self, key, scale=0.05):
        self.key, self.scale, self.i = key, scale, 0

    def __call__(self, shape):
        k = jax.random.fold_in(self.key, self.i)
        self.i += 1
        return (self.scale * jax.random.normal(k, shape)).astype(jnp.float32)


def make_basicblock_params(pg, planes):
    sp = planes // 2          # sGCN(planes, planes // 2)
    c2, c4 = planes // 2, planes // 4
    return {
        'sgcn': {
            'theta_w': pg((sp, planes)), 'theta_b': pg((sp,)),
            'nu_w': pg((sp, planes)), 'nu_b': pg((sp,)),
            'ksi_w': pg((sp, planes)), 'ksi_b': pg((sp,)),
            'conv_w': pg((planes, sp)), 'conv_b': pg((planes,)),
        },
        'dcm': {  # Conv2d weights kept in PyTorch (Cout, Cin, 3, 3) layout
            'c1_w': pg((planes, planes, 3, 3)), 'c1_b': pg((planes,)),
            'c2_w': pg((planes, planes, 3, 3)), 'c2_b': pg((planes,)),
            'c3_w': pg((planes, planes, 3, 3)), 'c3_b': pg((planes,)),
            'c4_w': pg((planes, planes, 3, 3)), 'c4_b': pg((planes,)),
            'fusion_w': pg((planes, 5 * planes)), 'fusion_b': pg((planes,)),
        },
        'cgcn': {
            'zeta_w': pg((c2, planes)), 'zeta_b': pg((c2,)),
            'kappa_w': pg((c4, planes)), 'kappa_b': pg((c4,)),
            'conv1_w': pg((c2, c2)), 'conv1_b': pg((c2,)),
            'conv2_w': pg((c4, c4)), 'conv2_b': pg((c4,)),
            'expand_w': pg((planes, c4)), 'expand_b': pg((planes,)),
        },
    }


# ---------------------------------------------------------------------------
# Entry point
# ---------------------------------------------------------------------------

if __name__ == "__main__":
    B, C, H, W = 2, 16, 16, 16        # planes=16 (divisible by 4 for cGCN)
    root = jax.random.PRNGKey(0)
    x = jax.random.normal(jax.random.fold_in(root, 999), (B, C, H, W), jnp.float32)
    params = make_basicblock_params(ParamGen(root), C)

    fwd = jax.jit(basicblock_forward)
    y = jax.block_until_ready(fwd(x, params))

    assert y.shape == (B, C, H, W)
    assert y.dtype == jnp.float32
    assert bool(jnp.all(jnp.isfinite(y)))
    print("KERNEL_OK")
</pallas_src>

<mosaic_0001>
module attributes {stable_mosaic.version = 11 : i64} {
  func.func @_dcm_kernel(%arg0: i32, %arg1: memref<1x256xi32, #tpu.memory_space<vmem>>, %arg2: memref<1x16x256xbf16, #tpu.memory_space<vmem>>, %arg3: memref<9x16x16xbf16, #tpu.memory_space<vmem>>, %arg4: memref<9x16x16xbf16, #tpu.memory_space<vmem>>, %arg5: memref<9x16x16xbf16, #tpu.memory_space<vmem>>, %arg6: memref<9x16x16xbf16, #tpu.memory_space<vmem>>, %arg7: memref<16x1xf32, #tpu.memory_space<vmem>>, %arg8: memref<16x1xf32, #tpu.memory_space<vmem>>, %arg9: memref<16x1xf32, #tpu.memory_space<vmem>>, %arg10: memref<16x1xf32, #tpu.memory_space<vmem>>, %arg11: memref<16x80xbf16, #tpu.memory_space<vmem>>, %arg12: memref<16x1xf32, #tpu.memory_space<vmem>>, %arg13: memref<1x16x256xbf16, #tpu.memory_space<vmem>>, %arg14: memref<16x512xbf16, #tpu.memory_space<vmem>>) attributes {dimension_semantics = [#tpu.dimension_semantics<parallel>], iteration_bounds = array<i64: 2>, scalar_prefetch = 0 : i64, scratch_operands = 1 : i64, tpu.core_type = #tpu.core_type<tc>, window_params = [{pipeline_mode = #tpu.pipeline_mode<synchronous>, transform_indices = @transform_0, window_bounds = array<i64: 1, 256>}, {transform_indices = @transform_1, window_bounds = array<i64: 1, 16, 256>}, {pipeline_mode = #tpu.pipeline_mode<synchronous>, transform_indices = @transform_2, window_bounds = array<i64: 9, 16, 16>}, {pipeline_mode = #tpu.pipeline_mode<synchronous>, transform_indices = @transform_3, window_bounds = array<i64: 9, 16, 16>}, {pipeline_mode = #tpu.pipeline_mode<synchronous>, transform_indices = @transform_4, window_bounds = array<i64: 9, 16, 16>}, {pipeline_mode = #tpu.pipeline_mode<synchronous>, transform_indices = @transform_5, window_bounds = array<i64: 9, 16, 16>}, {pipeline_mode = #tpu.pipeline_mode<synchronous>, transform_indices = @transform_6, window_bounds = array<i64: 16, 1>}, {pipeline_mode = #tpu.pipeline_mode<synchronous>, transform_indices = @transform_7, window_bounds = array<i64: 16, 1>}, {pipeline_mode = #tpu.pipeline_mode<synchronous>, transform_indices = @transform_8, window_bounds = array<i64: 16, 1>}, {pipeline_mode = #tpu.pipeline_mode<synchronous>, transform_indices = @transform_9, window_bounds = array<i64: 16, 1>}, {pipeline_mode = #tpu.pipeline_mode<synchronous>, transform_indices = @transform_10, window_bounds = array<i64: 16, 80>}, {pipeline_mode = #tpu.pipeline_mode<synchronous>, transform_indices = @transform_11, window_bounds = array<i64: 16, 1>}, {transform_indices = @transform_12, window_bounds = array<i64: 1, 16, 256>}]} {
    %c0 = arith.constant 0 : index
    %c0_0 = arith.constant 0 : index
    %0 = vector.load %arg1[%c0, %c0_0] : memref<1x256xi32, #tpu.memory_space<vmem>>, vector<1x256xi32>
    %c0_1 = arith.constant 0 : index
    %c0_2 = arith.constant 0 : index
    %c0_3 = arith.constant 0 : index
    %1 = vector.load %arg2[%c0_1, %c0_2, %c0_3] : memref<1x16x256xbf16, #tpu.memory_space<vmem>>, vector<1x16x256xbf16>
    %2 = vector.shape_cast %1 : vector<1x16x256xbf16> to vector<16x256xbf16>
    %cst = arith.constant 0.000000e+00 : bf16
    %3 = vector.broadcast %cst : bf16 to vector<16x512xbf16>
    %c0_4 = arith.constant 0 : index
    %c0_5 = arith.constant 0 : index
    %4 = vector.load %arg14[%c0_4, %c0_5] : memref<16x512xbf16, #tpu.memory_space<vmem>>, vector<16x512xbf16>
    tpu.vector_store %arg14[%c0_4, %c0_5], %3 {strides = array<i32>} : memref<16x512xbf16, #tpu.memory_space<vmem>>, vector<16x512xbf16>,
    %c0_6 = arith.constant 0 : index
    %c128 = arith.constant 128 : index
    %5 = vector.load %arg14[%c0_6, %c128] : memref<16x512xbf16, #tpu.memory_space<vmem>>, vector<16x256xbf16>
    tpu.vector_store %arg14[%c0_6, %c128], %2 {strides = array<i32>} : memref<16x512xbf16, #tpu.memory_space<vmem>>, vector<16x256xbf16>,
    %c1_i32 = arith.constant 1 : i32
    %6 = vector.broadcast %c1_i32 : i32 to vector<1x256xi32>
    %7 = arith.cmpi sge, %0, %6 : vector<1x256xi32>
    %c15_i32 = arith.constant 15 : i32
    %8 = vector.broadcast %c15_i32 : i32 to vector<1x256xi32>
    %9 = arith.cmpi slt, %0, %8 : vector<1x256xi32>
    %c0_7 = arith.constant 0 : index
    %c111 = arith.constant 111 : index
    %10 = vector.load %arg14[%c0_7, %c111] : memref<16x512xbf16, #tpu.memory_space<vmem>>, vector<16x256xbf16>
    %cst_8 = arith.constant 0.000000e+00 : bf16
    %11 = vector.broadcast %cst_8 : bf16 to vector<16x256xbf16>
    %12 = vector.shape_cast %7 : vector<1x256xi1> to vector<1x256xi1>
    %13 = vector.broadcast %12 : vector<1x256xi1> to vector<16x256xi1>
    %14 = arith.select %13, %10, %11 : vector<16x256xi1>, vector<16x256xbf16>
    %c0_9 = arith.constant 0 : index
    %c0_10 = arith.constant 0 : index
    %c0_11 = arith.constant 0 : index
    %15 = vector.load %arg3[%c0_9, %c0_10, %c0_11] : memref<9x16x16xbf16, #tpu.memory_space<vmem>>, vector<1x16x16xbf16>
    %16 = vector.shape_cast %15 : vector<1x16x16xbf16> to vector<16x16xbf16>
    %cst_12 = arith.constant dense<0.000000e+00> : vector<16x256xf32>
    %17 = tpu.matmul %16, %14, %cst_12 {dimension_numbers = #tpu.dot_dimension_numbers<[1], [0], [0], [1], [0, 0, 1, 1], [], []>} : vector<16x16xbf16>, vector<16x256xbf16>, vector<16x256xf32> -> vector<16x256xf32>
    %c0_13 = arith.constant 0 : index
    %c112 = arith.constant 112 : index
    %18 = vector.load %arg14[%c0_13, %c112] : memref<16x512xbf16, #tpu.memory_space<vmem>>, vector<16x256xbf16>
    %c1 = arith.constant 1 : index
    %c0_14 = arith.constant 0 : index
    %c0_15 = arith.constant 0 : index
    %19 = vector.load %arg3[%c1, %c0_14, %c0_15] : memref<9x16x16xbf16, #tpu.memory_space<vmem>>, vector<1x16x16xbf16>
    %20 = vector.shape_cast %19 : vector<1x16x16xbf16> to vector<16x16xbf16>
    %cst_16 = arith.constant dense<0.000000e+00> : vector<16x256xf32>
    %21 = tpu.matmul %20, %18, %cst_16 {dimension_numbers = #tpu.dot_dimension_numbers<[1], [0], [0], [1], [0, 0, 1, 1], [], []>} : vector<16x16xbf16>, vector<16x256xbf16>, vector<16x256xf32> -> vector<16x256xf32>
    %22 = arith.addf %17, %21 : vector<16x256xf32>
    %c0_17 = arith.constant 0 : index
    %c113 = arith.constant 113 : index
    %23 = vector.load %arg14[%c0_17, %c113] : memref<16x512xbf16, #tpu.memory_space<vmem>>, vector<16x256xbf16>
    %cst_18 = arith.constant 0.000000e+00 : bf16
    %24 = vector.broadcast %cst_18 : bf16 to vector<16x256xbf16>
    %25 = vector.shape_cast %9 : vector<1x256xi1> to vector<1x256xi1>
    %26 = vector.broadcast %25 : vector<1x256xi1> to vector<16x256xi1>
    %27 = arith.select %26, %23, %24 : vector<16x256xi1>, vector<16x256xbf16>
    %c2 = arith.constant 2 : index
    %c0_19 = arith.constant 0 : index
    %c0_20 = arith.constant 0 : index
    %28 = vector.load %arg3[%c2, %c0_19, %c0_20] : memref<9x16x16xbf16, #tpu.memory_space<vmem>>, vector<1x16x16xbf16>
    %29 = vector.shape_cast %28 : vector<1x16x16xbf16> to vector<16x16xbf16>
    %cst_21 = arith.constant dense<0.000000e+00> : vector<16x256xf32>
    %30 = tpu.matmul %29, %27, %cst_21 {dimension_numbers = #tpu.dot_dimension_numbers<[1], [0], [0], [1], [0, 0, 1, 1], [], []>} : vector<16x16xbf16>, vector<16x256xbf16>, vector<16x256xf32> -> vector<16x256xf32>
    %31 = arith.addf %22, %30 : vector<16x256xf32>
    %c0_22 = arith.constant 0 : index
    %c127 = arith.constant 127 : index
    %32 = vector.load %arg14[%c0_22, %c127] : memref<16x512xbf16, #tpu.memory_space<vmem>>, vector<16x256xbf16>
    %cst_23 = arith.constant 0.000000e+00 : bf16
    %33 = vector.broadcast %cst_23 : bf16 to vector<16x256xbf16>
    %34 = vector.shape_cast %7 : vector<1x256xi1> to vector<1x256xi1>
    %35 = vector.broadcast %34 : vector<1x256xi1> to vector<16x256xi1>
    %36 = arith.select %35, %32, %33 : vector<16x256xi1>, vector<16x256xbf16>
    %c3 = arith.constant 3 : index
    %c0_24 = arith.constant 0 : index
    %c0_25 = arith.constant 0 : index
    %37 = vector.load %arg3[%c3, %c0_24, %c0_25] : memref<9x16x16xbf16, #tpu.memory_space<vmem>>, vector<1x16x16xbf16>
    %38 = vector.shape_cast %37 : vector<1x16x16xbf16> to vector<16x16xbf16>
    %cst_26 = arith.constant dense<0.000000e+00> : vector<16x256xf32>
    %39 = tpu.matmul %38, %36, %cst_26 {dimension_numbers = #tpu.dot_dimension_numbers<[1], [0], [0], [1], [0, 0, 1, 1], [], []>} : vector<16x16xbf16>, vector<16x256xbf16>, vector<16x256xf32> -> vector<16x256xf32>
    %40 = arith.addf %31, %39 : vector<16x256xf32>
    %c0_27 = arith.constant 0 : index
    %c128_28 = arith.constant 128 : index
    %41 = vector.load %arg14[%c0_27, %c128_28] : memref<16x512xbf16, #tpu.memory_space<vmem>>, vector<16x256xbf16>
    %c4 = arith.constant 4 : index
    %c0_29 = arith.constant 0 : index
    %c0_30 = arith.constant 0 : index
    %42 = vector.load %arg3[%c4, %c0_29, %c0_30] : memref<9x16x16xbf16, #tpu.memory_space<vmem>>, vector<1x16x16xbf16>
    %43 = vector.shape_cast %42 : vector<1x16x16xbf16> to vector<16x16xbf16>
    %cst_31 = arith.constant dense<0.000000e+00> : vector<16x256xf32>
    %44 = tpu.matmul %43, %41, %cst_31 {dimension_numbers = #tpu.dot_dimension_numbers<[1], [0], [0], [1], [0, 0, 1, 1], [], []>} : vector<16x16xbf16>, vector<16x256xbf16>, vector<16x256xf32> -> vector<16x256xf32>
    %45 = arith.addf %40, %44 : vector<16x256xf32>
    %c0_32 = arith.constant 0 : index
    %c129 = arith.constant 129 : index
    %46 = vector.load %arg14[%c0_32, %c129] : memref<16x512xbf16, #tpu.memory_space<vmem>>, vector<16x256xbf16>
    %cst_33 = arith.constant 0.000000e+00 : bf16
    %47 = vector.broadcast %cst_33 : bf16 to vector<16x256xbf16>
    %48 = vector.shape_cast %9 : vector<1x256xi1> to vector<1x256xi1>
    %49 = vector.broadcast %48 : vector<1x256xi1> to vector<16x256xi1>
    %50 = arith.select %49, %46, %47 : vector<16x256xi1>, vector<16x256xbf16>
    %c5 = arith.constant 5 : index
    %c0_34 = arith.constant 0 : index
    %c0_35 = arith.constant 0 : index
    %51 = vector.load %arg3[%c5, %c0_34, %c0_35] : memref<9x16x16xbf16, #tpu.memory_space<vmem>>, vector<1x16x16xbf16>
    %52 = vector.shape_cast %51 : vector<1x16x16xbf16> to vector<16x16xbf16>
    %cst_36 = arith.constant dense<0.000000e+00> : vector<16x256xf32>
    %53 = tpu.matmul %52, %50, %cst_36 {dimension_numbers = #tpu.dot_dimension_numbers<[1], [0], [0], [1], [0, 0, 1, 1], [], []>} : vector<16x16xbf16>, vector<16x256xbf16>, vector<16x256xf32> -> vector<16x256xf32>
    %54 = arith.addf %45, %53 : vector<16x256xf32>
    %c0_37 = arith.constant 0 : index
    %c143 = arith.constant 143 : index
    %55 = vector.load %arg14[%c0_37, %c143] : memref<16x512xbf16, #tpu.memory_space<vmem>>, vector<16x256xbf16>
    %cst_38 = arith.constant 0.000000e+00 : bf16
    %56 = vector.broadcast %cst_38 : bf16 to vector<16x256xbf16>
    %57 = vector.shape_cast %7 : vector<1x256xi1> to vector<1x256xi1>
    %58 = vector.broadcast %57 : vector<1x256xi1> to vector<16x256xi1>
    %59 = arith.select %58, %55, %56 : vector<16x256xi1>, vector<16x256xbf16>
    %c6 = arith.constant 6 : index
    %c0_39 = arith.constant 0 : index
    %c0_40 = arith.constant 0 : index
    %60 = vector.load %arg3[%c6, %c0_39, %c0_40] : memref<9x16x16xbf16, #tpu.memory_space<vmem>>, vector<1x16x16xbf16>
    %61 = vector.shape_cast %60 : vector<1x16x16xbf16> to vector<16x16xbf16>
    %cst_41 = arith.constant dense<0.000000e+00> : vector<16x256xf32>
    %62 = tpu.matmul %61, %59, %cst_41 {dimension_numbers = #tpu.dot_dimension_numbers<[1], [0], [0], [1], [0, 0, 1, 1], [], []>} : vector<16x16xbf16>, vector<16x256xbf16>, vector<16x256xf32> -> vector<16x256xf32>
    %63 = arith.addf %54, %62 : vector<16x256xf32>
    %c0_42 = arith.constant 0 : index
    %c144 = arith.constant 144 : index
    %64 = vector.load %arg14[%c0_42, %c144] : memref<16x512xbf16, #tpu.memory_space<vmem>>, vector<16x256xbf16>
    %c7 = arith.constant 7 : index
    %c0_43 = arith.constant 0 : index
    %c0_44 = arith.constant 0 : index
    %65 = vector.load %arg3[%c7, %c0_43, %c0_44] : memref<9x16x16xbf16, #tpu.memory_space<vmem>>, vector<1x16x16xbf16>
    %66 = vector.shape_cast %65 : vector<1x16x16xbf16> to vector<16x16xbf16>
    %cst_45 = arith.constant dense<0.000000e+00> : vector<16x256xf32>
    %67 = tpu.matmul %66, %64, %cst_45 {dimension_numbers = #tpu.dot_dimension_numbers<[1], [0], [0], [1], [0, 0, 1, 1], [], []>} : vector<16x16xbf16>, vector<16x256xbf16>, vector<16x256xf32> -> vector<16x256xf32>
    %68 = arith.addf %63, %67 : vector<16x256xf32>
    %c0_46 = arith.constant 0 : index
    %c145 = arith.constant 145 : index
    %69 = vector.load %arg14[%c0_46, %c145] : memref<16x512xbf16, #tpu.memory_space<vmem>>, vector<16x256xbf16>
    %cst_47 = arith.constant 0.000000e+00 : bf16
    %70 = vector.broadcast %cst_47 : bf16 to vector<16x256xbf16>
    %71 = vector.shape_cast %9 : vector<1x256xi1> to vector<1x256xi1>
    %72 = vector.broadcast %71 : vector<1x256xi1> to vector<16x256xi1>
    %73 = arith.select %72, %69, %70 : vector<16x256xi1>, vector<16x256xbf16>
    %c8 = arith.constant 8 : index
    %c0_48 = arith.constant 0 : index
    %c0_49 = arith.constant 0 : index
    %74 = vector.load %arg3[%c8, %c0_48, %c0_49] : memref<9x16x16xbf16, #tpu.memory_space<vmem>>, vector<1x16x16xbf16>
    %75 = vector.shape_cast %74 : vector<1x16x16xbf16> to vector<16x16xbf16>
    %cst_50 = arith.constant dense<0.000000e+00> : vector<16x256xf32>
    %76 = tpu.matmul %75, %73, %cst_50 {dimension_numbers = #tpu.dot_dimension_numbers<[1], [0], [0], [1], [0, 0, 1, 1], [], []>} : vector<16x16xbf16>, vector<16x256xbf16>, vector<16x256xf32> -> vector<16x256xf32>
    %77 = arith.addf %68, %76 : vector<16x256xf32>
    %c0_51 = arith.constant 0 : index
    %c0_52 = arith.constant 0 : index
    %78 = vector.load %arg7[%c0_51, %c0_52] : memref<16x1xf32, #tpu.memory_space<vmem>>, vector<16x1xf32>
    %79 = vector.broadcast %78 : vector<16x1xf32> to vector<16x256xf32>
    %80 = arith.addf %77, %79 : vector<16x256xf32>
    %cst_53 = arith.constant 0.000000e+00 : f32
    %81 = vector.broadcast %cst_53 : f32 to vector<16x256xf32>
    %82 = arith.maximumf %80, %81 : vector<16x256xf32>
    %83 = arith.truncf %82 : vector<16x256xf32> to vector<16x256xbf16>
    %c0_54 = arith.constant 0 : index
    %c128_55 = arith.constant 128 : index
    %84 = vector.load %arg14[%c0_54, %c128_55] : memref<16x512xbf16, #tpu.memory_space<vmem>>, vector<16x256xbf16>
    tpu.vector_store %arg14[%c0_54, %c128_55], %83 {strides = array<i32>} : memref<16x512xbf16, #tpu.memory_space<vmem>>, vector<16x256xbf16>,
    %c1_i32_56 = arith.constant 1 : i32
    %85 = vector.broadcast %c1_i32_56 : i32 to vector<1x256xi32>
    %86 = arith.cmpi sge, %0, %85 : vector<1x256xi32>
    %c15_i32_57 = arith.constant 15 : i32
    %87 = vector.broadcast %c15_i32_57 : i32 to vector<1x256xi32>
    %88 = arith.cmpi slt, %0, %87 : vector<1x256xi32>
    %c0_58 = arith.constant 0 : index
    %c111_59 = arith.constant 111 : index
    %89 = vector.load %arg14[%c0_58, %c111_59] : memref<16x512xbf16, #tpu.memory_space<vmem>>, vector<16x256xbf16>
    %cst_60 = arith.constant 0.000000e+00 : bf16
    %90 = vector.broadcast %cst_60 : bf16 to vector<16x256xbf16>
    %91 = vector.shape_cast %86 : vector<1x256xi1> to vector<1x256xi1>
    %92 = vector.broadcast %91 : vector<1x256xi1> to vector<16x256xi1>
    %93 = arith.select %92, %89, %90 : vector<16x256xi1>, vector<16x256xbf16>
    %c0_61 = arith.constant 0 : index
    %c0_62 = arith.constant 0 : index
    %c0_63 = arith.constant 0 : index
    %94 = vector.load %arg4[%c0_61, %c0_62, %c0_63] : memref<9x16x16xbf16, #tpu.memory_space<vmem>>, vector<1x16x16xbf16>
    %95 = vector.shape_cast %94 : vector<1x16x16xbf16> to vector<16x16xbf16>
    %cst_64 = arith.constant dense<0.000000e+00> : vector<16x256xf32>
    %96 = tpu.matmul %95, %93, %cst_64 {dimension_numbers = #tpu.dot_dimension_numbers<[1], [0], [0], [1], [0, 0, 1, 1], [], []>} : vector<16x16xbf16>, vector<16x256xbf16>, vector<16x256xf32> -> vector<16x256xf32>
    %c0_65 = arith.constant 0 : index
    %c112_66 = arith.constant 112 : index
    %97 = vector.load %arg14[%c0_65, %c112_66] : memref<16x512xbf16, #tpu.memory_space<vmem>>, vector<16x256xbf16>
    %c1_67 = arith.constant 1 : index
    %c0_68 = arith.constant 0 : index
    %c0_69 = arith.constant 0 : index
    %98 = vector.load %arg4[%c1_67, %c0_68, %c0_69] : memref<9x16x16xbf16, #tpu.memory_space<vmem>>, vector<1x16x16xbf16>
    %99 = vector.shape_cast %98 : vector<1x16x16xbf16> to vector<16x16xbf16>
    %cst_70 = arith.constant dense<0.000000e+00> : vector<16x256xf32>
    %100 = tpu.matmul %99, %97, %cst_70 {dimension_numbers = #tpu.dot_dimension_numbers<[1], [0], [0], [1], [0, 0, 1, 1], [], []>} : vector<16x16xbf16>, vector<16x256xbf16>, vector<16x256xf32> -> vector<16x256xf32>
    %101 = arith.addf %96, %100 : vector<16x256xf32>
    %c0_71 = arith.constant 0 : index
    %c113_72 = arith.constant 113 : index
    %102 = vector.load %arg14[%c0_71, %c113_72] : memref<16x512xbf16, #tpu.memory_space<vmem>>, vector<16x256xbf16>
    %cst_73 = arith.constant 0.000000e+00 : bf16
    %103 = vector.broadcast %cst_73 : bf16 to vector<16x256xbf16>
    %104 = vector.shape_cast %88 : vector<1x256xi1> to vector<1x256xi1>
    %105 = vector.broadcast %104 : vector<1x256xi1> to vector<16x256xi1>
    %106 = arith.select %105, %102, %103 : vector<16x256xi1>, vector<16x256xbf16>
    %c2_74 = arith.constant 2 : index
    %c0_75 = arith.constant 0 : index
    %c0_76 = arith.constant 0 : index
    %107 = vector.load %arg4[%c2_74, %c0_75, %c0_76] : memref<9x16x16xbf16, #tpu.memory_space<vmem>>, vector<1x16x16xbf16>
    %108 = vector.shape_cast %107 : vector<1x16x16xbf16> to vector<16x16xbf16>
    %cst_77 = arith.constant dense<0.000000e+00> : vector<16x256xf32>
    %109 = tpu.matmul %108, %106, %cst_77 {dimension_numbers = #tpu.dot_dimension_numbers<[1], [0], [0], [1], [0, 0, 1, 1], [], []>} : vector<16x16xbf16>, vector<16x256xbf16>, vector<16x256xf32> -> vector<16x256xf32>
    %110 = arith.addf %101, %109 : vector<16x256xf32>
    %c0_78 = arith.constant 0 : index
    %c127_79 = arith.constant 127 : index
    %111 = vector.load %arg14[%c0_78, %c127_79] : memref<16x512xbf16, #tpu.memory_space<vmem>>, vector<16x256xbf16>
    %cst_80 = arith.constant 0.000000e+00 : bf16
    %112 = vector.broadcast %cst_80 : bf16 to vector<16x256xbf16>
    %113 = vector.shape_cast %86 : vector<1x256xi1> to vector<1x256xi1>
    %114 = vector.broadcast %113 : vector<1x256xi1> to vector<16x256xi1>
    %115 = arith.select %114, %111, %112 : vector<16x256xi1>, vector<16x256xbf16>
    %c3_81 = arith.constant 3 : index
    %c0_82 = arith.constant 0 : index
    %c0_83 = arith.constant 0 : index
    %116 = vector.load %arg4[%c3_81, %c0_82, %c0_83] : memref<9x16x16xbf16, #tpu.memory_space<vmem>>, vector<1x16x16xbf16>
    %117 = vector.shape_cast %116 : vector<1x16x16xbf16> to vector<16x16xbf16>
    %cst_84 = arith.constant dense<0.000000e+00> : vector<16x256xf32>
    %118 = tpu.matmul %117, %115, %cst_84 {dimension_numbers = #tpu.dot_dimension_numbers<[1], [0], [0], [1], [0, 0, 1, 1], [], []>} : vector<16x16xbf16>, vector<16x256xbf16>, vector<16x256xf32> -> vector<16x256xf32>
    %119 = arith.addf %110, %118 : vector<16x256xf32>
    %c0_85 = arith.constant 0 : index
    %c128_86 = arith.constant 128 : index
    %120 = vector.load %arg14[%c0_85, %c128_86] : memref<16x512xbf16, #tpu.memory_space<vmem>>, vector<16x256xbf16>
    %c4_87 = arith.constant 4 : index
    %c0_88 = arith.constant 0 : index
    %c0_89 = arith.constant 0 : index
    %121 = vector.load %arg4[%c4_87, %c0_88, %c0_89] : memref<9x16x16xbf16, #tpu.memory_space<vmem>>, vector<1x16x16xbf16>
    %122 = vector.shape_cast %121 : vector<1x16x16xbf16> to vector<16x16xbf16>
    %cst_90 = arith.constant dense<0.000000e+00> : vector<16x256xf32>
    %123 = tpu.matmul %122, %120, %cst_90 {dimension_numbers = #tpu.dot_dimension_numbers<[1], [0], [0], [1], [0, 0, 1, 1], [], []>} : vector<16x16xbf16>, vector<16x256xbf16>, vector<16x256xf32> -> vector<16x256xf32>
    %124 = arith.addf %119, %123 : vector<16x256xf32>
    %c0_91 = arith.constant 0 : index
    %c129_92 = arith.constant 129 : index
    %125 = vector.load %arg14[%c0_91, %c129_92] : memref<16x512xbf16, #tpu.memory_space<vmem>>, vector<16x256xbf16>
    %cst_93 = arith.constant 0.000000e+00 : bf16
    %126 = vector.broadcast %cst_93 : bf16 to vector<16x256xbf16>
    %127 = vector.shape_cast %88 : vector<1x256xi1> to vector<1x256xi1>
    %128 = vector.broadcast %127 : vector<1x256xi1> to vector<16x256xi1>
    %129 = arith.select %128, %125, %126 : vector<16x256xi1>, vector<16x256xbf16>
    %c5_94 = arith.constant 5 : index
    %c0_95 = arith.constant 0 : index
    %c0_96 = arith.constant 0 : index
    %130 = vector.load %arg4[%c5_94, %c0_95, %c0_96] : memref<9x16x16xbf16, #tpu.memory_space<vmem>>, vector<1x16x16xbf16>
    %131 = vector.shape_cast %130 : vector<1x16x16xbf16> to vector<16x16xbf16>
    %cst_97 = arith.constant dense<0.000000e+00> : vector<16x256xf32>
    %132 = tpu.matmul %131, %129, %cst_97 {dimension_numbers = #tpu.dot_dimension_numbers<[1], [0], [0], [1], [0, 0, 1, 1], [], []>} : vector<16x16xbf16>, vector<16x256xbf16>, vector<16x256xf32> -> vector<16x256xf32>
    %133 = arith.addf %124, %132 : vector<16x256xf32>
    %c0_98 = arith.constant 0 : index
    %c143_99 = arith.constant 143 : index
    %134 = vector.load %arg14[%c0_98, %c143_99] : memref<16x512xbf16, #tpu.memory_space<vmem>>, vector<16x256xbf16>
    %cst_100 = arith.constant 0.000000e+00 : bf16
    %135 = vector.broadcast %cst_100 : bf16 to vector<16x256xbf16>
    %136 = vector.shape_cast %86 : vector<1x256xi1> to vector<1x256xi1>
    %137 = vector.broadcast %136 : vector<1x256xi1> to vector<16x256xi1>
    %138 = arith.select %137, %134, %135 : vector<16x256xi1>, vector<16x256xbf16>
    %c6_101 = arith.constant 6 : index
    %c0_102 = arith.constant 0 : index
    %c0_103 = arith.constant 0 : index
    %139 = vector.load %arg4[%c6_101, %c0_102, %c0_103] : memref<9x16x16xbf16, #tpu.memory_space<vmem>>, vector<1x16x16xbf16>
    %140 = vector.shape_cast %139 : vector<1x16x16xbf16> to vector<16x16xbf16>
    %cst_104 = arith.constant dense<0.000000e+00> : vector<16x256xf32>
    %141 = tpu.matmul %140, %138, %cst_104 {dimension_numbers = #tpu.dot_dimension_numbers<[1], [0], [0], [1], [0, 0, 1, 1], [], []>} : vector<16x16xbf16>, vector<16x256xbf16>, vector<16x256xf32> -> vector<16x256xf32>
    %142 = arith.addf %133, %141 : vector<16x256xf32>
    %c0_105 = arith.constant 0 : index
    %c144_106 = arith.constant 144 : index
    %143 = vector.load %arg14[%c0_105, %c144_106] : memref<16x512xbf16, #tpu.memory_space<vmem>>, vector<16x256xbf16>
    %c7_107 = arith.constant 7 : index
    %c0_108 = arith.constant 0 : index
    %c0_109 = arith.constant 0 : index
    %144 = vector.load %arg4[%c7_107, %c0_108, %c0_109] : memref<9x16x16xbf16, #tpu.memory_space<vmem>>, vector<1x16x16xbf16>
    %145 = vector.shape_cast %144 : vector<1x16x16xbf16> to vector<16x16xbf16>
    %cst_110 = arith.constant dense<0.000000e+00> : vector<16x256xf32>
    %146 = tpu.matmul %145, %143, %cst_110 {dimension_numbers = #tpu.dot_dimension_numbers<[1], [0], [0], [1], [0, 0, 1, 1], [], []>} : vector<16x16xbf16>, vector<16x256xbf16>, vector<16x256xf32> -> vector<16x256xf32>
    %147 = arith.addf %142, %146 : vector<16x256xf32>
    %c0_111 = arith.constant 0 : index
    %c145_112 = arith.constant 145 : index
    %148 = vector.load %arg14[%c0_111, %c145_112] : memref<16x512xbf16, #tpu.memory_space<vmem>>, vector<16x256xbf16>
    %cst_113 = arith.constant 0.000000e+00 : bf16
    %149 = vector.broadcast %cst_113 : bf16 to vector<16x256xbf16>
    %150 = vector.shape_cast %88 : vector<1x256xi1> to vector<1x256xi1>
    %151 = vector.broadcast %150 : vector<1x256xi1> to vector<16x256xi1>
    %152 = arith.select %151, %148, %149 : vector<16x256xi1>, vector<16x256xbf16>
    %c8_114 = arith.constant 8 : index
    %c0_115 = arith.constant 0 : index
    %c0_116 = arith.constant 0 : index
    %153 = vector.load %arg4[%c8_114, %c0_115, %c0_116] : memref<9x16x16xbf16, #tpu.memory_space<vmem>>, vector<1x16x16xbf16>
    %154 = vector.shape_cast %153 : vector<1x16x16xbf16> to vector<16x16xbf16>
    %cst_117 = arith.constant dense<0.000000e+00> : vector<16x256xf32>
    %155 = tpu.matmul %154, %152, %cst_117 {dimension_numbers = #tpu.dot_dimension_numbers<[1], [0], [0], [1], [0, 0, 1, 1], [], []>} : vector<16x16xbf16>, vector<16x256xbf16>, vector<16x256xf32> -> vector<16x256xf32>
    %156 = arith.addf %147, %155 : vector<16x256xf32>
    %c0_118 = arith.constant 0 : index
    %c0_119 = arith.constant 0 : index
    %157 = vector.load %arg8[%c0_118, %c0_119] : memref<16x1xf32, #tpu.memory_space<vmem>>, vector<16x1xf32>
    %158 = vector.broadcast %157 : vector<16x1xf32> to vector<16x256xf32>
    %159 = arith.addf %156, %158 : vector<16x256xf32>
    %cst_120 = arith.constant 0.000000e+00 : f32
    %160 = vector.broadcast %cst_120 : f32 to vector<16x256xf32>
    %161 = arith.maximumf %159, %160 : vector<16x256xf32>
    %162 = arith.truncf %161 : vector<16x256xf32> to vector<16x256xbf16>
    %c0_121 = arith.constant 0 : index
    %c128_122 = arith.constant 128 : index
    %163 = vector.load %arg14[%c0_121, %c128_122] : memref<16x512xbf16, #tpu.memory_space<vmem>>, vector<16x256xbf16>
    tpu.vector_store %arg14[%c0_121, %c128_122], %2 {strides = array<i32>} : memref<16x512xbf16, #tpu.memory_space<vmem>>, vector<16x256xbf16>,
    %c3_i32 = arith.constant 3 : i32
    %164 = vector.broadcast %c3_i32 : i32 to vector<1x256xi32>
    %165 = arith.cmpi sge, %0, %164 : vector<1x256xi32>
    %c13_i32 = arith.constant 13 : i32
    %166 = vector.broadcast %c13_i32 : i32 to vector<1x256xi32>
    %167 = arith.cmpi slt, %0, %166 : vector<1x256xi32>
    %c0_123 = arith.constant 0 : index
    %c77 = arith.constant 77 : index
    %168 = vector.load %arg14[%c0_123, %c77] : memref<16x512xbf16, #tpu.memory_space<vmem>>, vector<16x256xbf16>
    %cst_124 = arith.constant 0.000000e+00 : bf16
    %169 = vector.broadcast %cst_124 : bf16 to vector<16x256xbf16>
    %170 = vector.shape_cast %165 : vector<1x256xi1> to vector<1x256xi1>
    %171 = vector.broadcast %170 : vector<1x256xi1> to vector<16x256xi1>
    %172 = arith.select %171, %168, %169 : vector<16x256xi1>, vector<16x256xbf16>
    %c0_125 = arith.constant 0 : index
    %c0_126 = arith.constant 0 : index
    %c0_127 = arith.constant 0 : index
    %173 = vector.load %arg5[%c0_125, %c0_126, %c0_127] : memref<9x16x16xbf16, #tpu.memory_space<vmem>>, vector<1x16x16xbf16>
    %174 = vector.shape_cast %173 : vector<1x16x16xbf16> to vector<16x16xbf16>
    %cst_128 = arith.constant dense<0.000000e+00> : vector<16x256xf32>
    %175 = tpu.matmul %174, %172, %cst_128 {dimension_numbers = #tpu.dot_dimension_numbers<[1], [0], [0], [1], [0, 0, 1, 1], [], []>} : vector<16x16xbf16>, vector<16x256xbf16>, vector<16x256xf32> -> vector<16x256xf32>
    %c0_129 = arith.constant 0 : index
    %c80 = arith.constant 80 : index
    %176 = vector.load %arg14[%c0_129, %c80] : memref<16x512xbf16, #tpu.memory_space<vmem>>, vector<16x256xbf16>
    %c1_130 = arith.constant 1 : index
    %c0_131 = arith.constant 0 : index
    %c0_132 = arith.constant 0 : index
    %177 = vector.load %arg5[%c1_130, %c0_131, %c0_132] : memref<9x16x16xbf16, #tpu.memory_space<vmem>>, vector<1x16x16xbf16>
    %178 = vector.shape_cast %177 : vector<1x16x16xbf16> to vector<16x16xbf16>
    %cst_133 = arith.constant dense<0.000000e+00> : vector<16x256xf32>
    %179 = tpu.matmul %178, %176, %cst_133 {dimension_numbers = #tpu.dot_dimension_numbers<[1], [0], [0], [1], [0, 0, 1, 1], [], []>} : vector<16x16xbf16>, vector<16x256xbf16>, vector<16x256xf32> -> vector<16x256xf32>
    %180 = arith.addf %175, %179 : vector<16x256xf32>
    %c0_134 = arith.constant 0 : index
    %c83 = arith.constant 83 : index
    %181 = vector.load %arg14[%c0_134, %c83] : memref<16x512xbf16, #tpu.memory_space<vmem>>, vector<16x256xbf16>
    %cst_135 = arith.constant 0.000000e+00 : bf16
    %182 = vector.broadcast %cst_135 : bf16 to vector<16x256xbf16>
    %183 = vector.shape_cast %167 : vector<1x256xi1> to vector<1x256xi1>
    %184 = vector.broadcast %183 : vector<1x256xi1> to vector<16x256xi1>
    %185 = arith.select %184, %181, %182 : vector<16x256xi1>, vector<16x256xbf16>
    %c2_136 = arith.constant 2 : index
    %c0_137 = arith.constant 0 : index
    %c0_138 = arith.constant 0 : index
    %186 = vector.load %arg5[%c2_136, %c0_137, %c0_138] : memref<9x16x16xbf16, #tpu.memory_space<vmem>>, vector<1x16x16xbf16>
    %187 = vector.shape_cast %186 : vector<1x16x16xbf16> to vector<16x16xbf16>
    %cst_139 = arith.constant dense<0.000000e+00> : vector<16x256xf32>
    %188 = tpu.matmul %187, %185, %cst_139 {dimension_numbers = #tpu.dot_dimension_numbers<[1], [0], [0], [1], [0, 0, 1, 1], [], []>} : vector<16x16xbf16>, vector<16x256xbf16>, vector<16x256xf32> -> vector<16x256xf32>
    %189 = arith.addf %180, %188 : vector<16x256xf32>
    %c0_140 = arith.constant 0 : index
    %c125 = arith.constant 125 : index
    %190 = vector.load %arg14[%c0_140, %c125] : memref<16x512xbf16, #tpu.memory_space<vmem>>, vector<16x256xbf16>
    %cst_141 = arith.constant 0.000000e+00 : bf16
    %191 = vector.broadcast %cst_141 : bf16 to vector<16x256xbf16>
    %192 = vector.shape_cast %165 : vector<1x256xi1> to vector<1x256xi1>
    %193 = vector.broadcast %192 : vector<1x256xi1> to vector<16x256xi1>
    %194 = arith.select %193, %190, %191 : vector<16x256xi1>, vector<16x256xbf16>
    %c3_142 = arith.constant 3 : index
    %c0_143 = arith.constant 0 : index
    %c0_144 = arith.constant 0 : index
    %195 = vector.load %arg5[%c3_142, %c0_143, %c0_144] : memref<9x16x16xbf16, #tpu.memory_space<vmem>>, vector<1x16x16xbf16>
    %196 = vector.shape_cast %195 : vector<1x16x16xbf16> to vector<16x16xbf16>
    %cst_145 = arith.constant dense<0.000000e+00> : vector<16x256xf32>
    %197 = tpu.matmul %196, %194, %cst_145 {dimension_numbers = #tpu.dot_dimension_numbers<[1], [0], [0], [1], [0, 0, 1, 1], [], []>} : vector<16x16xbf16>, vector<16x256xbf16>, vector<16x256xf32> -> vector<16x256xf32>
    %198 = arith.addf %189, %197 : vector<16x256xf32>
    %c0_146 = arith.constant 0 : index
    %c128_147 = arith.constant 128 : index
    %199 = vector.load %arg14[%c0_146, %c128_147] : memref<16x512xbf16, #tpu.memory_space<vmem>>, vector<16x256xbf16>
    %c4_148 = arith.constant 4 : index
    %c0_149 = arith.constant 0 : index
    %c0_150 = arith.constant 0 : index
    %200 = vector.load %arg5[%c4_148, %c0_149, %c0_150] : memref<9x16x16xbf16, #tpu.memory_space<vmem>>, vector<1x16x16xbf16>
    %201 = vector.shape_cast %200 : vector<1x16x16xbf16> to vector<16x16xbf16>
    %cst_151 = arith.constant dense<0.000000e+00> : vector<16x256xf32>
    %202 = tpu.matmul %201, %199, %cst_151 {dimension_numbers = #tpu.dot_dimension_numbers<[1], [0], [0], [1], [0, 0, 1, 1], [], []>} : vector<16x16xbf16>, vector<16x256xbf16>, vector<16x256xf32> -> vector<16x256xf32>
    %203 = arith.addf %198, %202 : vector<16x256xf32>
    %c0_152 = arith.constant 0 : index
    %c131 = arith.constant 131 : index
    %204 = vector.load %arg14[%c0_152, %c131] : memref<16x512xbf16, #tpu.memory_space<vmem>>, vector<16x256xbf16>
    %cst_153 = arith.constant 0.000000e+00 : bf16
    %205 = vector.broadcast %cst_153 : bf16 to vector<16x256xbf16>
    %206 = vector.shape_cast %167 : vector<1x256xi1> to vector<1x256xi1>
    %207 = vector.broadcast %206 : vector<1x256xi1> to vector<16x256xi1>
    %208 = arith.select %207, %204, %205 : vector<16x256xi1>, vector<16x256xbf16>
    %c5_154 = arith.constant 5 : index
    %c0_155 = arith.constant 0 : index
    %c0_156 = arith.constant 0 : index
    %209 = vector.load %arg5[%c5_154, %c0_155, %c0_156] : memref<9x16x16xbf16, #tpu.memory_space<vmem>>, vector<1x16x16xbf16>
    %210 = vector.shape_cast %209 : vector<1x16x16xbf16> to vector<16x16xbf16>
    %cst_157 = arith.constant dense<0.000000e+00> : vector<16x256xf32>
    %211 = tpu.matmul %210, %208, %cst_157 {dimension_numbers = #tpu.dot_dimension_numbers<[1], [0], [0], [1], [0, 0, 1, 1], [], []>} : vector<16x16xbf16>, vector<16x256xbf16>, vector<16x256xf32> -> vector<16x256xf32>
    %212 = arith.addf %203, %211 : vector<16x256xf32>
    %c0_158 = arith.constant 0 : index
    %c173 = arith.constant 173 : index
    %213 = vector.load %arg14[%c0_158, %c173] : memref<16x512xbf16, #tpu.memory_space<vmem>>, vector<16x256xbf16>
    %cst_159 = arith.constant 0.000000e+00 : bf16
    %214 = vector.broadcast %cst_159 : bf16 to vector<16x256xbf16>
    %215 = vector.shape_cast %165 : vector<1x256xi1> to vector<1x256xi1>
    %216 = vector.broadcast %215 : vector<1x256xi1> to vector<16x256xi1>
    %217 = arith.select %216, %213, %214 : vector<16x256xi1>, vector<16x256xbf16>
    %c6_160 = arith.constant 6 : index
    %c0_161 = arith.constant 0 : index
    %c0_162 = arith.constant 0 : index
    %218 = vector.load %arg5[%c6_160, %c0_161, %c0_162] : memref<9x16x16xbf16, #tpu.memory_space<vmem>>, vector<1x16x16xbf16>
    %219 = vector.shape_cast %218 : vector<1x16x16xbf16> to vector<16x16xbf16>
    %cst_163 = arith.constant dense<0.000000e+00> : vector<16x256xf32>
    %220 = tpu.matmul %219, %217, %cst_163 {dimension_numbers = #tpu.dot_dimension_numbers<[1], [0], [0], [1], [0, 0, 1, 1], [], []>} : vector<16x16xbf16>, vector<16x256xbf16>, vector<16x256xf32> -> vector<16x256xf32>
    %221 = arith.addf %212, %220 : vector<16x256xf32>
    %c0_164 = arith.constant 0 : index
    %c176 = arith.constant 176 : index
    %222 = vector.load %arg14[%c0_164, %c176] : memref<16x512xbf16, #tpu.memory_space<vmem>>, vector<16x256xbf16>
    %c7_165 = arith.constant 7 : index
    %c0_166 = arith.constant 0 : index
    %c0_167 = arith.constant 0 : index
    %223 = vector.load %arg5[%c7_165, %c0_166, %c0_167] : memref<9x16x16xbf16, #tpu.memory_space<vmem>>, vector<1x16x16xbf16>
    %224 = vector.shape_cast %223 : vector<1x16x16xbf16> to vector<16x16xbf16>
    %cst_168 = arith.constant dense<0.000000e+00> : vector<16x256xf32>
    %225 = tpu.matmul %224, %222, %cst_168 {dimension_numbers = #tpu.dot_dimension_numbers<[1], [0], [0], [1], [0, 0, 1, 1], [], []>} : vector<16x16xbf16>, vector<16x256xbf16>, vector<16x256xf32> -> vector<16x256xf32>
    %226 = arith.addf %221, %225 : vector<16x256xf32>
    %c0_169 = arith.constant 0 : index
    %c179 = arith.constant 179 : index
    %227 = vector.load %arg14[%c0_169, %c179] : memref<16x512xbf16, #tpu.memory_space<vmem>>, vector<16x256xbf16>
    %cst_170 = arith.constant 0.000000e+00 : bf16
    %228 = vector.broadcast %cst_170 : bf16 to vector<16x256xbf16>
    %229 = vector.shape_cast %167 : vector<1x256xi1> to vector<1x256xi1>
    %230 = vector.broadcast %229 : vector<1x256xi1> to vector<16x256xi1>
    %231 = arith.select %230, %227, %228 : vector<16x256xi1>, vector<16x256xbf16>
    %c8_171 = arith.constant 8 : index
    %c0_172 = arith.constant 0 : index
    %c0_173 = arith.constant 0 : index
    %232 = vector.load %arg5[%c8_171, %c0_172, %c0_173] : memref<9x16x16xbf16, #tpu.memory_space<vmem>>, vector<1x16x16xbf16>
    %233 = vector.shape_cast %232 : vector<1x16x16xbf16> to vector<16x16xbf16>
    %cst_174 = arith.constant dense<0.000000e+00> : vector<16x256xf32>
    %234 = tpu.matmul %233, %231, %cst_174 {dimension_numbers = #tpu.dot_dimension_numbers<[1], [0], [0], [1], [0, 0, 1, 1], [], []>} : vector<16x16xbf16>, vector<16x256xbf16>, vector<16x256xf32> -> vector<16x256xf32>
    %235 = arith.addf %226, %234 : vector<16x256xf32>
    %c0_175 = arith.constant 0 : index
    %c0_176 = arith.constant 0 : index
    %236 = vector.load %arg9[%c0_175, %c0_176] : memref<16x1xf32, #tpu.memory_space<vmem>>, vector<16x1xf32>
    %237 = vector.broadcast %236 : vector<16x1xf32> to vector<16x256xf32>
    %238 = arith.addf %235, %237 : vector<16x256xf32>
    %cst_177 = arith.constant 0.000000e+00 : f32
    %239 = vector.broadcast %cst_177 : f32 to vector<16x256xf32>
    %240 = arith.maximumf %238, %239 : vector<16x256xf32>
    %241 = arith.truncf %240 : vector<16x256xf32> to vector<16x256xbf16>
    %c0_178 = arith.constant 0 : index
    %c128_179 = arith.constant 128 : index
    %242 = vector.load %arg14[%c0_178, %c128_179] : memref<16x512xbf16, #tpu.memory_space<vmem>>, vector<16x256xbf16>
    tpu.vector_store %arg14[%c0_178, %c128_179], %241 {strides = array<i32>} : memref<16x512xbf16, #tpu.memory_space<vmem>>, vector<16x256xbf16>,
    %c3_i32_180 = arith.constant 3 : i32
    %243 = vector.broadcast %c3_i32_180 : i32 to vector<1x256xi32>
    %244 = arith.cmpi sge, %0, %243 : vector<1x256xi32>
    %c13_i32_181 = arith.constant 13 : i32
    %245 = vector.broadcast %c13_i32_181 : i32 to vector<1x256xi32>
    %246 = arith.cmpi slt, %0, %245 : vector<1x256xi32>
    %c0_182 = arith.constant 0 : index
    %c77_183 = arith.constant 77 : index
    %247 = vector.load %arg14[%c0_182, %c77_183] : memref<16x512xbf16, #tpu.memory_space<vmem>>, vector<16x256xbf16>
    %cst_184 = arith.constant 0.000000e+00 : bf16
    %248 = vector.broadcast %cst_184 : bf16 to vector<16x256xbf16>
    %249 = vector.shape_cast %244 : vector<1x256xi1> to vector<1x256xi1>
    %250 = vector.broadcast %249 : vector<1x256xi1> to vector<16x256xi1>
    %251 = arith.select %250, %247, %248 : vector<16x256xi1>, vector<16x256xbf16>
    %c0_185 = arith.constant 0 : index
    %c0_186 = arith.constant 0 : index
    %c0_187 = arith.constant 0 : index
    %252 = vector.load %arg6[%c0_185, %c0_186, %c0_187] : memref<9x16x16xbf16, #tpu.memory_space<vmem>>, vector<1x16x16xbf16>
    %253 = vector.shape_cast %252 : vector<1x16x16xbf16> to vector<16x16xbf16>
    %cst_188 = arith.constant dense<0.000000e+00> : vector<16x256xf32>
    %254 = tpu.matmul %253, %251, %cst_188 {dimension_numbers = #tpu.dot_dimension_numbers<[1], [0], [0], [1], [0, 0, 1, 1], [], []>} : vector<16x16xbf16>, vector<16x256xbf16>, vector<16x256xf32> -> vector<16x256xf32>
    %c0_189 = arith.constant 0 : index
    %c80_190 = arith.constant 80 : index
    %255 = vector.load %arg14[%c0_189, %c80_190] : memref<16x512xbf16, #tpu.memory_space<vmem>>, vector<16x256xbf16>
    %c1_191 = arith.constant 1 : index
    %c0_192 = arith.constant 0 : index
    %c0_193 = arith.constant 0 : index
    %256 = vector.load %arg6[%c1_191, %c0_192, %c0_193] : memref<9x16x16xbf16, #tpu.memory_space<vmem>>, vector<1x16x16xbf16>
    %257 = vector.shape_cast %256 : vector<1x16x16xbf16> to vector<16x16xbf16>
    %cst_194 = arith.constant dense<0.000000e+00> : vector<16x256xf32>
    %258 = tpu.matmul %257, %255, %cst_194 {dimension_numbers = #tpu.dot_dimension_numbers<[1], [0], [0], [1], [0, 0, 1, 1], [], []>} : vector<16x16xbf16>, vector<16x256xbf16>, vector<16x256xf32> -> vector<16x256xf32>
    %259 = arith.addf %254, %258 : vector<16x256xf32>
    %c0_195 = arith.constant 0 : index
    %c83_196 = arith.constant 83 : index
    %260 = vector.load %arg14[%c0_195, %c83_196] : memref<16x512xbf16, #tpu.memory_space<vmem>>, vector<16x256xbf16>
    %cst_197 = arith.constant 0.000000e+00 : bf16
    %261 = vector.broadcast %cst_197 : bf16 to vector<16x256xbf16>
    %262 = vector.shape_cast %246 : vector<1x256xi1> to vector<1x256xi1>
    %263 = vector.broadcast %262 : vector<1x256xi1> to vector<16x256xi1>
    %264 = arith.select %263, %260, %261 : vector<16x256xi1>, vector<16x256xbf16>
    %c2_198 = arith.constant 2 : index
    %c0_199 = arith.constant 0 : index
    %c0_200 = arith.constant 0 : index
    %265 = vector.load %arg6[%c2_198, %c0_199, %c0_200] : memref<9x16x16xbf16, #tpu.memory_space<vmem>>, vector<1x16x16xbf16>
    %266 = vector.shape_cast %265 : vector<1x16x16xbf16> to vector<16x16xbf16>
    %cst_201 = arith.constant dense<0.000000e+00> : vector<16x256xf32>
    %267 = tpu.matmul %266, %264, %cst_201 {dimension_numbers = #tpu.dot_dimension_numbers<[1], [0], [0], [1], [0, 0, 1, 1], [], []>} : vector<16x16xbf16>, vector<16x256xbf16>, vector<16x256xf32> -> vector<16x256xf32>
    %268 = arith.addf %259, %267 : vector<16x256xf32>
    %c0_202 = arith.constant 0 : index
    %c125_203 = arith.constant 125 : index
    %269 = vector.load %arg14[%c0_202, %c125_203] : memref<16x512xbf16, #tpu.memory_space<vmem>>, vector<16x256xbf16>
    %cst_204 = arith.constant 0.000000e+00 : bf16
    %270 = vector.broadcast %cst_204 : bf16 to vector<16x256xbf16>
    %271 = vector.shape_cast %244 : vector<1x256xi1> to vector<1x256xi1>
    %272 = vector.broadcast %271 : vector<1x256xi1> to vector<16x256xi1>
    %273 = arith.select %272, %269, %270 : vector<16x256xi1>, vector<16x256xbf16>
    %c3_205 = arith.constant 3 : index
    %c0_206 = arith.constant 0 : index
    %c0_207 = arith.constant 0 : index
    %274 = vector.load %arg6[%c3_205, %c0_206, %c0_207] : memref<9x16x16xbf16, #tpu.memory_space<vmem>>, vector<1x16x16xbf16>
    %275 = vector.shape_cast %274 : vector<1x16x16xbf16> to vector<16x16xbf16>
    %cst_208 = arith.constant dense<0.000000e+00> : vector<16x256xf32>
    %276 = tpu.matmul %275, %273, %cst_208 {dimension_numbers = #tpu.dot_dimension_numbers<[1], [0], [0], [1], [0, 0, 1, 1], [], []>} : vector<16x16xbf16>, vector<16x256xbf16>, vector<16x256xf32> -> vector<16x256xf32>
    %277 = arith.addf %268, %276 : vector<16x256xf32>
    %c0_209 = arith.constant 0 : index
    %c128_210 = arith.constant 128 : index
    %278 = vector.load %arg14[%c0_209, %c128_210] : memref<16x512xbf16, #tpu.memory_space<vmem>>, vector<16x256xbf16>
    %c4_211 = arith.constant 4 : index
    %c0_212 = arith.constant 0 : index
    %c0_213 = arith.constant 0 : index
    %279 = vector.load %arg6[%c4_211, %c0_212, %c0_213] : memref<9x16x16xbf16, #tpu.memory_space<vmem>>, vector<1x16x16xbf16>
    %280 = vector.shape_cast %279 : vector<1x16x16xbf16> to vector<16x16xbf16>
    %cst_214 = arith.constant dense<0.000000e+00> : vector<16x256xf32>
    %281 = tpu.matmul %280, %278, %cst_214 {dimension_numbers = #tpu.dot_dimension_numbers<[1], [0], [0], [1], [0, 0, 1, 1], [], []>} : vector<16x16xbf16>, vector<16x256xbf16>, vector<16x256xf32> -> vector<16x256xf32>
    %282 = arith.addf %277, %281 : vector<16x256xf32>
    %c0_215 = arith.constant 0 : index
    %c131_216 = arith.constant 131 : index
    %283 = vector.load %arg14[%c0_215, %c131_216] : memref<16x512xbf16, #tpu.memory_space<vmem>>, vector<16x256xbf16>
    %cst_217 = arith.constant 0.000000e+00 : bf16
    %284 = vector.broadcast %cst_217 : bf16 to vector<16x256xbf16>
    %285 = vector.shape_cast %246 : vector<1x256xi1> to vector<1x256xi1>
    %286 = vector.broadcast %285 : vector<1x256xi1> to vector<16x256xi1>
    %287 = arith.select %286, %283, %284 : vector<16x256xi1>, vector<16x256xbf16>
    %c5_218 = arith.constant 5 : index
    %c0_219 = arith.constant 0 : index
    %c0_220 = arith.constant 0 : index
    %288 = vector.load %arg6[%c5_218, %c0_219, %c0_220] : memref<9x16x16xbf16, #tpu.memory_space<vmem>>, vector<1x16x16xbf16>
    %289 = vector.shape_cast %288 : vector<1x16x16xbf16> to vector<16x16xbf16>
    %cst_221 = arith.constant dense<0.000000e+00> : vector<16x256xf32>
    %290 = tpu.matmul %289, %287, %cst_221 {dimension_numbers = #tpu.dot_dimension_numbers<[1], [0], [0], [1], [0, 0, 1, 1], [], []>} : vector<16x16xbf16>, vector<16x256xbf16>, vector<16x256xf32> -> vector<16x256xf32>
    %291 = arith.addf %282, %290 : vector<16x256xf32>
    %c0_222 = arith.constant 0 : index
    %c173_223 = arith.constant 173 : index
    %292 = vector.load %arg14[%c0_222, %c173_223] : memref<16x512xbf16, #tpu.memory_space<vmem>>, vector<16x256xbf16>
    %cst_224 = arith.constant 0.000000e+00 : bf16
    %293 = vector.broadcast %cst_224 : bf16 to vector<16x256xbf16>
    %294 = vector.shape_cast %244 : vector<1x256xi1> to vector<1x256xi1>
    %295 = vector.broadcast %294 : vector<1x256xi1> to vector<16x256xi1>
    %296 = arith.select %295, %292, %293 : vector<16x256xi1>, vector<16x256xbf16>
    %c6_225 = arith.constant 6 : index
    %c0_226 = arith.constant 0 : index
    %c0_227 = arith.constant 0 : index
    %297 = vector.load %arg6[%c6_225, %c0_226, %c0_227] : memref<9x16x16xbf16, #tpu.memory_space<vmem>>, vector<1x16x16xbf16>
    %298 = vector.shape_cast %297 : vector<1x16x16xbf16> to vector<16x16xbf16>
    %cst_228 = arith.constant dense<0.000000e+00> : vector<16x256xf32>
    %299 = tpu.matmul %298, %296, %cst_228 {dimension_numbers = #tpu.dot_dimension_numbers<[1], [0], [0], [1], [0, 0, 1, 1], [], []>} : vector<16x16xbf16>, vector<16x256xbf16>, vector<16x256xf32> -> vector<16x256xf32>
    %300 = arith.addf %291, %299 : vector<16x256xf32>
    %c0_229 = arith.constant 0 : index
    %c176_230 = arith.constant 176 : index
    %301 = vector.load %arg14[%c0_229, %c176_230] : memref<16x512xbf16, #tpu.memory_space<vmem>>, vector<16x256xbf16>
    %c7_231 = arith.constant 7 : index
    %c0_232 = arith.constant 0 : index
    %c0_233 = arith.constant 0 : index
    %302 = vector.load %arg6[%c7_231, %c0_232, %c0_233] : memref<9x16x16xbf16, #tpu.memory_space<vmem>>, vector<1x16x16xbf16>
    %303 = vector.shape_cast %302 : vector<1x16x16xbf16> to vector<16x16xbf16>
    %cst_234 = arith.constant dense<0.000000e+00> : vector<16x256xf32>
    %304 = tpu.matmul %303, %301, %cst_234 {dimension_numbers = #tpu.dot_dimension_numbers<[1], [0], [0], [1], [0, 0, 1, 1], [], []>} : vector<16x16xbf16>, vector<16x256xbf16>, vector<16x256xf32> -> vector<16x256xf32>
    %305 = arith.addf %300, %304 : vector<16x256xf32>
    %c0_235 = arith.constant 0 : index
    %c179_236 = arith.constant 179 : index
    %306 = vector.load %arg14[%c0_235, %c179_236] : memref<16x512xbf16, #tpu.memory_space<vmem>>, vector<16x256xbf16>
    %cst_237 = arith.constant 0.000000e+00 : bf16
    %307 = vector.broadcast %cst_237 : bf16 to vector<16x256xbf16>
    %308 = vector.shape_cast %246 : vector<1x256xi1> to vector<1x256xi1>
    %309 = vector.broadcast %308 : vector<1x256xi1> to vector<16x256xi1>
    %310 = arith.select %309, %306, %307 : vector<16x256xi1>, vector<16x256xbf16>
    %c8_238 = arith.constant 8 : index
    %c0_239 = arith.constant 0 : index
    %c0_240 = arith.constant 0 : index
    %311 = vector.load %arg6[%c8_238, %c0_239, %c0_240] : memref<9x16x16xbf16, #tpu.memory_space<vmem>>, vector<1x16x16xbf16>
    %312 = vector.shape_cast %311 : vector<1x16x16xbf16> to vector<16x16xbf16>
    %cst_241 = arith.constant dense<0.000000e+00> : vector<16x256xf32>
    %313 = tpu.matmul %312, %310, %cst_241 {dimension_numbers = #tpu.dot_dimension_numbers<[1], [0], [0], [1], [0, 0, 1, 1], [], []>} : vector<16x16xbf16>, vector<16x256xbf16>, vector<16x256xf32> -> vector<16x256xf32>
    %314 = arith.addf %305, %313 : vector<16x256xf32>
    %c0_242 = arith.constant 0 : index
    %c0_243 = arith.constant 0 : index
    %315 = vector.load %arg10[%c0_242, %c0_243] : memref<16x1xf32, #tpu.memory_space<vmem>>, vector<16x1xf32>
    %316 = vector.broadcast %315 : vector<16x1xf32> to vector<16x256xf32>
    %317 = arith.addf %314, %316 : vector<16x256xf32>
    %cst_244 = arith.constant 0.000000e+00 : f32
    %318 = vector.broadcast %cst_244 : f32 to vector<16x256xf32>
    %319 = arith.maximumf %317, %318 : vector<16x256xf32>
    %320 = arith.truncf %319 : vector<16x256xf32> to vector<16x256xbf16>
    %321 = tpu.concatenate %2, %83, %162, %241, %320 in 0 : vector<16x256xbf16>, vector<16x256xbf16>, vector<16x256xbf16>, vector<16x256xbf16>, vector<16x256xbf16> -> vector<80x256xbf16>
    %c0_245 = arith.constant 0 : index
    %c0_246 = arith.constant 0 : index
    %322 = vector.load %arg11[%c0_245, %c0_246] : memref<16x80xbf16, #tpu.memory_space<vmem>>, vector<16x80xbf16>
    %cst_247 = arith.constant dense<0.000000e+00> : vector<16x256xf32>
    %323 = tpu.matmul %322, %321, %cst_247 {dimension_numbers = #tpu.dot_dimension_numbers<[1], [0], [0], [1], [0, 0, 1, 1], [], []>} : vector<16x80xbf16>, vector<80x256xbf16>, vector<16x256xf32> -> vector<16x256xf32>
    %c0_248 = arith.constant 0 : index
    %c0_249 = arith.constant 0 : index
    %324 = vector.load %arg12[%c0_248, %c0_249] : memref<16x1xf32, #tpu.memory_space<vmem>>, vector<16x1xf32>
    %325 = vector.broadcast %324 : vector<16x1xf32> to vector<16x256xf32>
    %326 = arith.addf %323, %325 : vector<16x256xf32>
    %cst_250 = arith.constant 0.000000e+00 : f32
    %327 = vector.broadcast %cst_250 : f32 to vector<16x256xf32>
    %328 = arith.maximumf %326, %327 : vector<16x256xf32>
    %329 = arith.truncf %328 : vector<16x256xf32> to vector<16x256xbf16>
    %c0_251 = arith.constant 0 : index
    %c0_252 = arith.constant 0 : index
    %c0_253 = arith.constant 0 : index
    %330 = vector.load %arg13[%c0_251, %c0_252, %c0_253] : memref<1x16x256xbf16, #tpu.memory_space<vmem>>, vector<1x16x256xbf16>
    %331 = vector.shape_cast %330 : vector<1x16x256xbf16> to vector<16x256xbf16>
    %332 = vector.shape_cast %329 : vector<16x256xbf16> to vector<1x16x256xbf16>
    tpu.vector_store %arg13[%c0_251, %c0_252, %c0_253], %332 {strides = array<i32>} : memref<1x16x256xbf16, #tpu.memory_space<vmem>>, vector<1x16x256xbf16>,
    return
  }
  func.func @transform_0(%arg0: i32) -> (i32, i32) {
    %c0_i32 = arith.constant 0 : i32
    %c0_i32_0 = arith.constant 0 : i32
    %c0_i32_1 = arith.constant 0 : i32
    return %c0_i32, %c0_i32_0 : i32, i32
  }
  func.func @transform_1(%arg0: i32) -> (i32, i32, i32) {
    %c0_i32 = arith.constant 0 : i32
    %c0_i32_0 = arith.constant 0 : i32
    %c0_i32_1 = arith.constant 0 : i32
    return %arg0, %c0_i32, %c0_i32_0 : i32, i32, i32
  }
  func.func @transform_2(%arg0: i32) -> (i32, i32, i32) {
    %c0_i32 = arith.constant 0 : i32
    %c0_i32_0 = arith.constant 0 : i32
    %c0_i32_1 = arith.constant 0 : i32
    %c0_i32_2 = arith.constant 0 : i32
    return %c0_i32, %c0_i32_0, %c0_i32_1 : i32, i32, i32
  }
  func.func @transform_3(%arg0: i32) -> (i32, i32, i32) {
    %c0_i32 = arith.constant 0 : i32
    %c0_i32_0 = arith.constant 0 : i32
    %c0_i32_1 = arith.constant 0 : i32
    %c0_i32_2 = arith.constant 0 : i32
    return %c0_i32, %c0_i32_0, %c0_i32_1 : i32, i32, i32
  }
  func.func @transform_4(%arg0: i32) -> (i32, i32, i32) {
    %c0_i32 = arith.constant 0 : i32
    %c0_i32_0 = arith.constant 0 : i32
    %c0_i32_1 = arith.constant 0 : i32
    %c0_i32_2 = arith.constant 0 : i32
    return %c0_i32, %c0_i32_0, %c0_i32_1 : i32, i32, i32
  }
  func.func @transform_5(%arg0: i32) -> (i32, i32, i32) {
    %c0_i32 = arith.constant 0 : i32
    %c0_i32_0 = arith.constant 0 : i32
    %c0_i32_1 = arith.constant 0 : i32
    %c0_i32_2 = arith.constant 0 : i32
    return %c0_i32, %c0_i32_0, %c0_i32_1 : i32, i32, i32
  }
  func.func @transform_6(%arg0: i32) -> (i32, i32) {
    %c0_i32 = arith.constant 0 : i32
    %c0_i32_0 = arith.constant 0 : i32
    %c0_i32_1 = arith.constant 0 : i32
    return %c0_i32, %c0_i32_0 : i32, i32
  }
  func.func @transform_7(%arg0: i32) -> (i32, i32) {
    %c0_i32 = arith.constant 0 : i32
    %c0_i32_0 = arith.constant 0 : i32
    %c0_i32_1 = arith.constant 0 : i32
    return %c0_i32, %c0_i32_0 : i32, i32
  }
  func.func @transform_8(%arg0: i32) -> (i32, i32) {
    %c0_i32 = arith.constant 0 : i32
    %c0_i32_0 = arith.constant 0 : i32
    %c0_i32_1 = arith.constant 0 : i32
    return %c0_i32, %c0_i32_0 : i32, i32
  }
  func.func @transform_9(%arg0: i32) -> (i32, i32) {
    %c0_i32 = arith.constant 0 : i32
    %c0_i32_0 = arith.constant 0 : i32
    %c0_i32_1 = arith.constant 0 : i32
    return %c0_i32, %c0_i32_0 : i32, i32
  }
  func.func @transform_10(%arg0: i32) -> (i32, i32) {
    %c0_i32 = arith.constant 0 : i32
    %c0_i32_0 = arith.constant 0 : i32
    %c0_i32_1 = arith.constant 0 : i32
    return %c0_i32, %c0_i32_0 : i32, i32
  }
  func.func @transform_11(%arg0: i32) -> (i32, i32) {
    %c0_i32 = arith.constant 0 : i32
    %c0_i32_0 = arith.constant 0 : i32
    %c0_i32_1 = arith.constant 0 : i32
    return %c0_i32, %c0_i32_0 : i32, i32
  }
  func.func @transform_12(%arg0: i32) -> (i32, i32, i32) {
    %c0_i32 = arith.constant 0 : i32
    %c0_i32_0 = arith.constant 0 : i32
    %c0_i32_1 = arith.constant 0 : i32
    return %arg0, %c0_i32, %c0_i32_0 : i32, i32, i32
  }
}

module attributes {stable_mosaic.version = 11 : i64} {
  func.func @_sgcn_kernel(%arg0: i32, %arg1: memref<1x16x256xf32, #tpu.memory_space<vmem>>, %arg2: memref<24x16xbf16, #tpu.memory_space<vmem>>, %arg3: memref<24x1xf32, #tpu.memory_space<vmem>>, %arg4: memref<16x8xbf16, #tpu.memory_space<vmem>>, %arg5: memref<16x1xf32, #tpu.memory_space<vmem>>, %arg6: memref<1x16x256xbf16, #tpu.memory_space<vmem>>) attributes {dimension_semantics = [#tpu.dimension_semantics<parallel>], iteration_bounds = array<i64: 2>, scalar_prefetch = 0 : i64, scratch_operands = 0 : i64, tpu.core_type = #tpu.core_type<tc>, window_params = [{transform_indices = @transform_0, window_bounds = array<i64: 1, 16, 256>}, {pipeline_mode = #tpu.pipeline_mode<synchronous>, transform_indices = @transform_1, window_bounds = array<i64: 24, 16>}, {pipeline_mode = #tpu.pipeline_mode<synchronous>, transform_indices = @transform_2, window_bounds = array<i64: 24, 1>}, {pipeline_mode = #tpu.pipeline_mode<synchronous>, transform_indices = @transform_3, window_bounds = array<i64: 16, 8>}, {pipeline_mode = #tpu.pipeline_mode<synchronous>, transform_indices = @transform_4, window_bounds = array<i64: 16, 1>}, {transform_indices = @transform_5, window_bounds = array<i64: 1, 16, 256>}]} {
    %c0 = arith.constant 0 : index
    %c0_0 = arith.constant 0 : index
    %c0_1 = arith.constant 0 : index
    %0 = vector.load %arg1[%c0, %c0_0, %c0_1] : memref<1x16x256xf32, #tpu.memory_space<vmem>>, vector<1x16x256xf32>
    %1 = vector.shape_cast %0 : vector<1x16x256xf32> to vector<16x256xf32>
    %2 = arith.truncf %1 : vector<16x256xf32> to vector<16x256xbf16>
    %c0_2 = arith.constant 0 : index
    %c0_3 = arith.constant 0 : index
    %3 = vector.load %arg2[%c0_2, %c0_3] : memref<24x16xbf16, #tpu.memory_space<vmem>>, vector<24x16xbf16>
    %cst = arith.constant dense<0.000000e+00> : vector<24x256xf32>
    %4 = tpu.matmul %3, %2, %cst {dimension_numbers = #tpu.dot_dimension_numbers<[1], [0], [0], [1], [0, 0, 1, 1], [], []>} : vector<24x16xbf16>, vector<16x256xbf16>, vector<24x256xf32> -> vector<24x256xf32>
    %c0_4 = arith.constant 0 : index
    %c0_5 = arith.constant 0 : index
    %5 = vector.load %arg3[%c0_4, %c0_5] : memref<24x1xf32, #tpu.memory_space<vmem>>, vector<24x1xf32>
    %6 = vector.broadcast %5 : vector<24x1xf32> to vector<24x256xf32>
    %7 = arith.addf %4, %6 : vector<24x256xf32>
    %8 = vector.extract_strided_slice %7 {offsets = [0, 0], sizes = [8, 256], strides = [1, 1]} : vector<24x256xf32> to vector<8x256xf32>
    %9 = arith.truncf %8 : vector<8x256xf32> to vector<8x256xbf16>
    %10 = vector.extract_strided_slice %7 {offsets = [8, 0], sizes = [8, 256], strides = [1, 1]} : vector<24x256xf32> to vector<8x256xf32>
    %cst_6 = arith.constant dense<0xFF800000> : vector<8xf32>
    %11 = vector.multi_reduction <maximumf>, %10, %cst_6 [1] : vector<8x256xf32> to vector<8xf32>
    %12 = vector.shape_cast %11 : vector<8xf32> to vector<8x1xf32>
    %cst_7 = arith.constant dense<0xFF800000> : vector<1xf32>
    %13 = vector.multi_reduction <maximumf>, %12, %cst_7 [0] : vector<8x1xf32> to vector<1xf32>
    %14 = vector.shape_cast %13 : vector<1xf32> to vector<1x1xf32>
    %15 = vector.broadcast %14 : vector<1x1xf32> to vector<8x256xf32>
    %16 = arith.subf %10, %15 : vector<8x256xf32>
    %17 = math.exp %16 : vector<8x256xf32>
    %cst_8 = arith.constant dense<0.000000e+00> : vector<8xf32>
    %18 = vector.multi_reduction <add>, %17, %cst_8 [1] : vector<8x256xf32> to vector<8xf32>
    %19 = vector.shape_cast %18 : vector<8xf32> to vector<8x1xf32>
    %cst_9 = arith.constant dense<0.000000e+00> : vector<1xf32>
    %20 = vector.multi_reduction <add>, %19, %cst_9 [0] : vector<8x1xf32> to vector<1xf32>
    %21 = vector.shape_cast %20 : vector<1xf32> to vector<1x1xf32>
    %22 = tpu.reciprocal %21 {approx = true} : vector<1x1xf32> -> vector<1x1xf32>
    %23 = vector.broadcast %22 : vector<1x1xf32> to vector<8x256xf32>
    %24 = arith.mulf %17, %23 : vector<8x256xf32>
    %25 = vector.extract_strided_slice %7 {offsets = [16, 0], sizes = [8, 256], strides = [1, 1]} : vector<24x256xf32> to vector<8x256xf32>
    %cst_10 = arith.constant dense<0xFF800000> : vector<8xf32>
    %26 = vector.multi_reduction <maximumf>, %25, %cst_10 [1] : vector<8x256xf32> to vector<8xf32>
    %27 = vector.shape_cast %26 : vector<8xf32> to vector<8x1xf32>
    %cst_11 = arith.constant dense<0xFF800000> : vector<1xf32>
    %28 = vector.multi_reduction <maximumf>, %27, %cst_11 [0] : vector<8x1xf32> to vector<1xf32>
    %29 = vector.shape_cast %28 : vector<1xf32> to vector<1x1xf32>
    %30 = vector.broadcast %29 : vector<1x1xf32> to vector<8x256xf32>
    %31 = arith.subf %25, %30 : vector<8x256xf32>
    %32 = math.exp %31 : vector<8x256xf32>
    %cst_12 = arith.constant dense<0.000000e+00> : vector<8xf32>
    %33 = vector.multi_reduction <add>, %32, %cst_12 [1] : vector<8x256xf32> to vector<8xf32>
    %34 = vector.shape_cast %33 : vector<8xf32> to vector<8x1xf32>
    %cst_13 = arith.constant dense<0.000000e+00> : vector<1xf32>
    %35 = vector.multi_reduction <add>, %34, %cst_13 [0] : vector<8x1xf32> to vector<1xf32>
    %36 = vector.shape_cast %35 : vector<1xf32> to vector<1x1xf32>
    %37 = tpu.reciprocal %36 {approx = true} : vector<1x1xf32> -> vector<1x1xf32>
    %38 = vector.broadcast %37 : vector<1x1xf32> to vector<8x256xf32>
    %39 = arith.mulf %32, %38 : vector<8x256xf32>
    %40 = arith.truncf %24 : vector<8x256xf32> to vector<8x256xbf16>
    %41 = arith.truncf %39 : vector<8x256xf32> to vector<8x256xbf16>
    %cst_14 = arith.constant dense<0.000000e+00> : vector<8x8xf32>
    %42 = tpu.matmul %40, %41, %cst_14 {dimension_numbers = #tpu.dot_dimension_numbers<[1], [1], [0], [0], [0, 0, 1, 0], [], []>} : vector<8x256xbf16>, vector<8x256xbf16>, vector<8x8xf32> -> vector<8x8xf32>
    %43 = arith.truncf %42 : vector<8x8xf32> to vector<8x8xbf16>
    %cst_15 = arith.constant dense<0.000000e+00> : vector<8x256xf32>
    %44 = tpu.matmul %43, %9, %cst_15 {dimension_numbers = #tpu.dot_dimension_numbers<[1], [0], [0], [1], [0, 0, 1, 1], [], []>} : vector<8x8xbf16>, vector<8x256xbf16>, vector<8x256xf32> -> vector<8x256xf32>
    %c0_16 = arith.constant 0 : index
    %c0_17 = arith.constant 0 : index
    %45 = vector.load %arg4[%c0_16, %c0_17] : memref<16x8xbf16, #tpu.memory_space<vmem>>, vector<16x8xbf16>
    %46 = arith.truncf %44 : vector<8x256xf32> to vector<8x256xbf16>
    %cst_18 = arith.constant dense<0.000000e+00> : vector<16x256xf32>
    %47 = tpu.matmul %45, %46, %cst_18 {dimension_numbers = #tpu.dot_dimension_numbers<[1], [0], [0], [1], [0, 0, 1, 1], [], []>} : vector<16x8xbf16>, vector<8x256xbf16>, vector<16x256xf32> -> vector<16x256xf32>
    %c0_19 = arith.constant 0 : index
    %c0_20 = arith.constant 0 : index
    %48 = vector.load %arg5[%c0_19, %c0_20] : memref<16x1xf32, #tpu.memory_space<vmem>>, vector<16x1xf32>
    %49 = vector.broadcast %48 : vector<16x1xf32> to vector<16x256xf32>
    %50 = arith.addf %47, %49 : vector<16x256xf32>
    %51 = arith.addf %1, %50 : vector<16x256xf32>
    %52 = arith.truncf %51 : vector<16x256xf32> to vector<16x256xbf16>
    %c0_21 = arith.constant 0 : index
    %c0_22 = arith.constant 0 : index
    %c0_23 = arith.constant 0 : index
    %53 = vector.load %arg6[%c0_21, %c0_22, %c0_23] : memref<1x16x256xbf16, #tpu.memory_space<vmem>>, vector<1x16x256xbf16>
    %54 = vector.shape_cast %53 : vector<1x16x256xbf16> to vector<16x256xbf16>
    %55 = vector.shape_cast %52 : vector<16x256xbf16> to vector<1x16x256xbf16>
    tpu.vector_store %arg6[%c0_21, %c0_22, %c0_23], %55 {strides = array<i32>} : memref<1x16x256xbf16, #tpu.memory_space<vmem>>, vector<1x16x256xbf16>,
    return
  }
  func.func @transform_0(%arg0: i32) -> (i32, i32, i32) {
    %c0_i32 = arith.constant 0 : i32
    %c0_i32_0 = arith.constant 0 : i32
    %c0_i32_1 = arith.constant 0 : i32
    return %arg0, %c0_i32, %c0_i32_0 : i32, i32, i32
  }
  func.func @transform_1(%arg0: i32) -> (i32, i32) {
    %c0_i32 = arith.constant 0 : i32
    %c0_i32_0 = arith.constant 0 : i32
    %c0_i32_1 = arith.constant 0 : i32
    return %c0_i32, %c0_i32_0 : i32, i32
  }
  func.func @transform_2(%arg0: i32) -> (i32, i32) {
    %c0_i32 = arith.constant 0 : i32
    %c0_i32_0 = arith.constant 0 : i32
    %c0_i32_1 = arith.constant 0 : i32
    return %c0_i32, %c0_i32_0 : i32, i32
  }
  func.func @transform_3(%arg0: i32) -> (i32, i32) {
    %c0_i32 = arith.constant 0 : i32
    %c0_i32_0 = arith.constant 0 : i32
    %c0_i32_1 = arith.constant 0 : i32
    return %c0_i32, %c0_i32_0 : i32, i32
  }
  func.func @transform_4(%arg0: i32) -> (i32, i32) {
    %c0_i32 = arith.constant 0 : i32
    %c0_i32_0 = arith.constant 0 : i32
    %c0_i32_1 = arith.constant 0 : i32
    return %c0_i32, %c0_i32_0 : i32, i32
  }
  func.func @transform_5(%arg0: i32) -> (i32, i32, i32) {
    %c0_i32 = arith.constant 0 : i32
    %c0_i32_0 = arith.constant 0 : i32
    %c0_i32_1 = arith.constant 0 : i32
    return %arg0, %c0_i32, %c0_i32_0 : i32, i32, i32
  }
}

module attributes {stable_mosaic.version = 11 : i64} {
  func.func @_cgcn_kernel(%arg0: i32, %arg1: memref<1x16x256xf32, #tpu.memory_space<vmem>>, %arg2: memref<1x16x256xbf16, #tpu.memory_space<vmem>>, %arg3: memref<12x16xbf16, #tpu.memory_space<vmem>>, %arg4: memref<12x1xf32, #tpu.memory_space<vmem>>, %arg5: memref<8x8xbf16, #tpu.memory_space<vmem>>, %arg6: memref<1x8xf32, #tpu.memory_space<vmem>>, %arg7: memref<4x4xbf16, #tpu.memory_space<vmem>>, %arg8: memref<4x1xf32, #tpu.memory_space<vmem>>, %arg9: memref<16x4xbf16, #tpu.memory_space<vmem>>, %arg10: memref<16x1xf32, #tpu.memory_space<vmem>>, %arg11: memref<1x16x256xf32, #tpu.memory_space<vmem>>) attributes {dimension_semantics = [#tpu.dimension_semantics<parallel>], iteration_bounds = array<i64: 2>, scalar_prefetch = 0 : i64, scratch_operands = 0 : i64, tpu.core_type = #tpu.core_type<tc>, window_params = [{transform_indices = @transform_0, window_bounds = array<i64: 1, 16, 256>}, {transform_indices = @transform_1, window_bounds = array<i64: 1, 16, 256>}, {pipeline_mode = #tpu.pipeline_mode<synchronous>, transform_indices = @transform_2, window_bounds = array<i64: 12, 16>}, {pipeline_mode = #tpu.pipeline_mode<synchronous>, transform_indices = @transform_3, window_bounds = array<i64: 12, 1>}, {pipeline_mode = #tpu.pipeline_mode<synchronous>, transform_indices = @transform_4, window_bounds = array<i64: 8, 8>}, {pipeline_mode = #tpu.pipeline_mode<synchronous>, transform_indices = @transform_5, window_bounds = array<i64: 1, 8>}, {pipeline_mode = #tpu.pipeline_mode<synchronous>, transform_indices = @transform_6, window_bounds = array<i64: 4, 4>}, {pipeline_mode = #tpu.pipeline_mode<synchronous>, transform_indices = @transform_7, window_bounds = array<i64: 4, 1>}, {pipeline_mode = #tpu.pipeline_mode<synchronous>, transform_indices = @transform_8, window_bounds = array<i64: 16, 4>}, {pipeline_mode = #tpu.pipeline_mode<synchronous>, transform_indices = @transform_9, window_bounds = array<i64: 16, 1>}, {transform_indices = @transform_10, window_bounds = array<i64: 1, 16, 256>}]} {
    %c0 = arith.constant 0 : index
    %c0_0 = arith.constant 0 : index
    %c0_1 = arith.constant 0 : index
    %0 = vector.load %arg1[%c0, %c0_0, %c0_1] : memref<1x16x256xf32, #tpu.memory_space<vmem>>, vector<1x16x256xf32>
    %1 = vector.shape_cast %0 : vector<1x16x256xf32> to vector<16x256xf32>
    %c0_2 = arith.constant 0 : index
    %c0_3 = arith.constant 0 : index
    %c0_4 = arith.constant 0 : index
    %2 = vector.load %arg2[%c0_2, %c0_3, %c0_4] : memref<1x16x256xbf16, #tpu.memory_space<vmem>>, vector<1x16x256xbf16>
    %3 = vector.shape_cast %2 : vector<1x16x256xbf16> to vector<16x256xbf16>
    %c0_5 = arith.constant 0 : index
    %c0_6 = arith.constant 0 : index
    %4 = vector.load %arg3[%c0_5, %c0_6] : memref<12x16xbf16, #tpu.memory_space<vmem>>, vector<12x16xbf16>
    %cst = arith.constant dense<0.000000e+00> : vector<12x256xf32>
    %5 = tpu.matmul %4, %3, %cst {dimension_numbers = #tpu.dot_dimension_numbers<[1], [0], [0], [1], [0, 0, 1, 1], [], []>} : vector<12x16xbf16>, vector<16x256xbf16>, vector<12x256xf32> -> vector<12x256xf32>
    %c0_7 = arith.constant 0 : index
    %c0_8 = arith.constant 0 : index
    %6 = vector.load %arg4[%c0_7, %c0_8] : memref<12x1xf32, #tpu.memory_space<vmem>>, vector<12x1xf32>
    %7 = vector.broadcast %6 : vector<12x1xf32> to vector<12x256xf32>
    %8 = arith.addf %5, %7 : vector<12x256xf32>
    %9 = vector.extract_strided_slice %8 {offsets = [0, 0], sizes = [8, 256], strides = [1, 1]} : vector<12x256xf32> to vector<8x256xf32>
    %10 = arith.truncf %9 : vector<8x256xf32> to vector<8x256xbf16>
    %11 = vector.extract_strided_slice %8 {offsets = [8, 0], sizes = [4, 256], strides = [1, 1]} : vector<12x256xf32> to vector<4x256xf32>
    %12 = arith.truncf %11 : vector<4x256xf32> to vector<4x256xbf16>
    %cst_9 = arith.constant dense<0.000000e+00> : vector<4x8xf32>
    %13 = tpu.matmul %12, %10, %cst_9 {dimension_numbers = #tpu.dot_dimension_numbers<[1], [1], [0], [0], [0, 0, 1, 0], [], []>} : vector<4x256xbf16>, vector<8x256xbf16>, vector<4x8xf32> -> vector<4x8xf32>
    %cst_10 = arith.constant dense<0xFF800000> : vector<4xf32>
    %14 = vector.multi_reduction <maximumf>, %13, %cst_10 [1] : vector<4x8xf32> to vector<4xf32>
    %15 = vector.shape_cast %14 : vector<4xf32> to vector<4x1xf32>
    %cst_11 = arith.constant dense<0xFF800000> : vector<1xf32>
    %16 = vector.multi_reduction <maximumf>, %15, %cst_11 [0] : vector<4x1xf32> to vector<1xf32>
    %17 = vector.shape_cast %16 : vector<1xf32> to vector<1x1xf32>
    %18 = vector.broadcast %17 : vector<1x1xf32> to vector<4x8xf32>
    %19 = arith.subf %13, %18 : vector<4x8xf32>
    %20 = math.exp %19 : vector<4x8xf32>
    %cst_12 = arith.constant dense<0.000000e+00> : vector<4xf32>
    %21 = vector.multi_reduction <add>, %20, %cst_12 [1] : vector<4x8xf32> to vector<4xf32>
    %22 = vector.shape_cast %21 : vector<4xf32> to vector<4x1xf32>
    %cst_13 = arith.constant dense<0.000000e+00> : vector<1xf32>
    %23 = vector.multi_reduction <add>, %22, %cst_13 [0] : vector<4x1xf32> to vector<1xf32>
    %24 = vector.shape_cast %23 : vector<1xf32> to vector<1x1xf32>
    %25 = tpu.reciprocal %24 {approx = true} : vector<1x1xf32> -> vector<1x1xf32>
    %26 = vector.broadcast %25 : vector<1x1xf32> to vector<4x8xf32>
    %27 = arith.mulf %20, %26 : vector<4x8xf32>
    %28 = arith.truncf %27 : vector<4x8xf32> to vector<4x8xbf16>
    %c0_14 = arith.constant 0 : index
    %c0_15 = arith.constant 0 : index
    %29 = vector.load %arg5[%c0_14, %c0_15] : memref<8x8xbf16, #tpu.memory_space<vmem>>, vector<8x8xbf16>
    %cst_16 = arith.constant dense<0.000000e+00> : vector<4x8xf32>
    %30 = tpu.matmul %28, %29, %cst_16 {dimension_numbers = #tpu.dot_dimension_numbers<[1], [1], [0], [0], [0, 0, 1, 0], [], []>} : vector<4x8xbf16>, vector<8x8xbf16>, vector<4x8xf32> -> vector<4x8xf32>
    %c0_17 = arith.constant 0 : index
    %c0_18 = arith.constant 0 : index
    %31 = vector.load %arg6[%c0_17, %c0_18] : memref<1x8xf32, #tpu.memory_space<vmem>>, vector<1x8xf32>
    %32 = vector.broadcast %31 : vector<1x8xf32> to vector<4x8xf32>
    %33 = arith.addf %30, %32 : vector<4x8xf32>
    %34 = arith.addf %27, %33 : vector<4x8xf32>
    %cst_19 = arith.constant 0.000000e+00 : f32
    %35 = vector.broadcast %cst_19 : f32 to vector<4x8xf32>
    %36 = arith.maximumf %34, %35 : vector<4x8xf32>
    %c0_20 = arith.constant 0 : index
    %c0_21 = arith.constant 0 : index
    %37 = vector.load %arg7[%c0_20, %c0_21] : memref<4x4xbf16, #tpu.memory_space<vmem>>, vector<4x4xbf16>
    %38 = arith.truncf %36 : vector<4x8xf32> to vector<4x8xbf16>
    %cst_22 = arith.constant dense<0.000000e+00> : vector<4x8xf32>
    %39 = tpu.matmul %37, %38, %cst_22 {dimension_numbers = #tpu.dot_dimension_numbers<[1], [0], [0], [1], [0, 0, 1, 1], [], []>} : vector<4x4xbf16>, vector<4x8xbf16>, vector<4x8xf32> -> vector<4x8xf32>
    %c0_23 = arith.constant 0 : index
    %c0_24 = arith.constant 0 : index
    %40 = vector.load %arg8[%c0_23, %c0_24] : memref<4x1xf32, #tpu.memory_space<vmem>>, vector<4x1xf32>
    %41 = vector.broadcast %40 : vector<4x1xf32> to vector<4x8xf32>
    %42 = arith.addf %39, %41 : vector<4x8xf32>
    %43 = arith.truncf %42 : vector<4x8xf32> to vector<4x8xbf16>
    %cst_25 = arith.constant dense<0.000000e+00> : vector<4x256xf32>
    %44 = tpu.matmul %43, %10, %cst_25 {dimension_numbers = #tpu.dot_dimension_numbers<[1], [0], [0], [1], [0, 0, 1, 1], [], []>} : vector<4x8xbf16>, vector<8x256xbf16>, vector<4x256xf32> -> vector<4x256xf32>
    %c0_26 = arith.constant 0 : index
    %c0_27 = arith.constant 0 : index
    %45 = vector.load %arg9[%c0_26, %c0_27] : memref<16x4xbf16, #tpu.memory_space<vmem>>, vector<16x4xbf16>
    %46 = arith.truncf %44 : vector<4x256xf32> to vector<4x256xbf16>
    %cst_28 = arith.constant dense<0.000000e+00> : vector<16x256xf32>
    %47 = tpu.matmul %45, %46, %cst_28 {dimension_numbers = #tpu.dot_dimension_numbers<[1], [0], [0], [1], [0, 0, 1, 1], [], []>} : vector<16x4xbf16>, vector<4x256xbf16>, vector<16x256xf32> -> vector<16x256xf32>
    %c0_29 = arith.constant 0 : index
    %c0_30 = arith.constant 0 : index
    %48 = vector.load %arg10[%c0_29, %c0_30] : memref<16x1xf32, #tpu.memory_space<vmem>>, vector<16x1xf32>
    %49 = vector.broadcast %48 : vector<16x1xf32> to vector<16x256xf32>
    %50 = arith.addf %47, %49 : vector<16x256xf32>
    %51 = arith.extf %3 : vector<16x256xbf16> to vector<16x256xf32>
    %52 = arith.addf %1, %51 : vector<16x256xf32>
    %53 = arith.addf %52, %50 : vector<16x256xf32>
    %c0_31 = arith.constant 0 : index
    %c0_32 = arith.constant 0 : index
    %c0_33 = arith.constant 0 : index
    %54 = vector.load %arg11[%c0_31, %c0_32, %c0_33] : memref<1x16x256xf32, #tpu.memory_space<vmem>>, vector<1x16x256xf32>
    %55 = vector.shape_cast %54 : vector<1x16x256xf32> to vector<16x256xf32>
    %56 = vector.shape_cast %53 : vector<16x256xf32> to vector<1x16x256xf32>
    tpu.vector_store %arg11[%c0_31, %c0_32, %c0_33], %56 {strides = array<i32>} : memref<1x16x256xf32, #tpu.memory_space<vmem>>, vector<1x16x256xf32>,
    return
  }
  func.func @transform_0(%arg0: i32) -> (i32, i32, i32) {
    %c0_i32 = arith.constant 0 : i32
    %c0_i32_0 = arith.constant 0 : i32
    %c0_i32_1 = arith.constant 0 : i32
    return %arg0, %c0_i32, %c0_i32_0 : i32, i32, i32
  }
  func.func @transform_1(%arg0: i32) -> (i32, i32, i32) {
    %c0_i32 = arith.constant 0 : i32
    %c0_i32_0 = arith.constant 0 : i32
    %c0_i32_1 = arith.constant 0 : i32
    return %arg0, %c0_i32, %c0_i32_0 : i32, i32, i32
  }
  func.func @transform_2(%arg0: i32) -> (i32, i32) {
    %c0_i32 = arith.constant 0 : i32
    %c0_i32_0 = arith.constant 0 : i32
    %c0_i32_1 = arith.constant 0 : i32
    return %c0_i32, %c0_i32_0 : i32, i32
  }
  func.func @transform_3(%arg0: i32) -> (i32, i32) {
    %c0_i32 = arith.constant 0 : i32
    %c0_i32_0 = arith.constant 0 : i32
    %c0_i32_1 = arith.constant 0 : i32
    return %c0_i32, %c0_i32_0 : i32, i32
  }
  func.func @transform_4(%arg0: i32) -> (i32, i32) {
    %c0_i32 = arith.constant 0 : i32
    %c0_i32_0 = arith.constant 0 : i32
    %c0_i32_1 = arith.constant 0 : i32
    return %c0_i32, %c0_i32_0 : i32, i32
  }
  func.func @transform_5(%arg0: i32) -> (i32, i32) {
    %c0_i32 = arith.constant 0 : i32
    %c0_i32_0 = arith.constant 0 : i32
    %c0_i32_1 = arith.constant 0 : i32
    return %c0_i32, %c0_i32_0 : i32, i32
  }
  func.func @transform_6(%arg0: i32) -> (i32, i32) {
    %c0_i32 = arith.constant 0 : i32
    %c0_i32_0 = arith.constant 0 : i32
    %c0_i32_1 = arith.constant 0 : i32
    return %c0_i32, %c0_i32_0 : i32, i32
  }
  func.func @transform_7(%arg0: i32) -> (i32, i32) {
    %c0_i32 = arith.constant 0 : i32
    %c0_i32_0 = arith.constant 0 : i32
    %c0_i32_1 = arith.constant 0 : i32
    return %c0_i32, %c0_i32_0 : i32, i32
  }
  func.func @transform_8(%arg0: i32) -> (i32, i32) {
    %c0_i32 = arith.constant 0 : i32
    %c0_i32_0 = arith.constant 0 : i32
    %c0_i32_1 = arith.constant 0 : i32
    return %c0_i32, %c0_i32_0 : i32, i32
  }
  func.func @transform_9(%arg0: i32) -> (i32, i32) {
    %c0_i32 = arith.constant 0 : i32
    %c0_i32_0 = arith.constant 0 : i32
    %c0_i32_1 = arith.constant 0 : i32
    return %c0_i32, %c0_i32_0 : i32, i32
  }
  func.func @transform_10(%arg0: i32) -> (i32, i32, i32) {
    %c0_i32 = arith.constant 0 : i32
    %c0_i32_0 = arith.constant 0 : i32
    %c0_i32_1 = arith.constant 0 : i32
    return %arg0, %c0_i32, %c0_i32_0 : i32, i32, i32
  }
}

</mosaic_0001>

<bundles_post_ra>
// kernel: basicblock_forward.3
= control target key start
LH: loop header
LB: loop body
LE: loop exit
PB: predicated region body
PF: predicated region fallthrough
CT: control target
= control target key end

     0   :  { %s709_s18 = smov 0   ;;  %s788_s0 = inlined_call_operand.vmem [shape: f32[2,16,256], index: 0, kind: input, shape index: {}]   ;;  %s789_s1 = inlined_call_operand.vmem [shape: bf16[24,16], index: 1, kind: input, shape index: {}]   ;;  %s790_s2 = inlined_call_operand.vmem [shape: f32[24,1], index: 2, kind: input, shape index: {}]   ;;  %s791_s3 = inlined_call_operand.vmem [shape: bf16[16,8], index: 3, kind: input, shape index: {}]   ;;  %s792_s4 = inlined_call_operand.vmem [shape: f32[16,1], index: 4, kind: input, shape index: {}]   ;;  %s793_s5 = inlined_call_operand.vmem [shape: bf16[2,16,256], index: 5, kind: output, shape index: {}]  }
   0x1 LB: > { %s618_s19 = sadd.s32 4294967295, %s676_s18   ;;  %p622_p0 = scmp.ge.s32.totalorder %s676_s18, 1  ;;  %s676_s18 = sphi %s709_s18, %s15_s18  }
   0x2   : > { %p187_p1 = scmp.lt.s32.totalorder %s676_s18, 3 }
   0x4   : > { %p188_p2 = pnand %p622_p0, %p187_p1 }
   0x5   : > { %p215_p3 = scmp.lt.s32.totalorder (!%p188_p2), %s618_s19, 1  ;;  %v678_v0 = vmov (!%p188_p2), 0   ;;  %v237_v1 = vld [vmem:[%s790_s2 + $0x10] sm:$0xff] (!%p188_p2)  ;;  %v236_v2 = vld [vmem:[%s790_s2 + $0x8] sm:$0xff] (!%p188_p2)  ;;  %v655_v9 = vld [vmem:[%s789_s1] sm:$0xff] (!%p188_p2)   ;;  %vm261_vm0 = vcmask (!%p188_p2), 130048  }
   0x6   : > { %191 = sbr.rel (%p188_p2) target bundleno = 1252 (0x4e4), region = 40  ;;  %300 = vmatprep.mubr.bf16.mxu0 (!%p188_p2), %v678_v0  ;;  %653 = vset.pattern.permute.xlu0 (!%p188_p2), %v678_v0  ;;  %v656_v10 = vld [vmem:[%s789_s1 + $0x8] ss:$0 sps:$4 sm:$0xff] (!%p188_p2)   ;;  %v235_v55 = vld [vmem:[%s790_s2] sm:$0xff] (!%p188_p2)  ;;  %vm424_vm1 = vcmask (!%p188_p2), 1043456   ;;  %vm420_vm2 = vcmask (!%p188_p2), 64512  }
   0x7   : > { %654 = vset.pattern.permute.xlu1 (!%p188_p2), %v678_v0  ;;  %250 = vperm.xlu0 (!%p188_p2), %653, %v237_v1   ;;  %v476_v56 = vld [vmem:[%s792_s4] sm:$0xff] (!%p188_p2)  ;;  %v477_v57 = vld [vmem:[%s792_s4 + $0x8] sm:$0xff] (!%p188_p2) }
   0xb   : > { %245 = vperm.xlu0 (!%p188_p2), %653, %v236_v2  }
   0xd   : > { %s795_s19 = smov (!%p215_p3, %s618_s19), 1 }
   0xe   : > { %s640_s22 = sshll.u32 %s795_s19, 5  ;;  %s641_s15 = sshll.u32 %s795_s19, 4 }
   0xf   : > { %s219_s27 = scalar_lea.vmem %s788_s0, %s640_s22  ;;  %s224_s20 = scalar_lea.vmem %s793_s5, %s641_s15 }
  0x10   : > { %v732_v3 = vld [vmem:[%s219_s27 + $0x8] sm:$0xff]  ;;  %v734_v4 = vld [vmem:[%s219_s27 + $0x18] sm:$0xff]  ;;  %v736_v5 = vld [vmem:[%s219_s27] sm:$0xff] }
  0x11   : > { %v231_v6 = vpack.c.bf16 %v734_v4, %v732_v3  ;;  %v740_v7 = vld [vmem:[%s219_s27 + $0x10] sm:$0xff] }
  0x12   : > { %v230_v8 = vpack.c.bf16 %v740_v7, %v736_v5 }
  0x13   : > { %268 = vmatprep.subr.bf16.mxu0 %v231_v6 }
  0x14   : > { %269 = vmatpush1.bf16.msra.mxu0 %v230_v8 }
  0x17   : > { %629 = vmatmul.mubr.msk.bf16.vlgmr.msra.gmra.mrb[0].mxu0 %vm261_vm0, %v655_v9 }
  0x18   : > { %310 = vmatprep.mubr.bf16.mxu0 %v678_v0 }
  0x1f   : > { %630 = vmatmul.mubr.msk.bf16.gmra.mrb[4].mxu0 %vm261_vm0, %v656_v10 }
  0x20   : > { %534 = vmatprep.mubr.bf16.mxu0 %v678_v0 }
  0x86   : > { %v251_v14 = vpop.permute.xlu0 %250 }
  0x8a   : > { %v246_v17 = vpop.permute.xlu0 %245 }
  0xea   : > { %v752_v11 = vpop.f32.mrb[0].mxu0 }
  0xeb   : > { %v754_v12 = vpop.f32.mrb[1].mxu0 }
  0xec   : > { %v306_v13 = vpop.f32.mrb[2].mxu0 }
  0xed   : > { %v308_v15 = vpop.f32.mrb[3].mxu0  ;;  %v307_v23 = vadd.f32 %v306_v13, %v246_v17 }
  0xee   : > { %v309_v24 = vadd.f32 %v308_v15, %v246_v17 }
  0xf0   : > { %v321_v26 = vmax.f32 %v307_v23, %v309_v24 }
  0xf2   : > { %v312_v16 = vpop.f32.mrb[4].mxu0 }
  0xf3   : > { %v313_v18 = vadd.f32 %v312_v16, %v251_v14  ;;  %v314_v19 = vpop.f32.mrb[5].mxu0 }
  0xf4   : > { %v315_v20 = vadd.f32 %v314_v19, %v251_v14  ;;  %v316_v21 = vpop.f32.mrb[6].mxu0 }
  0xf5   : > { %v317_v22 = vpop.f32.mrb[7].mxu0 }
  0xf6   : > { %v348_v25 = vmax.f32 %v313_v18, %v315_v20 }
  0xf8   : > { %349 = vmax.xlane.f32.xlu1 %v348_v25 }
  0xfc   : > { %322 = vmax.xlane.f32.xlu1 %v321_v26 }
 0x185   : > { %v350_v27 = vpop.xlane.xlu1 %349 }
 0x186   : > { %v351_v28 = vrot.slane %v350_v27, 4 }
 0x188   : > { %v352_v29 = vmax.f32 %v350_v27, %v351_v28 }
 0x189   : > { %v323_v30 = vpop.xlane.xlu1 %322 }
 0x18a   : > { %v353_v31 = vrot.slane %v352_v29, 2  ;;  %v324_v32 = vrot.slane %v323_v30, 4 }
 0x18c   : > { %v354_v33 = vmax.f32 %v352_v29, %v353_v31  ;;  %v325_v34 = vmax.f32 %v323_v30, %v324_v32 }
 0x18e   : > { %v355_v35 = vrot.slane %v354_v33, 1  ;;  %v326_v36 = vrot.slane %v325_v34, 2 }
 0x190   : > { %v356_v37 = vmax.f32 %v354_v33, %v355_v35  ;;  %v327_v38 = vmax.f32 %v325_v34, %v326_v36 }
 0x192   : > { %v357_v39 = vsub.f32 %v313_v18, %v356_v37  ;;  %v358_v40 = vsub.f32 %v315_v20, %v356_v37  ;;  %v328_v41 = vrot.slane %v327_v38, 1 }
 0x194   : > { %v359_v42 = vmul.f32 1.442695, %v357_v39  ;;  %v361_v43 = vmul.f32 1.442695, %v358_v40  ;;  %v329_v44 = vmax.f32 %v327_v38, %v328_v41 }
 0x196   : > { %658 = vpow2.f32 %v359_v42  ;;  %v330_v45 = vsub.f32 %v307_v23, %v329_v44  ;;  %v331_v46 = vsub.f32 %v309_v24, %v329_v44 }
 0x197   : > { %660 = vpow2.f32 %v361_v43 }
 0x198   : > { %v332_v47 = vmul.f32 1.442695, %v330_v45  ;;  %v334_v48 = vmul.f32 1.442695, %v331_v46 }
 0x19a   : > { %662 = vpow2.f32 %v332_v47 }
 0x19b   : > { %664 = vpow2.f32 %v334_v48 }
 0x1a0   : > { %v659_v49 = vpop.eup %658 }
 0x1a1   : > { %v661_v50 = vpop.eup %660 }
 0x1a2   : > { %v363_v51 = vadd.f32 %v661_v50, %v659_v49 }
 0x1a4   : > { %v663_v52 = vpop.eup %662  ;;  %364 = vadd.xlane.f32.xlu0 %v363_v51 }
 0x1a5   : > { %v665_v53 = vpop.eup %664 }
 0x1a6   : > { %v336_v54 = vadd.f32 %v665_v53, %v663_v52 }
 0x1a8   : > { %337 = vadd.xlane.f32.xlu1 %v336_v54 }
 0x1b9   : > { %240 = vperm.xlu1 %654, %v235_v55  }
 0x1bd   : > { %480 = vperm.xlu1 %654, %v476_v56  }
 0x1c1   : > { %485 = vperm.xlu1 %654, %v477_v57  }
 0x231   : > { %v365_v58 = vpop.xlane.xlu0 %364 }
 0x232   : > { %v366_v59 = vrot.slane %v365_v58, 4 }
 0x234   : > { %v367_v60 = vadd.f32 %v366_v59, %v365_v58 }
 0x235   : > { %v338_v61 = vpop.xlane.xlu1 %337 }
 0x236   : > { %v368_v62 = vrot.slane %v367_v60, 2  ;;  %v339_v63 = vrot.slane %v338_v61, 4 }
 0x238   : > { %v369_v1 = vadd.f32 %v368_v62, %v367_v60  ;;  %v340_v2 = vadd.f32 %v339_v63, %v338_v61 }
 0x239   : > { %v241_v15 = vpop.permute.xlu1 %240 }
 0x23a   : > { %v370_v6 = vrot.slane %v369_v1, 1  ;;  %v341_v8 = vrot.slane %v340_v2, 2  ;;  %v305_v17 = vadd.f32 %v754_v12, %v241_v15  ;;  %v303_v23 = vadd.f32 %v752_v11, %v241_v15 }
 0x23c   : > { %v371_v9 = vadd.f32 %v370_v6, %v369_v1  ;;  %v342_v10 = vadd.f32 %v341_v8, %v340_v2  ;;  %v320_v24 = vpack.c.bf16 %v305_v17, %v305_v17  ;;  %v319_v28 = vpack.c.bf16 %v303_v23, %v303_v23 }
 0x23d   : > { %v481_v41 = vpop.permute.xlu1 %480 }
 0x23e   : > { %666 = vrcp.f32 %v371_v9  ;;  %v343_v13 = vrot.slane %v342_v10, 1  ;;  %v426_v12 = vsel %vm424_vm1, %v319_v28, 0 }
 0x240   : > { %v344_v14 = vadd.f32 %v343_v13, %v342_v10 }
 0x241   : > { %v486_v45 = vpop.permute.xlu1 %485 }
 0x242   : > { %668 = vrcp.f32 %v344_v14 }
 0x248   : > { %v667_v16 = vpop.eup %666 }
 0x249   : > { %v374_v18 = vmul.f32 %v667_v16, %v661_v50  ;;  %v373_v19 = vmul.f32 %v667_v16, %v659_v49 }
 0x24b   : > { %v378_v20 = vpack.c.bf16 %v374_v18, %v374_v18  ;;  %v377_v21 = vpack.c.bf16 %v373_v19, %v373_v19 }
 0x24c   : > { %v669_v22 = vpop.eup %668 }
 0x24d   : > { %379 = vmatprep.subr.bf16.mxu1 %v378_v20  ;;  %v347_v25 = vmul.f32 %v669_v22, %v665_v53  ;;  %v346_v27 = vmul.f32 %v669_v22, %v663_v52 }
 0x24e   : > { %380 = vmatpush1.bf16.xpose.msra.mxu1 %v377_v21 }
 0x24f   : > { %631 = vmatprep.subr.msk.bf16.mxu1 %vm424_vm1, %v320_v24  ;;  %v376_v26 = vpack.c.bf16 %v347_v25, %v347_v25  ;;  %v375_v29 = vpack.c.bf16 %v346_v27, %v346_v27 }
 0x251   : > { %411 = vmatprep.mubr.bf16.mxu1 %v376_v26 }
 0x255   : > { %412 = vmatmul.mubr.bf16.vlgmr.msra.gmra.mrb[0].mxu1 %v375_v29 }
 0x256   : > { %432 = vmatpush1.bf16.msra.mxu1 %v426_v12  ;;  %463 = vmatprep.mubr.bf16.mxu1 %v678_v0  ;;  %v657_v0 = vld [vmem:[%s791_s3] sm:$0xff]  }
 0x328   : > { %v413_v30 = vpop.f32.mrb[0].mxu1 }
 0x329   : > { %v419_v11 = vpack.c.bf16 %v413_v30, %v413_v30  ;;  %v415_v31 = vpop.f32.mrb[1].mxu1 }
 0x32a   : > { %v416_v32 = vpop.f32.mrb[2].mxu1 }
 0x32b   : > { %v417_v33 = vpop.f32.mrb[3].mxu1  ;;  %632 = vmatmul.mubr.msk.bf16.vlgmr.msra.gmra.mrb[4].mxu1 %vm420_vm2, %v419_v11 }
 0x3fe   : > { %v465_v34 = vpop.f32.mrb[4].mxu1 }
 0x3ff   : > { %v474_v35 = vpack.c.bf16 %v465_v34, %v465_v34  ;;  %v467_v36 = vpop.f32.mrb[5].mxu1 }
 0x400   : > { %v475_v37 = vpack.c.bf16 %v467_v36, %v467_v36  ;;  %v469_v38 = vpop.f32.mrb[6].mxu1 }
 0x401   : > { %v497_v39 = vsel %vm424_vm1, %v474_v35, 0  ;;  %v470_v40 = vpop.f32.mrb[7].mxu1 }
 0x402   : > { %634 = vmatprep.subr.msk.bf16.mxu0 %vm424_vm1, %v475_v37 }
 0x403   : > { %503 = vmatpush1.bf16.msra.mxu0 %v497_v39 }
 0x406   : > { %635 = vmatmul.mubr.msk.bf16.vlgmr.msra.gmra.mrb[8].mxu0 %vm420_vm2, %v657_v0 }
 0x4d9   : > { %v536_v42 = vpop.f32.mrb[8].mxu0 }
 0x4da   : > { %v537_v43 = vadd.f32 %v536_v42, %v481_v41  ;;  %v538_v44 = vpop.f32.mrb[9].mxu0 }
 0x4db   : > { %v539_v46 = vadd.f32 %v538_v44, %v481_v41  ;;  %v540_v47 = vpop.f32.mrb[10].mxu0 }
 0x4dc   : > { %v545_v48 = vadd.f32 %v537_v43, %v736_v5  ;;  %v541_v49 = vadd.f32 %v540_v47, %v486_v45  ;;  %v542_v50 = vpop.f32.mrb[11].mxu0 }
 0x4dd   : > { %v546_v51 = vadd.f32 %v539_v46, %v732_v3  ;;  %v543_v52 = vadd.f32 %v542_v50, %v486_v45 }
 0x4de   : > { %v547_v53 = vadd.f32 %v541_v49, %v740_v7 }
 0x4df   : > { %v642_v54 = vpack.c.bf16 %v546_v51, %v545_v48  ;;  %v548_v55 = vadd.f32 %v543_v52, %v734_v4 }
 0x4e1   : > { %561 = vst [vmem:[%s224_s20] sm:$0xff] %v642_v54  ;;  %v643_v56 = vpack.c.bf16 %v548_v55, %v547_v53 }
 0x4e3   : > { %562 = vst [vmem:[%s224_s20 + $0x8] sm:$0xff] %v643_v56 }
 0x4e4 PF: > { %s15_s18 = sadd.s32 1, %s676_s18  }
 0x4e5   : > { %p12_p4 = scmp.ge.s32.totalorder %s15_s18, 4  }
 0x4e7   :  { %14 = sbr.rel (!%p12_p4) target bundleno = 1 (0x1), region = 70 }

// kernel: basicblock_forward.5
= control target key start
LH: loop header
LB: loop body
LE: loop exit
PB: predicated region body
PF: predicated region fallthrough
CT: control target
= control target key end

     0   :  { %s986_s13 = smov 0   ;;  %s1071_s0 = inlined_call_operand.vmem [shape: f32[2,16,256], index: 0, kind: input, shape index: {}]   ;;  %s1072_s1 = inlined_call_operand.vmem [shape: bf16[2,16,256], index: 1, kind: input, shape index: {}]   ;;  %s1073_s2 = inlined_call_operand.vmem [shape: bf16[12,16], index: 2, kind: input, shape index: {}]   ;;  %s1074_s3 = inlined_call_operand.vmem [shape: f32[12,1], index: 3, kind: input, shape index: {}]   ;;  %s1075_s4 = inlined_call_operand.vmem [shape: bf16[8,8], index: 4, kind: input, shape index: {}]   ;;  %s1076_s5 = inlined_call_operand.vmem [shape: f32[1,8], index: 5, kind: input, shape index: {}]   ;;  %s1077_s6 = inlined_call_operand.vmem [shape: bf16[4,4], index: 6, kind: input, shape index: {}]   ;;  %s1078_s7 = inlined_call_operand.vmem [shape: f32[4,1], index: 7, kind: input, shape index: {}]   ;;  %s1079_s8 = inlined_call_operand.vmem [shape: bf16[16,4], index: 8, kind: input, shape index: {}]   ;;  %s1080_s9 = inlined_call_operand.vmem [shape: f32[16,1], index: 9, kind: input, shape index: {}]   ;;  %s1081_s10 = inlined_call_operand.vmem [shape: f32[2,16,256], index: 10, kind: output, shape index: {}]  }
   0x1 LB: > { %s855_s14 = sadd.s32 4294967295, %s926_s13   ;;  %p859_p0 = scmp.ge.s32.totalorder %s926_s13, 1  ;;  %s926_s13 = sphi %s986_s13, %s20_s13  }
   0x2   : > { %p322_p1 = scmp.lt.s32.totalorder %s926_s13, 3 }
   0x4   : > { %p323_p2 = pnand %p859_p0, %p322_p1 }
   0x5   : > { %p365_p3 = scmp.lt.s32.totalorder (!%p323_p2), %s855_s14, 1  ;;  %v928_v0 = vmov (!%p323_p2), 0   ;;  %v389_v1 = vld [vmem:[%s1074_s3] sm:$0xff] (!%p323_p2)  ;;  %v390_v2 = vld [vmem:[%s1074_s3 + $0x8] sm:$0xf] (!%p323_p2)  ;;  %vm416_vm0 = vcmask (!%p323_p2), 130048  }
   0x6   : > { %326 = sbr.rel (%p323_p2) target bundleno = 1681 (0x691), region = 60  ;;  %452 = vmatprep.mubr.bf16.mxu0 (!%p323_p2), %v928_v0  ;;  %910 = vset.pattern.permute.xlu0 (!%p323_p2), %v928_v0  ;;  %v594_v7 = vld [vmem:[%s1078_s7] sm:$0xf] (!%p323_p2)  ;;  %v704_v9 = vld [vmem:[%s1080_s9 + $0x8] sm:$0xff] (!%p323_p2)  ;;  %vm543_vm1 = vcmask (!%p323_p2), 64512   ;;  %v929_v11 = vmov (!%p323_p2), 0.0  }
   0x7   : > { %393 = vperm.xlu0 (!%p323_p2), %910, %v389_v1   ;;  %911 = vset.pattern.permute.xlu1 (!%p323_p2), %v928_v0  ;;  %v914_v8 = vld [vmem:[%s1073_s2] sm:$0x3f] (!%p323_p2)   ;;  %vm511_vm2 = vcmask (!%p323_p2), 1043456   ;;  %vm507_vm3 = vcmask (!%p323_p2), 60416   ;;  %vm930_vm4 = vmmov (!%p323_p2), 0   ;;  %vm604_vm5 = vcmask (!%p323_p2), 1041408  }
   0x8   : > { %v535_v10 = vld [vmem:[%s1075_s4] sm:$0xf] (!%p323_p2)  ;;  %vm600_vm6 = vcmask (!%p323_p2), 31744  }
   0x9   : > { %v548_v12 = vsel (!%p323_p2), %vm543_vm1, %v535_v10, 0  ;;  %v870_v56 = vld [vmem:[%s1076_s5] ss:$0 sm:$0xff] (!%p323_p2) }
   0xb   : > { %398 = vperm.xlu0 (!%p323_p2), %910, %v390_v2  }
   0xd   : > { %s1083_s14 = smov (!%p365_p3, %s855_s14), 1 }
   0xe   : > { %s881_s19 = sshll.u32 %s1083_s14, 4  ;;  %s880_s21 = sshll.u32 %s1083_s14, 5 }
   0xf   : > { %s374_s22 = scalar_lea.vmem %s1072_s1, %s881_s19  ;;  %597 = vperm.xlu0 %910, %v594_v7   ;;  %s369_s24 = scalar_lea.vmem %s1071_s0, %s880_s21 }
  0x10   : > { %v1009_v3 = vld [vmem:[%s374_s22] sm:$0xff]  ;;  %v1011_v4 = vld [vmem:[%s374_s22 + $0x8] sm:$0xff]  ;;  %s379_s26 = scalar_lea.vmem %s1081_s10, %s880_s21 }
  0x11   : > { %v868_v5 = vcombine.high %v1009_v3, %v1011_v4  ;;  %v867_v6 = vcombine.low %v1009_v3, %v1011_v4 }
  0x13   : > { %420 = vmatprep.subr.bf16.mxu0 %v868_v5  ;;  %712 = vperm.xlu0 %910, %v704_v9   ;;  %v592_v5 = vld [vmem:[%s1077_s6] sm:$0x3] }
  0x14   : > { %421 = vmatpush1.bf16.msra.mxu0 %v867_v6 }
  0x15   : > { %887 = vmatprep.subr.bf16.mxu0 %v929_v11 }
  0x17   : > { %869 = vmatmul.mubr.msk.bf16.vlgmr.msra.gmra.mrb[0].mxu0 %vm416_vm0, %v914_v8 }
  0x18   : > { %889 = vmatprep.mubr.msk.bf16.mxu0 %vm930_vm4, %v929_v11 }
  0x1d   : > { %888 = vmatpush3.bf16.xpose.msra.mxu0 %v548_v12 }
  0x86   : > { %v394_v13 = vpop.permute.xlu0 %393 }
  0x8a   : > { %v399_v19 = vpop.permute.xlu0 %398 }
  0x8e   : > { %v598_v6 = vpop.permute.xlu0 %597 }
  0xea   : > { %v454_v14 = vpop.f32.mrb[0].mxu0 }
  0xeb   : > { %v455_v15 = vadd.f32 %v454_v14, %v394_v13  ;;  %v456_v16 = vpop.f32.mrb[1].mxu0 }
  0xec   : > { %v457_v17 = vadd.f32 %v456_v16, %v394_v13  ;;  %v458_v18 = vpop.f32.mrb[2].mxu0  ;;  %v703_v13 = vld [vmem:[%s1080_s9] sm:$0xff] }
  0xed   : > { %v460_v20 = vpop.f32.mrb[3].mxu0  ;;  %v463_v23 = vpack.c.bf16 %v455_v15, %v455_v15  ;;  %v459_v25 = vadd.f32 %v458_v18, %v399_v19 }
  0xee   : > { %v464_v21 = vpack.c.bf16 %v457_v17, %v457_v17  ;;  %v461_v22 = vadd.f32 %v460_v20, %v399_v19  ;;  %v915_v20 = vld [vmem:[%s1079_s8] sm:$0xff]  }
  0xef   : > { %v465_v26 = vpack.c.bf16 %v459_v25, %v459_v25  ;;  %v653_v55 = vsel %vm511_vm2, %v463_v23, 0  ;;  %v382_v25 = vld [vmem:[%s369_s24 + $0x8] sm:$0xff] }
  0xf0   : > { %467 = vmatprep.subr.bf16.mxu1 %v464_v21  ;;  %873 = vmatprep.subr.msk.bf16.mxu0 %vm511_vm2, %v464_v21  ;;  %v466_v24 = vpack.c.bf16 %v461_v22, %v461_v22  ;;  %v772_v21 = vunpack.c.l.bf16 %v1009_v3  ;;  %v773_v22 = vunpack.c.h.bf16 %v1009_v3 }
  0xf1   : > { %468 = vmatpush1.bf16.xpose.msra.mxu1 %v463_v23  ;;  %v381_v23 = vld [vmem:[%s369_s24] sm:$0xff] }
  0xf2   : > { %499 = vmatprep.mubr.bf16.mxu1 %v466_v24  ;;  %893 = vmatprep.subr.bf16.mxu1 %v929_v11  ;;  %v774_v24 = vunpack.c.l.bf16 %v1011_v4 }
  0xf8   : > { %500 = vmatmul.mubr.bf16.vlgmr.msra.gmra.mrb[0].mxu1 %v465_v26  ;;  %v383_v26 = vld [vmem:[%s369_s24 + $0x10] sm:$0xff] }
  0xf9   : > { %895 = vmatprep.mubr.msk.bf16.mxu1 %vm930_vm4, %v929_v11 }
 0x1cb   : > { %v501_v27 = vpop.f32.mrb[0].mxu1 }
 0x1cc   : > { %v503_v28 = vpop.f32.mrb[1].mxu1  ;;  %v508_v29 = vsel %vm507_vm3, %v501_v27, -inf }
 0x1cd   : > { %509 = vmax.xlane.f32.xlu1 %v508_v29  ;;  %v504_v30 = vpop.f32.mrb[2].mxu1  ;;  %v384_v29 = vld [vmem:[%s369_s24 + $0x18] sm:$0xff] }
 0x1ce   : > { %v505_v31 = vpop.f32.mrb[3].mxu1  ;;  %v776_v30 = vadd.f32 %v772_v21, %v381_v23 }
 0x25a   : > { %v510_v32 = vpop.xlane.xlu1 %509 }
 0x25b   : > { %v512_v33 = vsel %vm511_vm2, %v510_v32, -inf  ;;  %v777_v32 = vadd.f32 %v773_v22, %v382_v25 }
 0x25c   : > { %v513_v34 = vrot.slane %v512_v33, 4 }
 0x25e   : > { %v514_v35 = vmax.f32 %v512_v33, %v513_v34  ;;  %v778_v34 = vadd.f32 %v774_v24, %v383_v26 }
 0x260   : > { %v515_v36 = vrot.slane %v514_v35, 2 }
 0x262   : > { %v516_v37 = vmax.f32 %v514_v35, %v515_v36  ;;  %v713_v36 = vpop.permute.xlu0 %712 }
 0x264   : > { %v517_v38 = vrot.slane %v516_v37, 1 }
 0x266   : > { %v518_v39 = vmax.f32 %v516_v37, %v517_v38 }
 0x268   : > { %v519_v40 = vsub.f32 %v501_v27, %v518_v39  ;;  %v775_v27 = vunpack.c.h.bf16 %v1011_v4 }
 0x26a   : > { %v520_v41 = vmul.f32 1.442695, %v519_v40  ;;  %v779_v37 = vadd.f32 %v775_v27, %v384_v29 }
 0x26c   : > { %916 = vpow2.f32 %v520_v41 }
 0x276   : > { %v917_v42 = vpop.eup %916 }
 0x277   : > { %v522_v43 = vsel %vm507_vm3, %v917_v42, 0.0 }
 0x278   : > { %523 = vadd.xlane.f32.xlu1 %v522_v43 }
 0x289   : > { %707 = vperm.xlu1 %911, %v703_v13  }
 0x305   : > { %v524_v44 = vpop.xlane.xlu1 %523 }
 0x306   : > { %v525_v45 = vsel %vm511_vm2, %v524_v44, 0.0 }
 0x307   : > { %v526_v46 = vrot.slane %v525_v45, 4 }
 0x309   : > { %v527_v47 = vadd.f32 %v526_v46, %v525_v45  ;;  %v708_v28 = vpop.permute.xlu1 %707 }
 0x30b   : > { %v528_v48 = vrot.slane %v527_v47, 2 }
 0x30d   : > { %v529_v49 = vadd.f32 %v528_v48, %v527_v47 }
 0x30f   : > { %v530_v50 = vrot.slane %v529_v49, 1 }
 0x311   : > { %v531_v51 = vadd.f32 %v530_v50, %v529_v49 }
 0x313   : > { %918 = vrcp.f32 %v531_v51 }
 0x31d   : > { %v919_v52 = vpop.eup %918 }
 0x31e   : > { %v533_v53 = vmul.f32 %v919_v52, %v917_v42 }
 0x320   : > { %v534_v54 = vpack.c.bf16 %v533_v53, %v533_v53 }
 0x322   : > { %890 = vmatmul.mubr.msk.bf16.vlgmr.msra.gmra.mrb[4].mxu0 %vm543_vm1, %v534_v54 }
 0x323   : > { %659 = vmatpush1.bf16.msra.mxu0 %v653_v55  ;;  %690 = vmatprep.mubr.bf16.mxu0 %v928_v0 }
 0x3f5   : > { %v584_v57 = vpop.f32.mrb[4].mxu0 }
 0x3f6   : > { %v585_v58 = vadd.f32 %v870_v56, %v584_v57  ;;  %v891_v59 = vpop.f32.mrb[5].mxu0 }
 0x3f7   : > { %v587_v60 = vpop.f32.mrb[6].mxu0 }
 0x3f8   : > { %v590_v61 = vadd.f32 %v585_v58, %v533_v53  ;;  %v892_v62 = vpop.f32.mrb[7].mxu0 }
 0x3fa   : > { %v591_v63 = vmax.f32 %v590_v61, 0.0 }
 0x3fc   : > { %v593_v1 = vpack.c.bf16 %v591_v63, %v591_v63 }
 0x3fe   : > { %v606_v2 = vsel %vm604_vm5, %v593_v1, 0 }
 0x3ff   : > { %894 = vmatpush3.bf16.msra.mxu1 %v606_v2 }
 0x402   : > { %896 = vmatmul.mubr.msk.bf16.vlgmr.msra.gmra.mrb[4].mxu1 %vm600_vm6, %v592_v5 }
 0x403   : > { %761 = vmatprep.mubr.bf16.mxu1 %v928_v0 }
 0x4d5   : > { %v642_v7 = vpop.f32.mrb[4].mxu1 }
 0x4d6   : > { %v643_v8 = vadd.f32 %v642_v7, %v598_v6  ;;  %v897_v9 = vpop.f32.mrb[5].mxu1 }
 0x4d7   : > { %v645_v10 = vpop.f32.mrb[6].mxu1 }
 0x4d8   : > { %v648_v11 = vpack.c.bf16 %v643_v8, %v643_v8  ;;  %v898_v12 = vpop.f32.mrb[7].mxu1 }
 0x4da   : > { %874 = vmatmul.mubr.msk.bf16.vlgmr.msra.gmra.mrb[8].mxu0 %vm543_vm1, %v648_v11 }
 0x5ad   : > { %v692_v14 = vpop.f32.mrb[8].mxu0 }
 0x5ae   : > { %v701_v15 = vpack.c.bf16 %v692_v14, %v692_v14  ;;  %v694_v16 = vpop.f32.mrb[9].mxu0 }
 0x5af   : > { %v702_v17 = vpack.c.bf16 %v694_v16, %v694_v16  ;;  %v696_v0 = vpop.f32.mrb[10].mxu0 }
 0x5b0   : > { %v724_v18 = vsel %vm604_vm5, %v701_v15, 0  ;;  %v697_v19 = vpop.f32.mrb[11].mxu0 }
 0x5b1   : > { %876 = vmatprep.subr.msk.bf16.mxu1 %vm604_vm5, %v702_v17 }
 0x5b2   : > { %730 = vmatpush1.bf16.msra.mxu1 %v724_v18 }
 0x5b5   : > { %877 = vmatmul.mubr.msk.bf16.vlgmr.msra.gmra.mrb[8].mxu1 %vm600_vm6, %v915_v20 }
 0x688   : > { %v763_v31 = vpop.f32.mrb[8].mxu1 }
 0x689   : > { %v765_v33 = vpop.f32.mrb[9].mxu1  ;;  %v764_v35 = vadd.f32 %v763_v31, %v708_v28 }
 0x68a   : > { %v767_v3 = vpop.f32.mrb[10].mxu1  ;;  %v766_v38 = vadd.f32 %v765_v33, %v708_v28 }
 0x68b   : > { %v768_v39 = vadd.f32 %v767_v3, %v713_v36  ;;  %v769_v40 = vpop.f32.mrb[11].mxu1  ;;  %v780_v41 = vadd.f32 %v776_v30, %v764_v35 }
 0x68c   : > { %v770_v4 = vadd.f32 %v769_v40, %v713_v36  ;;  %v781_v42 = vadd.f32 %v777_v32, %v766_v38 }
 0x68d   : > { %v782_v43 = vadd.f32 %v778_v34, %v768_v39  ;;  %784 = vst [vmem:[%s379_s26] sm:$0xff] %v780_v41 }
 0x68e   : > { %v783_v44 = vadd.f32 %v779_v37, %v770_v4  ;;  %785 = vst [vmem:[%s379_s26 + $0x8] sm:$0xff] %v781_v42 }
 0x68f   : > { %786 = vst [vmem:[%s379_s26 + $0x10] sm:$0xff] %v782_v43 }
 0x690   : > { %787 = vst [vmem:[%s379_s26 + $0x18] sm:$0xff] %v783_v44 }
 0x691 PF: > { %s20_s13 = sadd.s32 1, %s926_s13  }
 0x692   : > { %p17_p4 = scmp.ge.s32.totalorder %s20_s13, 4  }
 0x694   :  { %19 = sbr.rel (!%p17_p4) target bundleno = 1 (0x1), region = 93 }

// kernel: basicblock_forward.4
= control target key start
LH: loop header
LB: loop body
LE: loop exit
PB: predicated region body
PF: predicated region fallthrough
CT: control target
= control target key end

     0   :  { %s3876_s21 = smov 0   ;;  %s4660_s0 = inlined_call_operand.vmem [shape: s32[1,256], index: 0, kind: input, shape index: {}]   ;;  %s4661_s1 = inlined_call_operand.vmem [shape: bf16[2,16,256], index: 1, kind: input, shape index: {}]   ;;  %s4662_s2 = inlined_call_operand.vmem [shape: bf16[9,16,16], index: 2, kind: input, shape index: {}]   ;;  %s4663_s3 = inlined_call_operand.vmem [shape: bf16[9,16,16], index: 3, kind: input, shape index: {}]   ;;  %s4664_s4 = inlined_call_operand.vmem [shape: bf16[9,16,16], index: 4, kind: input, shape index: {}]   ;;  %s4665_s5 = inlined_call_operand.vmem [shape: bf16[9,16,16], index: 5, kind: input, shape index: {}]   ;;  %s4666_s6 = inlined_call_operand.vmem [shape: f32[16,1], index: 6, kind: input, shape index: {}]   ;;  %s4667_s7 = inlined_call_operand.vmem [shape: f32[16,1], index: 7, kind: input, shape index: {}]   ;;  %s4668_s8 = inlined_call_operand.vmem [shape: f32[16,1], index: 8, kind: input, shape index: {}]   ;;  %s4669_s9 = inlined_call_operand.vmem [shape: f32[16,1], index: 9, kind: input, shape index: {}]   ;;  %s4670_s10 = inlined_call_operand.vmem [shape: bf16[16,80], index: 10, kind: input, shape index: {}]   ;;  %s4671_s11 = inlined_call_operand.vmem [shape: f32[16,1], index: 11, kind: input, shape index: {}]   ;;  %s4672_s12 = inlined_call_operand.vmem [shape: bf16[2,16,256], index: 12, kind: output, shape index: {}]  }
   0x1 LB: > { %s3434_s22 = sadd.s32 4294967295, %s3792_s21   ;;  %p3438_p0 = scmp.ge.s32.totalorder %s3792_s21, 1  ;;  %s3792_s21 = sphi %s3876_s21, %s22_s21  }
   0x2   : > { %p362_p1 = scmp.lt.s32.totalorder %s3792_s21, 3 }
   0x4   : > { %p363_p2 = pnand %p3438_p0, %p362_p1 }
   0x5   : > { %v417_v0 = vld [vmem:[%s4660_s0] sm:$0x3] (!%p363_p2)  ;;  %v442_v1 = vlaneseq (!%p363_p2)  ;;  %v3794_v2 = vmov (!%p363_p2), 0   ;;  %p404_p3 = scmp.lt.s32.totalorder (!%p363_p2), %s3434_s22, 1  ;;  %s3795_s29 = smov (!%p363_p2), 113  }
   0x6   : > { %366 = sbr.rel (%p363_p2) target bundleno = 1438 (0x59e), region = 68  ;;  %vm437_vm0 = vcmp.lt.s32.totalorder (!%p363_p2), %v417_v0, 15  ;;  %vm436_vm1 = vcmp.ge.s32.totalorder (!%p363_p2), %v417_v0, 1  ;;  %599 = vmatprep.mubr.bf16.mxu0 (!%p363_p2), %v3794_v2  ;;  %534 = vmatprep.mubr.bf16.mxu1 (!%p363_p2), %v3794_v2  ;;  %s4681_s30 = smov (!%p363_p2), 111   ;;  %vm1867_vm8 = vcmp.ge.s32.totalorder (!%p363_p2), %v417_v0, 3  ;;  %vm1868_vm12 = vcmp.lt.s32.totalorder (!%p363_p2), %v417_v0, 13 }
   0x7   : > { %v443_v3 = vshrl.u32 (!%p363_p2), %v442_v1, 7  ;;  %v610_v4 = vsel (!%p363_p2), %vm437_vm0, 1, %v3794_v2  ;;  %v441_v5 = vsel (!%p363_p2), %vm436_vm1, 1, %v3794_v2  ;;  %3744 = vset.pattern.permute.xlu0 (!%p363_p2), %v3794_v2  ;;  %3745 = vset.pattern.permute.xlu1 (!%p363_p2), %v3794_v2  ;;  %s3797_s13 = smov (!%p363_p2), 127   ;;  %s3798_s14 = smov (!%p363_p2), 1   ;;  %v1872_v19 = vsel (!%p363_p2), %vm1867_vm8, 1, %v3794_v2 }
   0x8   : > { %s3799_s15 = smov (!%p363_p2), 15   ;;  %v2040_v25 = vsel (!%p363_p2), %vm1868_vm12, 1, %v3794_v2  ;;  %vm4697_vm0 = vcmask (!%p363_p2), 924672   ;;  %vm4698_vm1 = vcmask (!%p363_p2), 908288   ;;  %s3800_s16 = smov (!%p363_p2), 17   ;;  %vm4676_vm12 = vcmask (!%p363_p2), 121856  }
   0x9   : > { %v444_v6 = vsub.s32 (!%p363_p2), 0, %v443_v3  ;;  %v448_v7 = vsub.s32 (!%p363_p2), 1, %v443_v3  ;;  %v460_v12 = vsub.s32 (!%p363_p2), 4, %v443_v3  ;;  %s3801_s17 = smov (!%p363_p2), 77   ;;  %s3802_s18 = smov (!%p363_p2), 83   ;;  %v3749_v0 = vld [vmem:[%s4662_s2] sm:$0xff] (!%p363_p2)  }
   0xa   : > { %s3803_s19 = smov (!%p363_p2), 125   ;;  %s3804_s20 = smov (!%p363_p2), 112  }
   0xb   : > { %v614_v8 = vrot.slane (!%p363_p2), %v610_v4, %v444_v6  ;;  %v618_v9 = vrot.slane (!%p363_p2), %v610_v4, %v448_v7  ;;  %v445_v10 = vrot.slane (!%p363_p2), %v441_v5, %v444_v6  ;;  %v449_v11 = vrot.slane (!%p363_p2), %v441_v5, %v448_v7  ;;  %s3805_s23 = smov (!%p363_p2), 16   ;;  %s4689_s24 = smov (!%p363_p2), 3  }
   0xc   : > { %v1876_v20 = vrot.slane (!%p363_p2), %v1872_v19, %v444_v6  ;;  %v1880_v21 = vrot.slane (!%p363_p2), %v1872_v19, %v448_v7  ;;  %v2044_v26 = vrot.slane (!%p363_p2), %v2040_v25, %v444_v6  ;;  %v2048_v27 = vrot.slane (!%p363_p2), %v2040_v25, %v448_v7  ;;  %s3807_s26 = smov (!%p363_p2), 48   ;;  %s4691_s27 = smov (!%p363_p2), 45  }
   0xd   : > { %s4746_s22 = smov (!%p404_p3, %s3434_s22), 1  ;;  %vm619_vm2 = vcmp.eq.s32.totalorder %v614_v8, 1  ;;  %vm620_vm3 = vcmp.eq.s32.totalorder %v618_v9, 1  ;;  %vm450_vm4 = vcmp.eq.s32.totalorder %v445_v10, 1  ;;  %vm451_vm5 = vcmp.eq.s32.totalorder %v449_v11, 1 }
   0xe   : > { %s4678_s25 = sshll.u32 %s4746_s22, 4  ;;  %vm621_vm6 = vmpackc.low %vm620_vm3, %vm619_vm2  ;;  %vm1881_vm9 = vcmp.eq.s32.totalorder %v1876_v20, 1  ;;  %vm1882_vm10 = vcmp.eq.s32.totalorder %v1880_v21, 1  ;;  %vm2049_vm13 = vcmp.eq.s32.totalorder %v2044_v26, 1  ;;  %vm2050_vm14 = vcmp.eq.s32.totalorder %v2048_v27, 1  ;;  %v3751_v26 = vld [vmem:[%s4662_s2 + $0x18] sm:$0xff]  }
   0xf   : > { %s3901_s28 = scalar_lea.vmem %s4661_s1, %s4678_s25  ;;  %v622_v13 = vsel %vm621_vm6, 65537, %v3794_v2  ;;  %vm452_vm7 = vmpackc.low %vm451_vm5, %vm450_vm4  ;;  %vm4702_vm6 = vcmask 1039360   ;;  %s3810_s25 = smov 80  }
  0x10   : > { %v3904_v14 = vrot.slane %v622_v13, %v444_v6  ;;  %v453_v15 = vsel %vm452_vm7, 65537, %v3794_v2  ;;  %v3909_v17 = vrot.slane %v622_v13, %v460_v12  ;;  %vm1883_vm11 = vmpackc.low %vm1882_vm10, %vm1881_vm9  ;;  %v3936_v33 = vld [vmem:[%s3901_s28 + $0x4] ss:$8 sps:$4 sm:$0xff]   ;;  %v3941_v35 = vld [vmem:[%s3901_s28] ss:$8 sps:$4 sm:$0xff]   ;;  %vm4677_vm9 = vcmask 7168  }
  0x11   : > { %v457_v16 = vrot.slane %v453_v15, %v444_v6  ;;  %v461_v18 = vrot.slane %v453_v15, %v460_v12  ;;  %v1884_v22 = vsel %vm1883_vm11, 65537, %v3794_v2  ;;  %vm2051_vm15 = vmpackc.low %vm2050_vm14, %vm2049_vm13  ;;  %v3750_v13 = vld [vmem:[%s4662_s2 + $0x10] sm:$0xff]  }
  0x12   : > { %631 = vrot.lane.b32.xlu1 %v3904_v14, %s3795_s29  ;;  %v3925_v23 = vrot.slane %v1884_v22, %v444_v6  ;;  %v3927_v24 = vrot.slane %v1884_v22, %v460_v12  ;;  %v2052_v28 = vsel %vm2051_vm15, 65537, %v3794_v2  ;;  %vm4679_vm15 = vcmask 138240  }
  0x13   : > { %462 = vrot.lane.b32.xlu0 %v457_v16, %s4681_s30  ;;  %v3931_v29 = vrot.slane %v2052_v28, %v460_v12  ;;  %v3933_v30 = vrot.slane %v2052_v28, %v444_v6 }
  0x16   : > { %633 = vrot.lane.b32.xlu1 %v3909_v17, %s3795_s29 }
  0x17   : > { %464 = vrot.lane.b32.xlu0 %v461_v18, %s4681_s30 }
  0x1a   : > { %717 = vrot.lane.b32.xlu1 %v461_v18, %s3797_s13 }
  0x1b   : > { %715 = vrot.lane.b32.xlu0 %v457_v16, %s3797_s13 }
  0x1e   : > { %862 = vrot.lane.b32.xlu1 %v3909_v17, %s3798_s14 }
  0x1f   : > { %860 = vrot.lane.b32.xlu0 %v3904_v14, %s3798_s14 }
  0x22   : > { %944 = vrot.lane.b32.xlu1 %v461_v18, %s3799_s15 }
  0x23   : > { %942 = vrot.lane.b32.xlu0 %v457_v16, %s3799_s15 }
  0x84   : > { %v632_v31 = vpop.permute.xlu1 %631 }
  0x85   : > { %v463_v32 = vpop.permute.xlu0 %462 }
  0x88   : > { %v3938_v34 = vpop.permute.xlu1 %633 }
  0x89   : > { %v3943_v36 = vpop.permute.xlu0 %464  ;;  %v3947_v37 = vsel %vm4697_vm0, %v632_v31, %v3938_v34  ;;  %vm639_vm5 = vcmp.ne.s16.totalorder %v3938_v34, 0 }
  0x8a   : > { %vm470_vm2 = vcmp.ne.s16.totalorder %v3943_v36, 0  ;;  %v3952_v38 = vsel %vm4698_vm1, %v463_v32, %v3943_v36  ;;  %vm638_vm4 = vcmp.ne.s16.totalorder %v3947_v37, 0  ;;  %v642_v44 = vsel %vm639_vm5, %v3936_v33, 0  ;;  %v2608_v36 = vld [vmem:[%s4668_s8] sm:$0xff]  ;;  %v2609_v37 = vld [vmem:[%s4668_s8 + $0x8] sm:$0xff] }
  0x8b   : > { %v473_v39 = vsel %vm470_vm2, %v3936_v33, 0  ;;  %vm469_vm3 = vcmp.ne.s16.totalorder %v3952_v38, 0  ;;  %v641_v41 = vsel %vm638_vm4, %v3941_v35, 0 }
  0x8c   : > { %557 = vrot.lane.b32.xlu1 %v473_v39, %s3800_s16  ;;  %v472_v40 = vsel %vm469_vm3, %v3941_v35, 0  ;;  %v3971_v42 = vpop.permute.xlu1 %717 }
  0x8d   : > { %555 = vrot.lane.b32.xlu0 %v472_v40, %s3800_s16  ;;  %v716_v43 = vpop.permute.xlu0 %715  ;;  %vm723_vm7 = vcmp.ne.s16.totalorder %v3971_v42, 0 }
  0x8e   : > { %v3980_v45 = vsel %vm4702_vm6, %v716_v43, %v3971_v42  ;;  %v726_v48 = vsel %vm723_vm7, %v3936_v33, 0 }
  0x8f   : > { %vm722_vm8 = vcmp.ne.s16.totalorder %v3980_v45, 0 }
  0x90   : > { %656 = vrot.lane.b32.xlu1 %v641_v41, %s3799_s15  ;;  %v863_v46 = vpop.permute.xlu1 %862  ;;  %v725_v49 = vsel %vm722_vm8, %v3941_v35, 0 }
  0x91   : > { %553 = vrot.lane.b32.xlu0 %v3794_v2, %s3800_s16  ;;  %v3987_v47 = vpop.permute.xlu0 %860 }
  0x92   : > { %v3999_v50 = vsel %vm4677_vm9, %v3987_v47, %v863_v46  ;;  %vm4675_vm11 = vcmp.ne.s16.totalorder %v3987_v47, 0  ;;  %v3752_v46 = vld [vmem:[%s4662_s2 + $0x20] sm:$0xff]  }
  0x93   : > { %vm866_vm10 = vcmp.ne.s16.totalorder %v3999_v50, 0  ;;  %v868_v52 = vsel %vm4675_vm11, %v3941_v35, 0 }
  0x94   : > { %654 = vrot.lane.b32.xlu1 %v3794_v2, %s3799_s15  ;;  %v869_v51 = vsel %vm866_vm10, %v3936_v33, 0  ;;  %v945_v53 = vpop.permute.xlu1 %944 }
  0x95   : > { %658 = vrot.lane.b32.xlu0 %v642_v44, %s3799_s15  ;;  %v4018_v54 = vpop.permute.xlu0 %942 }
  0x96   : > { %v4023_v55 = vsel %vm4676_vm12, %v4018_v54, %v945_v53  ;;  %vm4673_vm14 = vcmp.ne.s16.totalorder %v4018_v54, 0 }
  0x97   : > { %vm4674_vm13 = vcmp.ne.s16.totalorder %v4023_v55, 0  ;;  %v950_v57 = vsel %vm4673_vm14, %v3941_v35, 0  ;;  %vm493_vm14 = vcmask 130048  }
  0x98   : > { %1098 = vrot.lane.b32.xlu1 %v3909_v17, %s3800_s16  ;;  %v951_v56 = vsel %vm4674_vm13, %v3936_v33, 0 }
  0x99   : > { %1096 = vrot.lane.b32.xlu0 %v3904_v14, %s3800_s16 }
  0x9c   : > { %742 = vrot.lane.b32.xlu1 %v726_v48, %s3798_s14 }
  0x9d   : > { %740 = vrot.lane.b32.xlu0 %v725_v49, %s3798_s14 }
  0xa0   : > { %1893 = vrot.lane.b32.xlu1 %v3925_v23, %s3801_s17 }
  0xa1   : > { %738 = vrot.lane.b32.xlu0 %v3794_v2, %s3798_s14 }
  0xa4   : > { %884 = vrot.lane.b32.xlu1 %v869_v51, %s3797_s13 }
  0xa5   : > { %1895 = vrot.lane.b32.xlu0 %v3927_v24, %s3801_s17 }
  0xa8   : > { %882 = vrot.lane.b32.xlu1 %v868_v52, %s3797_s13 }
  0xa9   : > { %886 = vrot.lane.b32.xlu0 %v3794_v2, %s3797_s13 }
  0xac   : > { %2063 = vrot.lane.b32.xlu1 %v3931_v29, %s3802_s18 }
  0xad   : > { %2061 = vrot.lane.b32.xlu0 %v3933_v30, %s3802_s18 }
  0xb0   : > { %968 = vrot.lane.b32.xlu1 %v3794_v2, %s3795_s29 }
  0xb1   : > { %966 = vrot.lane.b32.xlu0 %v951_v56, %s3795_s29 }
  0xb4   : > { %2145 = vrot.lane.b32.xlu1 %v3925_v23, %s3803_s19 }
  0xb5   : > { %964 = vrot.lane.b32.xlu0 %v950_v57, %s3795_s29 }
  0xb8   : > { %1037 = vrot.lane.b32.xlu1 %v3936_v33, %s3804_s20 }
  0xb9   : > { %2147 = vrot.lane.b32.xlu0 %v3927_v24, %s3803_s19 }
  0xbc   : > { %1035 = vrot.lane.b32.xlu1 %v3941_v35, %s3804_s20 }
  0xbd   : > { %1039 = vrot.lane.b32.xlu0 %v3794_v2, %s3804_s20 }
  0xc0   : > { %491 = vrot.lane.b32.xlu1 %v3936_v33, %s3805_s23 }
  0xc1   : > { %489 = vrot.lane.b32.xlu0 %v3941_v35, %s3805_s23 }
  0xc4   : > { %1122 = vrot.lane.b32.xlu1 %v3794_v2, %s4681_s30 }
  0xc5   : > { %487 = vrot.lane.b32.xlu0 %v3794_v2, %s3805_s23 }
  0xfe   : > { %v558_v58 = vpop.permute.xlu1 %557 }
  0xff   : > { %v556_v59 = vpop.permute.xlu0 %555 }
 0x100   : > { %v561_v60 = vsel %vm4679_vm15, %v556_v59, %v558_v58 }
 0x101   : > { %567 = vmatprep.subr.bf16.mxu0 %v561_v60 }
 0x102   : > { %v657_v61 = vpop.permute.xlu1 %656 }
 0x103   : > { %v554_v62 = vpop.permute.xlu0 %553 }
 0x104   : > { %v560_v63 = vsel %vm4679_vm15, %v554_v62, %v556_v59 }
 0x105   : > { %568 = vmatpush1.bf16.msra.mxu0 %v560_v63 }
 0x106   : > { %v655_v1 = vpop.permute.xlu1 %654 }
 0x107   : > { %v659_v3 = vpop.permute.xlu0 %658  ;;  %v661_v5 = vsel %vm4676_vm12, %v655_v1, %v657_v61 }
 0x108   : > { %3450 = vmatmul.mubr.msk.bf16.vlgmr.msra.gmra.mrb[0].mxu0 %vm493_vm14, %v3749_v0  ;;  %v662_v4 = vsel %vm4676_vm12, %v657_v61, %v659_v3  ;;  %vm1897_vm12 = vcmask 629760   ;;  %v3753_v61 = vld [vmem:[%s4662_s2 + $0x28] sm:$0xff]  }
 0x109   : > { %668 = vmatprep.subr.bf16.mxu0 %v662_v4  ;;  %700 = vmatprep.mubr.bf16.mxu0 %v3794_v2  ;;  %v3756_v3 = vld [vmem:[%s4662_s2 + $0x8] sm:$0xff]   ;;  %v3754_v4 = vld [vmem:[%s4662_s2 + $0x30] sm:$0xff]  }
 0x10a   : > { %669 = vmatpush1.bf16.msra.mxu0 %v661_v5  ;;  %v1099_v6 = vpop.permute.xlu1 %1098 }
 0x10b   : > { %v4070_v7 = vpop.permute.xlu0 %1096 }
 0x10c   : > { %vm4680_vm13 = vcmp.ne.s16.totalorder %v4070_v7, 0  ;;  %v4075_v8 = vsel %vm4679_vm15, %v4070_v7, %v1099_v6  ;;  %v3755_v6 = vld [vmem:[%s4662_s2 + $0x38] sm:$0xff]  }
 0x10d   : > { %v1104_v9 = vsel %vm4680_vm13, %v3941_v35, 0  ;;  %vm4684_vm11 = vcmp.ne.s16.totalorder %v4075_v8, 0  ;;  %vm2065_vm13 = vcmask 678912  }
 0x10e   : > { %1118 = vrot.lane.b32.xlu1 %v1104_v9, %s4681_s30  ;;  %v1105_v10 = vsel %vm4684_vm11, %v3936_v33, 0  ;;  %v743_v11 = vpop.permute.xlu1 %742 }
 0x10f   : > { %1120 = vrot.lane.b32.xlu0 %v1105_v10, %s4681_s30  ;;  %v741_v12 = vpop.permute.xlu0 %740  ;;  %s4693_s30 = smov 51  }
 0x110   : > { %v746_v14 = vsel %vm4677_vm9, %v741_v12, %v743_v11 }
 0x111   : > { %752 = vmatprep.subr.bf16.mxu0 %v746_v14  ;;  %v3757_v14 = vld [vmem:[%s4662_s2 + $0x40] sm:$0xff]  }
 0x112   : > { %2292 = vrot.lane.b32.xlu1 %v3931_v29, %s4689_s24  ;;  %v1894_v15 = vpop.permute.xlu1 %1893 }
 0x113   : > { %2290 = vrot.lane.b32.xlu0 %v3933_v30, %s4689_s24  ;;  %v739_v16 = vpop.permute.xlu0 %738 }
 0x114   : > { %3454 = vmatmul.mubr.msk.bf16.vlgmr.msra.gmra.mrb[0].mxu0 %vm493_vm14, %v3750_v13  ;;  %v745_v17 = vsel %vm4677_vm9, %v739_v16, %v741_v12 }
 0x115   : > { %753 = vmatpush1.bf16.msra.mxu0 %v745_v17  ;;  %784 = vmatprep.mubr.bf16.mxu0 %v3794_v2 }
 0x116   : > { %1922 = vrot.lane.b32.xlu1 %v3936_v33, %s3807_s26  ;;  %v885_v18 = vpop.permute.xlu1 %884  ;;  %810 = vmatprep.subr.bf16.mxu0 %v3936_v33 }
 0x117   : > { %1920 = vrot.lane.b32.xlu0 %v3941_v35, %s3807_s26  ;;  %v4102_v19 = vpop.permute.xlu0 %1895 }
 0x118   : > { %v4106_v20 = vsel %vm1897_vm12, %v1894_v15, %v4102_v19  ;;  %vm4685_vm15 = vcmp.ne.s16.totalorder %v4102_v19, 0 }
 0x119   : > { %vm4683_vm9 = vcmp.ne.s16.totalorder %v4106_v20, 0  ;;  %v1904_v31 = vsel %vm4685_vm15, %v3936_v33, 0  ;;  %vm4705_vm15 = vcmask 1022976  }
 0x11a   : > { %2372 = vrot.lane.b32.xlu1 %v3925_v23, %s4691_s27  ;;  %v883_v21 = vpop.permute.xlu1 %882  ;;  %v1903_v22 = vsel %vm4683_vm9, %v3941_v35, 0 }
 0x11b   : > { %1918 = vrot.lane.b32.xlu0 %v3794_v2, %s3807_s26  ;;  %v887_v25 = vpop.permute.xlu0 %886  ;;  %v888_v52 = vsel %vm4702_vm6, %v883_v21, %v885_v18 }
 0x11c   : > { %v889_v27 = vsel %vm4702_vm6, %v885_v18, %v887_v25 }
 0x11e   : > { %1985 = vrot.lane.b32.xlu1 %v1903_v22, %s4693_s30  ;;  %v4121_v23 = vpop.permute.xlu1 %2063 }
 0x11f   : > { %2374 = vrot.lane.b32.xlu0 %v3927_v24, %s4691_s27  ;;  %v2062_v28 = vpop.permute.xlu0 %2061  ;;  %vm4686_vm9 = vcmp.ne.s16.totalorder %v4121_v23, 0 }
 0x120   : > { %3458 = vmatmul.mubr.msk.bf16.vlgmr.msra.gmra.mrb[0].mxu0 %vm493_vm14, %v3751_v26  ;;  %v4132_v32 = vsel %vm2065_vm13, %v2062_v28, %v4121_v23  ;;  %v2072_v39 = vsel %vm4686_vm9, %v3936_v33, 0 }
 0x121   : > { %811 = vmatpush1.bf16.msra.mxu0 %v3941_v35  ;;  %vm4687_vm11 = vcmp.ne.s16.totalorder %v4132_v32, 0  ;;  %842 = vmatprep.mubr.bf16.mxu0 %v3794_v2 }
 0x122   : > { %1983 = vrot.lane.b32.xlu1 %v3794_v2, %s4693_s30  ;;  %895 = vmatprep.subr.bf16.mxu0 %v889_v27  ;;  %v969_v24 = vpop.permute.xlu1 %968  ;;  %v2071_v41 = vsel %vm4687_vm11, %v3941_v35, 0 }
 0x123   : > { %1987 = vrot.lane.b32.xlu0 %v1904_v31, %s4693_s30  ;;  %v967_v40 = vpop.permute.xlu0 %966 }
 0x124   : > { %v971_v49 = vsel %vm4697_vm0, %v967_v40, %v969_v24  ;;  %v3758_v24 = vld [vmem:[%s4664_s4 + $0x8] sm:$0xff]  }
 0x126   : > { %2088 = vrot.lane.b32.xlu1 %v2072_v39, %s4691_s27  ;;  %v2146_v43 = vpop.permute.xlu1 %2145 }
 0x127   : > { %2086 = vrot.lane.b32.xlu0 %v2071_v41, %s4691_s27  ;;  %v965_v44 = vpop.permute.xlu0 %964 }
 0x128   : > { %v970_v62 = vsel %vm4697_vm0, %v965_v44, %v967_v40  ;;  %vm4701_vm0 = vcmask 392192  }
 0x12a   : > { %2526 = vrot.lane.b32.xlu1 %v3933_v30, %s4693_s30  ;;  %v1038_v48 = vpop.permute.xlu1 %1037 }
 0x12b   : > { %2084 = vrot.lane.b32.xlu0 %v3794_v2, %s4691_s27  ;;  %v4157_v51 = vpop.permute.xlu0 %2147 }
 0x12c   : > { %3462 = vmatmul.mubr.msk.bf16.vlgmr.msra.gmra.mrb[0].mxu0 %vm493_vm14, %v3752_v46  ;;  %v4163_v53 = vsel %vm4705_vm15, %v2146_v43, %v4157_v51  ;;  %vm4696_vm11 = vcmp.ne.s16.totalorder %v4157_v51, 0 }
 0x12d   : > { %896 = vmatpush1.bf16.msra.mxu0 %v888_v52  ;;  %927 = vmatprep.mubr.bf16.mxu0 %v3794_v2  ;;  %vm4688_vm9 = vcmp.ne.s16.totalorder %v4163_v53, 0  ;;  %v2156_v58 = vsel %vm4696_vm11, %v3936_v33, 0 }
 0x12e   : > { %977 = vmatprep.subr.bf16.mxu0 %v971_v49  ;;  %v2155_v30 = vsel %vm4688_vm9, %v3941_v35, 0  ;;  %v1036_v56 = vpop.permute.xlu1 %1035  ;;  %vm4695_vm9 = vcmask 916480  }
 0x12f   : > { %2528 = vrot.lane.b32.xlu0 %v3931_v29, %s4693_s30  ;;  %2170 = vrot.lane.b32.xlu1 %v2155_v30, %s4689_s24  ;;  %v1040_v57 = vpop.permute.xlu0 %1039  ;;  %v1042_v5 = vsel %vm4695_vm9, %v1036_v56, %v1038_v48 }
 0x130   : > { %v1043_v63 = vsel %vm4695_vm9, %v1038_v48, %v1040_v57  ;;  %vm2174_vm9 = vcmask 23552  }
 0x132   : > { %v492_v59 = vpop.permute.xlu1 %491 }
 0x133   : > { %2172 = vrot.lane.b32.xlu0 %v2156_v58, %s4689_s24  ;;  %2168 = vrot.lane.b32.xlu1 %v3794_v2, %s4689_s24  ;;  %v490_v60 = vpop.permute.xlu0 %489  ;;  %v3759_v58 = vld [vmem:[%s4664_s4] sm:$0xff]  }
 0x134   : > { %v495_v29 = vsel %vm493_vm14, %v490_v60, %v492_v59 }
 0x135   : > { %502 = vmatprep.subr.bf16.mxu1 %v495_v29  ;;  %v1178_v29 = vld [vmem:[%s4666_s6] sm:$0xff] }
 0x136   : > { %v1123_v9 = vpop.permute.xlu1 %1122 }
 0x137   : > { %v488_v0 = vpop.permute.xlu0 %487  ;;  %2316 = vrot.lane.b32.xlu1 %v3794_v2, %s3803_s19 }
 0x138   : > { %3466 = vmatmul.mubr.msk.bf16.vlgmr.msra.gmra.mrb[0].mxu0 %vm493_vm14, %v3753_v61  ;;  %v494_v1 = vsel %vm493_vm14, %v488_v0, %v490_v60 }
 0x139   : > { %978 = vmatpush1.bf16.msra.mxu0 %v970_v62  ;;  %1009 = vmatprep.mubr.bf16.mxu0 %v3794_v2 }
 0x13a   : > { %1049 = vmatprep.subr.bf16.mxu0 %v1043_v63  ;;  %503 = vmatpush1.bf16.msra.mxu1 %v494_v1 }
 0x13d   : > { %3448 = vmatmul.mubr.msk.bf16.vlgmr.msra.gmra.mrb[0].mxu1 %vm493_vm14, %v3756_v3 }
 0x13e   : > { %1266 = vmatprep.mubr.bf16.mxu1 %v3794_v2 }
 0x144   : > { %3470 = vmatmul.mubr.msk.bf16.vlgmr.msra.gmra.mrb[0].mxu0 %vm493_vm14, %v3754_v4 }
 0x145   : > { %1050 = vmatpush1.bf16.msra.mxu0 %v1042_v5  ;;  %1081 = vmatprep.mubr.bf16.mxu0 %v3794_v2 }
 0x150   : > { %3474 = vmatmul.mubr.msk.bf16.vlgmr.msra.gmra.mrb[0].mxu0 %vm493_vm14, %v3755_v6  ;;  %v3760_v6 = vld [vmem:[%s4664_s4 + $0x10] sm:$0xff]  }
 0x151   : > { %1163 = vmatprep.mubr.bf16.mxu0 %v3794_v2 }
 0x180   : > { %v1119_v10 = vpop.permute.xlu1 %1118 }
 0x181   : > { %v1121_v11 = vpop.permute.xlu0 %1120 }
 0x182   : > { %v1124_v12 = vsel %vm4698_vm1, %v1119_v10, %v1121_v11  ;;  %v1125_v13 = vsel %vm4698_vm1, %v1121_v11, %v1123_v9  ;;  %v1179_v11 = vld [vmem:[%s4666_s6 + $0x8] sm:$0xff] }
 0x183   : > { %1131 = vmatprep.subr.bf16.mxu0 %v1125_v13  ;;  %v3762_v13 = vld [vmem:[%s4664_s4 + $0x20] sm:$0xff]  }
 0x184   : > { %1132 = vmatpush1.bf16.msra.mxu0 %v1124_v12  ;;  %v2293_v15 = vpop.permute.xlu1 %2292  ;;  %v3761_v12 = vld [vmem:[%s4664_s4 + $0x18] sm:$0xff]  }
 0x185   : > { %v4212_v16 = vpop.permute.xlu0 %2290 }
 0x186   : > { %v4216_v17 = vsel %vm2174_vm9, %v4212_v16, %v2293_v15  ;;  %vm4700_vm1 = vcmp.ne.s16.totalorder %v4212_v16, 0 }
 0x187   : > { %vm4699_vm11 = vcmp.ne.s16.totalorder %v4216_v17, 0  ;;  %3478 = vmatmul.mubr.msk.bf16.vlgmr.msra.gmra.mrb[0].mxu0 %vm493_vm14, %v3757_v14  ;;  %v2298_v27 = vsel %vm4700_vm1, %v3941_v35, 0  ;;  %vm1989_vm1 = vcmask 416768  }
 0x188   : > { %v1923_v18 = vpop.permute.xlu1 %1922  ;;  %v2299_v21 = vsel %vm4699_vm11, %v3936_v33, 0  ;;  %1964 = vmatprep.mubr.bf16.mxu0 %v3794_v2  ;;  %vm4704_vm11 = vcmask 367616  }
 0x189   : > { %2314 = vrot.lane.b32.xlu0 %v2299_v21, %s3803_s19  ;;  %v1921_v22 = vpop.permute.xlu0 %1920 }
 0x18a   : > { %v1926_v25 = vsel %vm4701_vm0, %v1921_v22, %v1923_v18 }
 0x18b   : > { %1932 = vmatprep.subr.bf16.mxu0 %v1926_v25  ;;  %v3763_v25 = vld [vmem:[%s4664_s4 + $0x28] sm:$0xff]  }
 0x18c   : > { %v4227_v26 = vpop.permute.xlu1 %2372 }
 0x18d   : > { %2312 = vrot.lane.b32.xlu0 %v2298_v27, %s3803_s19  ;;  %v1919_v28 = vpop.permute.xlu0 %1918  ;;  %vm4703_vm6 = vcmp.ne.s16.totalorder %v4227_v26, 0 }
 0x18e   : > { %v1925_v31 = vsel %vm4701_vm0, %v1919_v28, %v1921_v22  ;;  %v2380_v52 = vsel %vm4703_vm6, %v3941_v35, 0 }
 0x18f   : > { %1933 = vmatpush1.bf16.msra.mxu0 %v1925_v31 }
 0x190   : > { %v1986_v39 = vpop.permute.xlu1 %1985 }
 0x191   : > { %v2375_v40 = vpop.permute.xlu0 %2374  ;;  %2398 = vrot.lane.b32.xlu0 %v3794_v2, %s3802_s18 }
 0x192   : > { %v4241_v41 = vsel %vm4704_vm11, %v4227_v26, %v2375_v40  ;;  %3516 = vmatmul.mubr.msk.bf16.vlgmr.msra.gmra.mrb[4].mxu0 %vm493_vm14, %v3758_v24 }
 0x193   : > { %vm2378_vm0 = vcmp.ne.s16.totalorder %v4241_v41, 0  ;;  %2029 = vmatprep.mubr.bf16.mxu0 %v3794_v2 }
 0x194   : > { %v1984_v43 = vpop.permute.xlu1 %1983  ;;  %v2381_v44 = vsel %vm2378_vm0, %v3936_v33, 0 }
 0x195   : > { %v1990_v46 = vsel %vm1989_vm1, %v1984_v43, %v1986_v39  ;;  %2396 = vrot.lane.b32.xlu1 %v2381_v44, %s3802_s18  ;;  %v1988_v48 = vpop.permute.xlu0 %1987  ;;  %2467 = vrot.lane.b32.xlu0 %v3936_v33, %s3810_s25  ;;  %v3764_v43 = vld [vmem:[%s4664_s4 + $0x30] sm:$0xff]  }
 0x196   : > { %v1991_v49 = vsel %vm1989_vm1, %v1986_v39, %v1988_v48 }
 0x197   : > { %1997 = vmatprep.subr.bf16.mxu0 %v1991_v49 }
 0x198   : > { %1998 = vmatpush1.bf16.msra.mxu0 %v1990_v46  ;;  %v2089_v30 = vpop.permute.xlu1 %2088 }
 0x199   : > { %2394 = vrot.lane.b32.xlu1 %v2380_v52, %s3802_s18  ;;  %v2087_v56 = vpop.permute.xlu0 %2086  ;;  %2465 = vrot.lane.b32.xlu0 %v3941_v35, %s3810_s25 }
 0x19a   : > { %v2092_v57 = vsel %vm4704_vm11, %v2087_v56, %v2089_v30 }
 0x19b   : > { %2098 = vmatprep.subr.bf16.mxu0 %v2092_v57 }
 0x19c   : > { %v4267_v60 = vpop.permute.xlu1 %2526 }
 0x19d   : > { %2469 = vrot.lane.b32.xlu1 %v3794_v2, %s3810_s25  ;;  %v2085_v59 = vpop.permute.xlu0 %2084  ;;  %2552 = vrot.lane.b32.xlu0 %v3794_v2, %s3801_s17  ;;  %vm2531_vm6 = vcmp.ne.s16.totalorder %v4267_v60, 0 }
 0x19e   : > { %v2091_v61 = vsel %vm4704_vm11, %v2085_v59, %v2087_v56  ;;  %3518 = vmatmul.mubr.msk.bf16.vlgmr.msra.gmra.mrb[4].mxu0 %vm493_vm14, %v3759_v58  ;;  %v2534_v5 = vsel %vm2531_vm6, %v3941_v35, 0 }
 0x19f   : > { %2099 = vmatpush1.bf16.msra.mxu0 %v2091_v61  ;;  %2130 = vmatprep.mubr.bf16.mxu0 %v3794_v2  ;;  %v3765_v61 = vld [vmem:[%s4664_s4 + $0x38] sm:$0xff]  }
 0x1a1   : > { %v2529_v62 = vpop.permute.xlu0 %2528  ;;  %1182 = vperm.xlu0 %3744, %v1178_v29   ;;  %v2171_v63 = vpop.permute.xlu1 %2170 }
 0x1a2   : > { %v4279_v0 = vsel %vm1989_vm1, %v4267_v60, %v2529_v62  ;;  %v3273_v60 = vld [vmem:[%s4669_s9] sm:$0xff] }
 0x1a3   : > { %vm2532_vm11 = vcmp.ne.s16.totalorder %v4279_v0, 0  ;;  %v1843_v0 = vld [vmem:[%s4667_s7] sm:$0xff] }
 0x1a4   : > { %v2535_v1 = vsel %vm2532_vm11, %v3936_v33, 0 }
 0x1a5   : > { %2550 = vrot.lane.b32.xlu1 %v2535_v1, %s3801_s17  ;;  %v2173_v3 = vpop.permute.xlu0 %2172  ;;  %v2169_v4 = vpop.permute.xlu1 %2168  ;;  %v3766_v1 = vld [vmem:[%s4664_s4 + $0x40] sm:$0xff]  }
 0x1a6   : > { %v2176_v9 = vsel %vm2174_vm9, %v2171_v63, %v2173_v3  ;;  %v2175_v10 = vsel %vm2174_vm9, %v2169_v4, %v2171_v63 }
 0x1a7   : > { %2182 = vmatprep.subr.bf16.mxu0 %v2176_v9 }
 0x1a9   : > { %2548 = vrot.lane.b32.xlu1 %v2534_v5, %s3801_s17  ;;  %v2317_v14 = vpop.permute.xlu1 %2316 }
 0x1aa   : > { %3522 = vmatmul.mubr.msk.bf16.vlgmr.msra.gmra.mrb[4].mxu0 %vm493_vm14, %v3760_v6 }
 0x1ab   : > { %2183 = vmatpush1.bf16.msra.mxu0 %v2175_v10  ;;  %2214 = vmatprep.mubr.bf16.mxu0 %v3794_v2 }
 0x1ac   : > { %2240 = vmatprep.subr.bf16.mxu0 %v3936_v33 }
 0x1ad   : > { %1187 = vperm.xlu1 %3745, %v1179_v11  }
 0x1b6   : > { %3526 = vmatmul.mubr.msk.bf16.vlgmr.msra.gmra.mrb[4].mxu0 %vm493_vm14, %v3761_v12 }
 0x1b7   : > { %2241 = vmatpush1.bf16.msra.mxu0 %v3941_v35  ;;  %2272 = vmatprep.mubr.bf16.mxu0 %v3794_v2 }
 0x1c2   : > { %3530 = vmatmul.mubr.msk.bf16.vlgmr.msra.gmra.mrb[4].mxu0 %vm493_vm14, %v3762_v13 }
 0x1c3   : > { %2357 = vmatprep.mubr.bf16.mxu0 %v3794_v2 }
 0x1fb   : > { %v2315_v15 = vpop.permute.xlu0 %2314 }
 0x1fc   : > { %v2319_v18 = vsel %vm4705_vm15, %v2315_v15, %v2317_v14 }
 0x1fd   : > { %2325 = vmatprep.subr.bf16.mxu0 %v2319_v18 }
 0x1ff   : > { %v2313_v21 = vpop.permute.xlu0 %2312 }
 0x200   : > { %v2318_v22 = vsel %vm4705_vm15, %v2313_v21, %v2315_v15  ;;  %vm2471_vm15 = vcmask 654336  }
 0x201   : > { %2326 = vmatpush1.bf16.msra.mxu0 %v2318_v22 }
 0x203   : > { %v2399_v27 = vpop.permute.xlu0 %2398 }
 0x204   : > { %3534 = vmatmul.mubr.msk.bf16.vlgmr.msra.gmra.mrb[4].mxu0 %vm493_vm14, %v3763_v25 }
 0x205   : > { %2439 = vmatprep.mubr.bf16.mxu0 %v3794_v2 }
 0x207   : > { %v2397_v28 = vpop.permute.xlu1 %2396  ;;  %v2468_v31 = vpop.permute.xlu0 %2467 }
 0x208   : > { %v2401_v24 = vsel %vm2065_vm13, %v2397_v28, %v2399_v27 }
 0x209   : > { %2407 = vmatprep.subr.bf16.mxu0 %v2401_v24 }
 0x20b   : > { %v2395_v39 = vpop.permute.xlu1 %2394  ;;  %v2466_v44 = vpop.permute.xlu0 %2465 }
 0x20c   : > { %v2400_v40 = vsel %vm2065_vm13, %v2395_v39, %v2397_v28  ;;  %v2472_v48 = vsel %vm2471_vm15, %v2466_v44, %v2468_v31 }
 0x20d   : > { %2408 = vmatpush1.bf16.msra.mxu0 %v2400_v40 }
 0x20f   : > { %v2470_v46 = vpop.permute.xlu1 %2469  ;;  %v2553_v58 = vpop.permute.xlu0 %2552 }
 0x210   : > { %3538 = vmatmul.mubr.msk.bf16.vlgmr.msra.gmra.mrb[4].mxu0 %vm493_vm14, %v3764_v43  ;;  %v2473_v49 = vsel %vm2471_vm15, %v2468_v31, %v2470_v46  ;;  %v536_v52 = vpop.f32.mrb[0].mxu1 }
 0x211   : > { %2479 = vmatprep.subr.bf16.mxu0 %v2473_v49  ;;  %2511 = vmatprep.mubr.bf16.mxu0 %v3794_v2  ;;  %v538_v30 = vpop.f32.mrb[1].mxu1 }
 0x212   : > { %2480 = vmatpush1.bf16.msra.mxu0 %v2472_v48  ;;  %v540_v56 = vpop.f32.mrb[2].mxu1 }
 0x213   : > { %v542_v57 = vpop.f32.mrb[3].mxu1 }
 0x217   : > { %v2551_v59 = vpop.permute.xlu1 %2550 }
 0x218   : > { %v2555_v29 = vsel %vm1897_vm12, %v2551_v59, %v2553_v58 }
 0x219   : > { %2561 = vmatprep.subr.bf16.mxu0 %v2555_v29 }
 0x21b   : > { %v2549_v62 = vpop.permute.xlu1 %2548 }
 0x21c   : > { %3542 = vmatmul.mubr.msk.bf16.vlgmr.msra.gmra.mrb[4].mxu0 %vm493_vm14, %v3765_v61  ;;  %v2554_v63 = vsel %vm1897_vm12, %v2549_v62, %v2551_v59  ;;  %v3768_v62 = vld [vmem:[%s4663_s3] sm:$0xff]  }
 0x21d   : > { %2562 = vmatpush1.bf16.msra.mxu0 %v2554_v63  ;;  %2593 = vmatprep.mubr.bf16.mxu0 %v3794_v2 }
 0x21e   : > { %3318 = vmatprep.subr.bf16.mxu0 %v3936_v33 }
 0x220   : > { %v1183_v4 = vpop.permute.xlu0 %1182 }
 0x228   : > { %3546 = vmatmul.mubr.msk.bf16.vlgmr.msra.gmra.mrb[4].mxu0 %vm493_vm14, %v3766_v1 }
 0x229   : > { %3319 = vmatpush1.bf16.msra.mxu0 %v3941_v35  ;;  %3350 = vmatprep.mubr.bf16.mxu0 %v3794_v2 }
 0x22c   : > { %v1188_v11 = vpop.permute.xlu1 %1187 }
 0x25a   : > { %v1165_v3 = vpop.f32.mrb[0].mxu0 }
 0x25b   : > { %v3591_v5 = vadd.f32 %v1165_v3, %v536_v52  ;;  %v1167_v6 = vpop.f32.mrb[1].mxu0  ;;  %v3769_v3 = vld [vmem:[%s4663_s3 + $0x10] sm:$0xff]  }
 0x25c   : > { %v3592_v9 = vadd.f32 %v1167_v6, %v538_v30  ;;  %v1169_v10 = vpop.f32.mrb[2].mxu0  ;;  %v3767_v30 = vld [vmem:[%s4663_s3 + $0x8] sm:$0xff]  }
 0x25d   : > { %v3593_v12 = vadd.f32 %v1169_v10, %v540_v56  ;;  %v1190_v13 = vadd.f32 %v3591_v5, %v1183_v4  ;;  %v1171_v33 = vpop.f32.mrb[3].mxu0 }
 0x25e   : > { %v1191_v14 = vadd.f32 %v3592_v9, %v1183_v4  ;;  %v3594_v15 = vadd.f32 %v1171_v33, %v542_v57 }
 0x25f   : > { %v1192_v18 = vadd.f32 %v3593_v12, %v1188_v11  ;;  %v1194_v22 = vmax.f32 %v1190_v13, 0.0 }
 0x260   : > { %v1193_v21 = vadd.f32 %v3594_v15, %v1188_v11  ;;  %v1195_v27 = vmax.f32 %v1191_v14, 0.0 }
 0x261   : > { %v1196_v25 = vmax.f32 %v1192_v18, 0.0 }
 0x262   : > { %v1197_v35 = vmax.f32 %v1193_v21, 0.0 }
 0x263   : > { %v4343_v28 = vpack.c.bf16 %v1196_v25, %v1194_v22 }
 0x264   : > { %v4345_v31 = vpack.c.bf16 %v1197_v35, %v1195_v27 }
 0x265   : > { %1223 = vrot.lane.b32.xlu1 %v4343_v28, %s3805_s23  ;;  %v1206_v24 = vsel %vm469_vm3, %v4343_v28, 0  ;;  %v1342_v40 = vsel %vm638_vm4, %v4343_v28, 0  ;;  %v1416_v34 = vsel %vm722_vm8, %v4343_v28, 0  ;;  %vm4707_vm3 = vcmp.ne.s16.totalorder %v4023_v55, 0 }
 0x266   : > { %1225 = vrot.lane.b32.xlu0 %v4345_v31, %s3805_s23  ;;  %3320 = vmatprep.subr.bf16.mxu0 %v4345_v31  ;;  %v1207_v39 = vsel %vm470_vm2, %v4345_v31, 0  ;;  %v1343_v38 = vsel %vm639_vm5, %v4345_v31, 0  ;;  %v1417_v43 = vsel %vm723_vm7, %v4345_v31, 0  ;;  %v1551_v44 = vsel %vm866_vm10, %v4345_v31, 0 }
 0x267   : > { %3321 = vmatpush1.bf16.msra.mxu0 %v4343_v28  ;;  %vm4706_vm2 = vcmp.ne.s16.totalorder %v3987_v47, 0  ;;  %v1625_v42 = vsel %vm4707_vm3, %v4345_v31, 0  ;;  %vm4708_vm4 = vcmp.ne.s16.totalorder %v4018_v54, 0  ;;  %vm4709_vm5 = vcmp.ne.s16.totalorder %v4075_v8, 0 }
 0x268   : > { %v1550_v45 = vsel %vm4706_vm2, %v4343_v28, 0  ;;  %v1624_v50 = vsel %vm4708_vm4, %v4343_v28, 0  ;;  %v1770_v47 = vsel %vm4709_vm5, %v4345_v31, 0  ;;  %vm4711_vm7 = vcmp.ne.s16.totalorder %v4070_v7, 0 }
 0x269   : > { %1221 = vrot.lane.b32.xlu1 %v3794_v2, %s3805_s23  ;;  %v1769_v54 = vsel %vm4711_vm7, %v4343_v28, 0  ;;  %vm4712_vm8 = vcmask 138240   ;;  %vm4714_vm2 = vcmask 121856   ;;  %vm4716_vm4 = vcmask 7168   ;;  %s4744_s23 = sshll.u32 %s4746_s22, 4 }
 0x26a   : > { %1287 = vrot.lane.b32.xlu0 %v1206_v24, %s3800_s16  ;;  %vm4713_vm10 = vmmov %vm4712_vm8  ;;  %v3770_v24 = vld [vmem:[%s4663_s3 + $0x18] sm:$0xff]   ;;  %vm4718_vm7 = vcmask 1039360   ;;  %s413_s27 = scalar_lea.vmem %s4672_s12, %s4744_s23 }
 0x26b   : > { %vm4715_vm3 = vmmov %vm4714_vm2 }
 0x26c   : > { %vm4717_vm5 = vmmov %vm4716_vm4 }
 0x26d   : > { %1289 = vrot.lane.b32.xlu1 %v1207_v39, %s3800_s16 }
 0x26e   : > { %1285 = vrot.lane.b32.xlu0 %v3794_v2, %s3800_s16  ;;  %s4720_s16 = smov 51  }
 0x271   : > { %1357 = vrot.lane.b32.xlu1 %v1342_v40, %s3799_s15 }
 0x272   : > { %1359 = vrot.lane.b32.xlu0 %v1343_v38, %s3799_s15 }
 0x275   : > { %1355 = vrot.lane.b32.xlu1 %v3794_v2, %s3799_s15 }
 0x276   : > { %2612 = vperm.xlu0 %3744, %v2608_v36  }
 0x279   : > { %2617 = vperm.xlu1 %3745, %v2609_v37  }
 0x27a   : > { %1431 = vrot.lane.b32.xlu0 %v1416_v34, %s3798_s14 }
 0x27d   : > { %1433 = vrot.lane.b32.xlu1 %v1417_v43, %s3798_s14 }
 0x27e   : > { %1429 = vrot.lane.b32.xlu0 %v3794_v2, %s3798_s14 }
 0x281   : > { %1566 = vrot.lane.b32.xlu1 %v1551_v44, %s3797_s13 }
 0x282   : > { %1568 = vrot.lane.b32.xlu0 %v3794_v2, %s3797_s13 }
 0x285   : > { %1564 = vrot.lane.b32.xlu1 %v1550_v45, %s3797_s13  ;;  %s4710_s13 = smov 111   ;;  %v3771_v45 = vld [vmem:[%s4663_s3 + $0x20] sm:$0xff]  }
 0x286   : > { %1640 = vrot.lane.b32.xlu0 %v1625_v42, %s3795_s29 }
 0x289   : > { %1642 = vrot.lane.b32.xlu1 %v3794_v2, %s3795_s29 }
 0x28a   : > { %1638 = vrot.lane.b32.xlu0 %v1624_v50, %s3795_s29  ;;  %s4728_s29 = smov 3  }
 0x28d   : > { %1711 = vrot.lane.b32.xlu1 %v4345_v31, %s3804_s20 }
 0x28e   : > { %1713 = vrot.lane.b32.xlu0 %v3794_v2, %s3804_s20 }
 0x291   : > { %1709 = vrot.lane.b32.xlu1 %v4343_v28, %s3804_s20 }
 0x292   : > { %1785 = vrot.lane.b32.xlu0 %v1770_v47, %s4710_s13 }
 0x295   : > { %1787 = vrot.lane.b32.xlu1 %v3794_v2, %s4710_s13 }
 0x296   : > { %1783 = vrot.lane.b32.xlu0 %v1769_v54, %s4710_s13 }
 0x2d7   : > { %v1224_v55 = vpop.permute.xlu1 %1223 }
 0x2d8   : > { %v1226_v46 = vpop.permute.xlu0 %1225 }
 0x2d9   : > { %v1228_v48 = vsel %vm493_vm14, %v1224_v55, %v1226_v46  ;;  %v3772_v46 = vld [vmem:[%s4663_s3 + $0x28] sm:$0xff]  }
 0x2da   : > { %1234 = vmatprep.subr.bf16.mxu1 %v1228_v48 }
 0x2db   : > { %v1222_v49 = vpop.permute.xlu1 %1221 }
 0x2dc   : > { %v1227_v8 = vsel %vm493_vm14, %v1222_v49, %v1224_v55  ;;  %v1288_v52 = vpop.permute.xlu0 %1287 }
 0x2dd   : > { %1235 = vmatpush1.bf16.msra.mxu1 %v1227_v8 }
 0x2df   : > { %v1290_v7 = vpop.permute.xlu1 %1289 }
 0x2e0   : > { %3482 = vmatmul.mubr.msk.bf16.vlgmr.msra.gmra.mrb[4].mxu1 %vm493_vm14, %v3767_v30  ;;  %v1286_v56 = vpop.permute.xlu0 %1285  ;;  %v1292_v57 = vsel %vm4712_vm8, %v1288_v52, %v1290_v7  ;;  %vm4719_vm8 = vcmp.ne.s16.totalorder %v4106_v20, 0 }
 0x2e1   : > { %v1291_v58 = vsel %vm4713_vm10, %v1286_v56, %v1288_v52  ;;  %1298 = vmatprep.subr.bf16.mxu1 %v1292_v57  ;;  %1330 = vmatprep.mubr.bf16.mxu1 %v3794_v2  ;;  %vm4721_vm10 = vcmp.ne.s16.totalorder %v4102_v19, 0 }
 0x2e2   : > { %1299 = vmatpush1.bf16.msra.mxu1 %v1291_v58 }
 0x2e3   : > { %v1358_v59 = vpop.permute.xlu1 %1357 }
 0x2e4   : > { %v1360_v61 = vpop.permute.xlu0 %1359 }
 0x2e5   : > { %v1362_v29 = vsel %vm4714_vm2, %v1358_v59, %v1360_v61  ;;  %vm4722_vm2 = vcmp.ne.s16.totalorder %v4132_v32, 0  ;;  %v3774_v61 = vld [vmem:[%s4663_s3 + $0x38] sm:$0xff]  }
 0x2e6   : > { %1368 = vmatprep.subr.bf16.mxu1 %v1362_v29 }
 0x2e7   : > { %v1356_v63 = vpop.permute.xlu1 %1355 }
 0x2e8   : > { %v1361_v1 = vsel %vm4715_vm3, %v1356_v63, %v1358_v59  ;;  %vm4723_vm3 = vmmov %vm4718_vm7 }
 0x2ec   : > { %3484 = vmatmul.mubr.msk.bf16.vlgmr.msra.gmra.mrb[4].mxu1 %vm493_vm14, %v3768_v62  ;;  %v1844_v62 = vld [vmem:[%s4667_s7 + $0x8] sm:$0xff] }
 0x2ed   : > { %1369 = vmatpush1.bf16.msra.mxu1 %v1361_v1  ;;  %1400 = vmatprep.mubr.bf16.mxu1 %v3794_v2  ;;  %v3274_v1 = vld [vmem:[%s4669_s9 + $0x8] sm:$0xff] }
 0x2f5   : > { %v2613_v4 = vpop.permute.xlu0 %2612 }
 0x2f8   : > { %v2618_v5 = vpop.permute.xlu1 %2617  ;;  %3488 = vmatmul.mubr.msk.bf16.vlgmr.msra.gmra.mrb[4].mxu1 %vm493_vm14, %v3769_v3  ;;  %v3297_v3 = vld [vmem:[%s4671_s11] sm:$0xff] }
 0x2f9   : > { %v1432_v6 = vpop.permute.xlu0 %1431  ;;  %1474 = vmatprep.mubr.bf16.mxu1 %v3794_v2 }
 0x2fb   : > { %v2595_v9 = vpop.f32.mrb[4].mxu0 }
 0x2fc   : > { %v2620_v10 = vadd.f32 %v2613_v4, %v2595_v9  ;;  %v2597_v11 = vpop.f32.mrb[5].mxu0  ;;  %v1434_v12 = vpop.permute.xlu1 %1433 }
 0x2fd   : > { %v2621_v13 = vadd.f32 %v2613_v4, %v2597_v11  ;;  %v2599_v33 = vpop.f32.mrb[6].mxu0  ;;  %v1430_v14 = vpop.permute.xlu0 %1429  ;;  %v1436_v15 = vsel %vm4716_vm4, %v1432_v6, %v1434_v12  ;;  %vm4725_vm4 = vcmp.ne.s16.totalorder %v4121_v23, 0  ;;  %v3298_v4 = vld [vmem:[%s4671_s11 + $0x8] sm:$0xff] }
 0x2fe   : > { %v2622_v18 = vadd.f32 %v2618_v5, %v2599_v33  ;;  %v1435_v21 = vsel %vm4717_vm5, %v1430_v14, %v1432_v6  ;;  %1442 = vmatprep.subr.bf16.mxu1 %v1436_v15  ;;  %v2601_v22 = vpop.f32.mrb[7].mxu0  ;;  %v2624_v27 = vmax.f32 %v2620_v10, 0.0  ;;  %vm4726_vm5 = vcmask 924672   ;;  %v3776_v33 = vld [vmem:[%s4665_s5 + $0x8] sm:$0xff]  }
 0x2ff   : > { %v2623_v25 = vadd.f32 %v2618_v5, %v2601_v22  ;;  %1443 = vmatpush1.bf16.msra.mxu1 %v1435_v21  ;;  %v2625_v39 = vmax.f32 %v2621_v13, 0.0  ;;  %v3775_v5 = vld [vmem:[%s4663_s3 + $0x40] sm:$0xff]  }
 0x300   : > { %v2626_v35 = vmax.f32 %v2622_v18, 0.0  ;;  %1500 = vmatprep.subr.bf16.mxu1 %v4345_v31  ;;  %v1567_v36 = vpop.permute.xlu1 %1566 }
 0x301   : > { %v2627_v40 = vmax.f32 %v2623_v25, 0.0  ;;  %v1569_v37 = vpop.permute.xlu0 %1568 }
 0x302   : > { %v4454_v38 = vpack.c.bf16 %v2626_v35, %v2624_v27  ;;  %v1571_v31 = vsel %vm4718_vm7, %v1567_v36, %v1569_v37  ;;  %vm4727_vm7 = vcmp.ne.s16.totalorder %v4163_v53, 0 }
 0x303   : > { %v4456_v34 = vpack.c.bf16 %v2627_v40, %v2625_v39 }
 0x304   : > { %2653 = vrot.lane.b32.xlu1 %v4454_v38, %s3807_s26  ;;  %3492 = vmatmul.mubr.msk.bf16.vlgmr.msra.gmra.mrb[4].mxu1 %vm493_vm14, %v3770_v24  ;;  %v1565_v43 = vpop.permute.xlu1 %1564  ;;  %v2636_v44 = vsel %vm4719_vm8, %v4454_v38, 0  ;;  %v2772_v20 = vsel %vm4722_vm2, %v4454_v38, 0  ;;  %v2846_v55 = vsel %vm4727_vm7, %v4454_v38, 0  ;;  %vm4729_vm8 = vcmp.ne.s16.totalorder %v4157_v51, 0  ;;  %vm4731_vm2 = vmmov %vm4726_vm5  ;;  %v3777_v24 = vld [vmem:[%s4665_s5] sm:$0xff]  }
 0x305   : > { %1501 = vmatpush1.bf16.msra.mxu1 %v4343_v28  ;;  %2655 = vrot.lane.b32.xlu0 %v4456_v34, %s3807_s26  ;;  %v2637_v28 = vsel %vm4721_vm10, %v4456_v34, 0  ;;  %v1641_v42 = vpop.permute.xlu0 %1640  ;;  %v1570_v47 = vsel %vm4723_vm3, %v1565_v43, %v1567_v36  ;;  %v2773_v19 = vsel %vm4725_vm4, %v4456_v34, 0  ;;  %v2847_v23 = vsel %vm4729_vm8, %v4456_v34, 0 }
 0x306   : > { %1577 = vmatprep.subr.bf16.mxu1 %v1571_v31  ;;  %1532 = vmatprep.mubr.bf16.mxu1 %v3794_v2  ;;  %vm4730_vm10 = vcmp.ne.s16.totalorder %v4216_v17, 0  ;;  %vm4732_vm3 = vcmask 916480   ;;  %vm4733_vm4 = vcmp.ne.s16.totalorder %v4212_v16, 0  ;;  %v3055_v30 = vsel %vm2378_vm0, %v4456_v34, 0  ;;  %v3773_v16 = vld [vmem:[%s4663_s3 + $0x30] sm:$0xff]  }
 0x307   : > { %v2981_v53 = vsel %vm4730_vm10, %v4456_v34, 0  ;;  %v2980_v17 = vsel %vm4733_vm4, %v4454_v38, 0  ;;  %vm4735_vm7 = vmmov %vm4732_vm3  ;;  %vm4736_vm0 = vcmask 908288   ;;  %v3200_v58 = vsel %vm2532_vm11, %v4456_v34, 0  ;;  %v3778_v31 = vld [vmem:[%s4665_s5 + $0x10] sm:$0xff]  }
 0x308   : > { %2651 = vrot.lane.b32.xlu1 %v3794_v2, %s3807_s26  ;;  %v1643_v50 = vpop.permute.xlu1 %1642  ;;  %s4724_s26 = smov 45   ;;  %v3199_v59 = vsel %vm2531_vm6, %v4454_v38, 0  ;;  %vm4737_vm11 = vmmov %vm4736_vm0  ;;  %vm4738_vm6 = vcmask 392192   ;;  %vm4740_vm10 = vcmask 367616  }
 0x309   : > { %2717 = vrot.lane.b32.xlu0 %v2636_v44, %s4720_s16  ;;  %v1645_v54 = vsel %vm4726_vm5, %v1641_v42, %v1643_v50  ;;  %v1639_v32 = vpop.permute.xlu0 %1638  ;;  %vm4734_vm5 = vcmp.ne.s16.totalorder %v4227_v26, 0  ;;  %vm4739_vm8 = vmmov %vm4738_vm6 }
 0x30a   : > { %v1644_v8 = vsel %vm4731_vm2, %v1639_v32, %v1641_v42  ;;  %v3054_v7 = vsel %vm4734_vm5, %v4454_v38, 0  ;;  %vm4741_vm2 = vmmov %vm4740_vm10 }
 0x30c   : > { %2719 = vrot.lane.b32.xlu1 %v2637_v28, %s4720_s16  ;;  %v1712_v48 = vpop.permute.xlu1 %1711  ;;  %v3779_v28 = vld [vmem:[%s4665_s5 + $0x18] sm:$0xff]  }
 0x30d   : > { %2715 = vrot.lane.b32.xlu0 %v3794_v2, %s4720_s16  ;;  %v1714_v49 = vpop.permute.xlu0 %1713 }
 0x30e   : > { %v1716_v51 = vsel %vm4732_vm3, %v1712_v48, %v1714_v49 }
 0x310   : > { %2787 = vrot.lane.b32.xlu1 %v2772_v20, %s4724_s26  ;;  %3496 = vmatmul.mubr.msk.bf16.vlgmr.msra.gmra.mrb[4].mxu1 %vm493_vm14, %v3771_v45  ;;  %v1710_v52 = vpop.permute.xlu1 %1709 }
 0x311   : > { %1578 = vmatpush1.bf16.msra.mxu1 %v1570_v47  ;;  %2789 = vrot.lane.b32.xlu0 %v2773_v19, %s4724_s26  ;;  %v1715_v57 = vsel %vm4735_vm7, %v1710_v52, %v1712_v48  ;;  %v1786_v41 = vpop.permute.xlu0 %1785  ;;  %v3780_v47 = vld [vmem:[%s4665_s5 + $0x20] sm:$0xff]  }
 0x312   : > { %1651 = vmatprep.subr.bf16.mxu1 %v1645_v54  ;;  %1609 = vmatprep.mubr.bf16.mxu1 %v3794_v2 }
 0x314   : > { %2785 = vrot.lane.b32.xlu1 %v3794_v2, %s4724_s26  ;;  %v1788_v56 = vpop.permute.xlu1 %1787 }
 0x315   : > { %2861 = vrot.lane.b32.xlu0 %v2846_v55, %s4728_s29  ;;  %v1790_v26 = vsel %vm4736_vm0, %v1786_v41, %v1788_v56  ;;  %v1784_v29 = vpop.permute.xlu0 %1783  ;;  %v3783_v56 = vld [vmem:[%s4665_s5 + $0x38] sm:$0xff]  }
 0x316   : > { %v1789_v63 = vsel %vm4737_vm11, %v1784_v29, %v1786_v41 }
 0x318   : > { %2863 = vrot.lane.b32.xlu1 %v2847_v23, %s4728_s29 }
 0x319   : > { %2859 = vrot.lane.b32.xlu0 %v3794_v2, %s4728_s29 }
 0x31c   : > { %2996 = vrot.lane.b32.xlu1 %v2981_v53, %s3803_s19  ;;  %3500 = vmatmul.mubr.msk.bf16.vlgmr.msra.gmra.mrb[4].mxu1 %vm493_vm14, %v3772_v46  ;;  %v3781_v46 = vld [vmem:[%s4665_s5 + $0x28] sm:$0xff]  }
 0x31d   : > { %1652 = vmatpush1.bf16.msra.mxu1 %v1644_v8  ;;  %2998 = vrot.lane.b32.xlu0 %v3794_v2, %s3803_s19 }
 0x31e   : > { %1722 = vmatprep.subr.bf16.mxu1 %v1716_v51  ;;  %1683 = vmatprep.mubr.bf16.mxu1 %v3794_v2 }
 0x320   : > { %2994 = vrot.lane.b32.xlu1 %v2980_v17, %s3803_s19  ;;  %v3782_v17 = vld [vmem:[%s4665_s5 + $0x30] sm:$0xff]  }
 0x321   : > { %3070 = vrot.lane.b32.xlu0 %v3055_v30, %s3802_s18 }
 0x324   : > { %3072 = vrot.lane.b32.xlu1 %v3794_v2, %s3802_s18 }
 0x325   : > { %3068 = vrot.lane.b32.xlu0 %v3054_v7, %s3802_s18 }
 0x328   : > { %3141 = vrot.lane.b32.xlu1 %v4456_v34, %s3810_s25  ;;  %3504 = vmatmul.mubr.msk.bf16.vlgmr.msra.gmra.mrb[4].mxu1 %vm493_vm14, %v3773_v16 }
 0x329   : > { %1723 = vmatpush1.bf16.msra.mxu1 %v1715_v57  ;;  %3143 = vrot.lane.b32.xlu0 %v3794_v2, %s3810_s25 }
 0x32a   : > { %1796 = vmatprep.subr.bf16.mxu1 %v1790_v26  ;;  %1754 = vmatprep.mubr.bf16.mxu1 %v3794_v2  ;;  %v3784_v26 = vld [vmem:[%s4665_s5 + $0x40] sm:$0xff]  }
 0x32c   : > { %3139 = vrot.lane.b32.xlu1 %v4454_v38, %s3810_s25 }
 0x32d   : > { %3215 = vrot.lane.b32.xlu0 %v3200_v58, %s3801_s17 }
 0x330   : > { %3217 = vrot.lane.b32.xlu1 %v3794_v2, %s3801_s17 }
 0x331   : > { %3213 = vrot.lane.b32.xlu0 %v3199_v59, %s3801_s17 }
 0x334   : > { %1847 = vperm.xlu1 %3745, %v1843_v0   ;;  %3508 = vmatmul.mubr.msk.bf16.vlgmr.msra.gmra.mrb[4].mxu1 %vm493_vm14, %v3774_v61 }
 0x335   : > { %1797 = vmatpush1.bf16.msra.mxu1 %v1789_v63  ;;  %1852 = vperm.xlu0 %3744, %v1844_v62  }
 0x336   : > { %1828 = vmatprep.mubr.bf16.mxu1 %v3794_v2 }
 0x338   : > { %3277 = vperm.xlu1 %3745, %v3273_v60  }
 0x339   : > { %3282 = vperm.xlu0 %3744, %v3274_v1  }
 0x33c   : > { %3301 = vperm.xlu1 %3745, %v3297_v3  }
 0x33d   : > { %3306 = vperm.xlu0 %3744, %v3298_v4  }
 0x340   : > { %3512 = vmatmul.mubr.msk.bf16.vlgmr.msra.gmra.mrb[4].mxu1 %vm493_vm14, %v3775_v5 }
 0x341   : > { %2696 = vmatprep.mubr.bf16.mxu1 %v3794_v2 }
 0x376   : > { %v2654_v6 = vpop.permute.xlu1 %2653 }
 0x377   : > { %v2656_v9 = vpop.permute.xlu0 %2655 }
 0x378   : > { %v2658_v10 = vsel %vm4738_vm6, %v2654_v6, %v2656_v9 }
 0x379   : > { %2664 = vmatprep.subr.bf16.mxu1 %v2658_v10 }
 0x37a   : > { %v2652_v11 = vpop.permute.xlu1 %2651 }
 0x37b   : > { %v2657_v12 = vsel %vm4739_vm8, %v2652_v11, %v2654_v6  ;;  %v2718_v13 = vpop.permute.xlu0 %2717 }
 0x37c   : > { %2665 = vmatpush1.bf16.msra.mxu1 %v2657_v12 }
 0x37e   : > { %v2720_v14 = vpop.permute.xlu1 %2719 }
 0x37f   : > { %3550 = vmatmul.mubr.msk.bf16.vlgmr.msra.gmra.mrb[8].mxu1 %vm493_vm14, %v3776_v33  ;;  %v2716_v15 = vpop.permute.xlu0 %2715  ;;  %v2722_v18 = vsel %vm1989_vm1, %v2718_v13, %v2720_v14 }
 0x380   : > { %v2721_v21 = vsel %vm1989_vm1, %v2716_v15, %v2718_v13  ;;  %2728 = vmatprep.subr.bf16.mxu1 %v2722_v18  ;;  %2760 = vmatprep.mubr.bf16.mxu1 %v3794_v2  ;;  %vm4742_vm1 = vcmask 1022976  }
 0x381   : > { %2729 = vmatpush1.bf16.msra.mxu1 %v2721_v21 }
 0x382   : > { %v2788_v22 = vpop.permute.xlu1 %2787 }
 0x383   : > { %v2790_v25 = vpop.permute.xlu0 %2789 }
 0x384   : > { %v2792_v27 = vsel %vm4740_vm10, %v2788_v22, %v2790_v25 }
 0x385   : > { %2798 = vmatprep.subr.bf16.mxu1 %v2792_v27 }
 0x386   : > { %v2786_v35 = vpop.permute.xlu1 %2785 }
 0x387   : > { %v2862_v39 = vpop.permute.xlu0 %2861  ;;  %v2791_v36 = vsel %vm4741_vm2, %v2786_v35, %v2788_v22 }
 0x38a   : > { %v2864_v40 = vpop.permute.xlu1 %2863 }
 0x38b   : > { %3552 = vmatmul.mubr.msk.bf16.vlgmr.msra.gmra.mrb[8].mxu1 %vm493_vm14, %v3777_v24  ;;  %v2866_v37 = vsel %vm2174_vm9, %v2862_v39, %v2864_v40  ;;  %v2860_v43 = vpop.permute.xlu0 %2859 }
 0x38c   : > { %2799 = vmatpush1.bf16.msra.mxu1 %v2791_v36  ;;  %2830 = vmatprep.mubr.bf16.mxu1 %v3794_v2  ;;  %v2865_v44 = vsel %vm2174_vm9, %v2860_v43, %v2862_v39  ;;  %vm4743_vm9 = vmmov %vm4742_vm1 }
 0x38d   : > { %2872 = vmatprep.subr.bf16.mxu1 %v2866_v37 }
 0x38e   : > { %v2997_v45 = vpop.permute.xlu1 %2996 }
 0x38f   : > { %v2999_v42 = vpop.permute.xlu0 %2998 }
 0x390   : > { %v3001_v50 = vsel %vm4742_vm1, %v2997_v45, %v2999_v42 }
 0x392   : > { %v2995_v20 = vpop.permute.xlu1 %2994 }
 0x393   : > { %v3071_v19 = vpop.permute.xlu0 %3070  ;;  %v3000_v32 = vsel %vm4743_vm9, %v2995_v20, %v2997_v45 }
 0x396   : > { %v3073_v54 = vpop.permute.xlu1 %3072 }
 0x397   : > { %3556 = vmatmul.mubr.msk.bf16.vlgmr.msra.gmra.mrb[8].mxu1 %vm493_vm14, %v3778_v31  ;;  %v3075_v55 = vsel %vm2065_vm13, %v3071_v19, %v3073_v54  ;;  %v3069_v23 = vpop.permute.xlu0 %3068 }
 0x398   : > { %2873 = vmatpush1.bf16.msra.mxu1 %v2865_v44  ;;  %2904 = vmatprep.mubr.bf16.mxu1 %v3794_v2  ;;  %v3074_v53 = vsel %vm2065_vm13, %v3069_v23, %v3071_v19 }
 0x399   : > { %2930 = vmatprep.subr.bf16.mxu1 %v4456_v34 }
 0x39a   : > { %v3142_v48 = vpop.permute.xlu1 %3141 }
 0x39b   : > { %v3144_v49 = vpop.permute.xlu0 %3143 }
 0x39c   : > { %v3146_v8 = vsel %vm2471_vm15, %v3142_v48, %v3144_v49 }
 0x39e   : > { %v3140_v51 = vpop.permute.xlu1 %3139 }
 0x39f   : > { %v3145_v30 = vsel %vm2471_vm15, %v3140_v51, %v3142_v48  ;;  %v3216_v7 = vpop.permute.xlu0 %3215 }
 0x3a2   : > { %v3218_v52 = vpop.permute.xlu1 %3217 }
 0x3a3   : > { %3560 = vmatmul.mubr.msk.bf16.vlgmr.msra.gmra.mrb[8].mxu1 %vm493_vm14, %v3779_v28  ;;  %v3220_v16 = vsel %vm1897_vm12, %v3216_v7, %v3218_v52  ;;  %v3214_v57 = vpop.permute.xlu0 %3213 }
 0x3a4   : > { %2931 = vmatpush1.bf16.msra.mxu1 %v4454_v38  ;;  %2962 = vmatprep.mubr.bf16.mxu1 %v3794_v2  ;;  %v3219_v41 = vsel %vm1897_vm12, %v3214_v57, %v3216_v7 }
 0x3a5   : > { %3007 = vmatprep.subr.bf16.mxu1 %v3001_v50 }
 0x3af   : > { %3564 = vmatmul.mubr.msk.bf16.vlgmr.msra.gmra.mrb[8].mxu1 %vm493_vm14, %v3780_v47 }
 0x3b0   : > { %3008 = vmatpush1.bf16.msra.mxu1 %v3000_v32  ;;  %3039 = vmatprep.mubr.bf16.mxu1 %v3794_v2 }
 0x3b1   : > { %3081 = vmatprep.subr.bf16.mxu1 %v3075_v55 }
 0x3b3   : > { %v1848_v58 = vpop.permute.xlu1 %1847 }
 0x3b4   : > { %v1853_v0 = vpop.permute.xlu0 %1852 }
 0x3b7   : > { %v3278_v11 = vpop.permute.xlu1 %3277 }
 0x3b8   : > { %v3283_v14 = vpop.permute.xlu0 %3282 }
 0x3bb   : > { %3568 = vmatmul.mubr.msk.bf16.vlgmr.msra.gmra.mrb[8].mxu1 %vm493_vm14, %v3781_v46 }
 0x3bc   : > { %3082 = vmatpush1.bf16.msra.mxu1 %v3074_v53  ;;  %3113 = vmatprep.mubr.bf16.mxu1 %v3794_v2  ;;  %v3307_v44 = vpop.permute.xlu0 %3306 }
 0x3bd   : > { %3152 = vmatprep.subr.bf16.mxu1 %v3146_v8 }
 0x3c7   : > { %3572 = vmatmul.mubr.msk.bf16.vlgmr.msra.gmra.mrb[8].mxu1 %vm493_vm14, %v3782_v17 }
 0x3c8   : > { %3153 = vmatpush1.bf16.msra.mxu1 %v3145_v30  ;;  %3184 = vmatprep.mubr.bf16.mxu1 %v3794_v2 }
 0x3c9   : > { %3226 = vmatprep.subr.bf16.mxu1 %v3220_v16 }
 0x3d3   : > { %3576 = vmatmul.mubr.msk.bf16.vlgmr.msra.gmra.mrb[8].mxu1 %vm493_vm14, %v3783_v56 }
 0x3d4   : > { %3227 = vmatpush1.bf16.msra.mxu1 %v3219_v41  ;;  %3258 = vmatprep.mubr.bf16.mxu1 %v3794_v2 }
 0x3df   : > { %3580 = vmatmul.mubr.msk.bf16.vlgmr.msra.gmra.mrb[8].mxu1 %vm493_vm14, %v3784_v26 }
 0x413   : > { %v1830_v59 = vpop.f32.mrb[4].mxu1 }
 0x414   : > { %v1855_v61 = vadd.f32 %v1848_v58, %v1830_v59  ;;  %v1832_v29 = vpop.f32.mrb[5].mxu1 }
 0x415   : > { %v1856_v62 = vadd.f32 %v1848_v58, %v1832_v29  ;;  %v1834_v63 = vpop.f32.mrb[6].mxu1 }
 0x416   : > { %v1857_v60 = vadd.f32 %v1853_v0, %v1834_v63  ;;  %v1836_v1 = vpop.f32.mrb[7].mxu1  ;;  %v1859_v4 = vmax.f32 %v1855_v61, 0.0 }
 0x417   : > { %v1858_v3 = vadd.f32 %v1853_v0, %v1836_v1  ;;  %v1860_v6 = vmax.f32 %v1856_v62, 0.0 }
 0x418   : > { %v1861_v5 = vmax.f32 %v1857_v60, 0.0 }
 0x419   : > { %v1862_v2 = vmax.f32 %v1858_v3, 0.0 }
 0x41a   : > { %v1863_v9 = vpack.c.bf16 %v1861_v5, %v1859_v4 }
 0x41b   : > { %v1864_v10 = vpack.c.bf16 %v1862_v2, %v1860_v6 }
 0x41d   : > { %3322 = vmatprep.subr.bf16.mxu0 %v1864_v10 }
 0x41e   : > { %3323 = vmatpush1.bf16.msra.mxu0 %v1863_v9 }
 0x41f   : > { %3324 = vmatprep.subr.bf16.mxu0 %v4456_v34  ;;  %v3302_v34 = vpop.permute.xlu1 %3301 }
 0x422   : > { %3325 = vmatpush1.bf16.msra.mxu0 %v4454_v38  ;;  %v3785_v38 = vld [vmem:[%s4670_s10] sm:$0xff]  }
 0x4b2   : > { %v3260_v12 = vpop.f32.mrb[8].mxu1 }
 0x4b3   : > { %v3285_v13 = vadd.f32 %v3278_v11, %v3260_v12  ;;  %v3262_v33 = vpop.f32.mrb[9].mxu1 }
 0x4b4   : > { %v3286_v15 = vadd.f32 %v3278_v11, %v3262_v33  ;;  %v3264_v18 = vpop.f32.mrb[10].mxu1 }
 0x4b5   : > { %v3287_v21 = vadd.f32 %v3283_v14, %v3264_v18  ;;  %v3266_v22 = vpop.f32.mrb[11].mxu1  ;;  %v3289_v27 = vmax.f32 %v3285_v13, 0.0 }
 0x4b6   : > { %v3288_v25 = vadd.f32 %v3283_v14, %v3266_v22  ;;  %v3290_v24 = vmax.f32 %v3286_v15, 0.0 }
 0x4b7   : > { %v3291_v35 = vmax.f32 %v3287_v21, 0.0 }
 0x4b8   : > { %v3292_v39 = vmax.f32 %v3288_v25, 0.0 }
 0x4b9   : > { %v3293_v40 = vpack.c.bf16 %v3291_v35, %v3289_v27 }
 0x4ba   : > { %v3294_v36 = vpack.c.bf16 %v3292_v39, %v3290_v24 }
 0x4bc   : > { %3326 = vmatprep.subr.bf16.mxu0 %v3294_v36 }
 0x4bd   : > { %3327 = vmatpush1.bf16.msra.mxu0 %v3293_v40 }
 0x4c0   : > { %3582 = vmatmul.mubr.msk.bf16.vlgmr.msra.gmra.mrb[8].mxu0 %vm2471_vm15, %v3785_v38 }
 0x593   : > { %v3352_v37 = vpop.f32.mrb[8].mxu0 }
 0x594   : > { %v3353_v31 = vadd.f32 %v3352_v37, %v3302_v34  ;;  %v3354_v43 = vpop.f32.mrb[9].mxu0 }
 0x595   : > { %v3355_v28 = vadd.f32 %v3354_v43, %v3302_v34  ;;  %v3356_v45 = vpop.f32.mrb[10].mxu0 }
 0x596   : > { %v3361_v42 = vmax.f32 %v3353_v31, 0.0  ;;  %v3357_v50 = vadd.f32 %v3356_v45, %v3307_v44  ;;  %v3358_v20 = vpop.f32.mrb[11].mxu0 }
 0x597   : > { %v3362_v47 = vmax.f32 %v3355_v28, 0.0  ;;  %v3359_v19 = vadd.f32 %v3358_v20, %v3307_v44 }
 0x598   : > { %v3363_v54 = vmax.f32 %v3357_v50, 0.0 }
 0x599   : > { %v3589_v32 = vpack.c.bf16 %v3362_v47, %v3361_v42  ;;  %v3364_v55 = vmax.f32 %v3359_v19, 0.0 }
 0x59b   : > { %3377 = vst [vmem:[%s413_s27] sm:$0xff] %v3589_v32  ;;  %v3590_v23 = vpack.c.bf16 %v3364_v55, %v3363_v54 }
 0x59d   : > { %3378 = vst [vmem:[%s413_s27 + $0x8] sm:$0xff] %v3590_v23 }
 0x59e PF: > { %s22_s21 = sadd.s32 1, %s3792_s21  }
 0x59f   : > { %p19_p4 = scmp.ge.s32.totalorder %s22_s21, 4  }
 0x5a1   :  { %21 = sbr.rel (!%p19_p4) target bundleno = 1 (0x1), region = 130 }

</bundles_post_ra>
